<compile_context>
chip_gen: v5e
topology: v5e:2x2
jax: 0.10.0
libtpu: 0.0.40
codegen_flags: <defaults>
</compile_context>

<pallas_src>
import functools

import numpy as np

import jax
import jax.numpy as jnp
from jax.experimental import pallas as pl
from jax.experimental.pallas import tpu as pltpu


IN_CH = 4
IN_CHANNELS_LIST = [8, 16, 32]   # backbone stage output channels
OUT_CHANNEL = 16                 # FPN out_channels

LANE = 128
_VMEM_BUDGET = 8 * 1024 * 1024   # per-call working-set target (fits v7x easily)
_MXU_PREC = jax.lax.Precision.HIGHEST   # keep conv math in true f32


def _round_up(a, b):
    return (a + b - 1) // b * b


# ----------------------------- Pallas kernels ------------------------------ #
# One shared kernel: lane-dense matmul + bias (+ residual) (+ ReLU).
#   W    : (C_out, K)        resident (constant index_map)
#   cols : (K, TM)           lane-dense column tile (K = taps*C_in)
#   bias : (C_out, 1)        resident
#   res  : (C_out, TM)       optional fused top-down add
#   out  : (C_out, TM)       lane-dense store

def _mm_kernel(w_ref, c_ref, b_ref, o_ref, *, relu):
    acc = jnp.dot(w_ref[...], c_ref[...],
                  preferred_element_type=jnp.float32, precision=_MXU_PREC)
    acc = acc + b_ref[...]
    if relu:
        acc = jnp.maximum(acc, 0.0)
    o_ref[...] = acc.astype(o_ref.dtype)


def _mm_res_kernel(w_ref, c_ref, b_ref, r_ref, o_ref, *, relu):
    acc = jnp.dot(w_ref[...], c_ref[...],
                  preferred_element_type=jnp.float32, precision=_MXU_PREC)
    acc = acc + b_ref[...] + r_ref[...]
    if relu:
        acc = jnp.maximum(acc, 0.0)
    o_ref[...] = acc.astype(o_ref.dtype)


def matmul_bias_act(w2, cols, b, *, residual=None, relu=False):
    """out(C_out, M) = W(C_out, K) @ cols(K, M) + b [+ residual] [+ ReLU]."""
    c_out, k = w2.shape
    k2, m = cols.shape
    assert k == k2

    # ---- lane-dense column tile, sized from a VMEM budget -------------------
    if m <= LANE:
        tm, m_pad = m, m                      # single full block (tiny maps)
    else:
        n_big = 2 if residual is not None else 1
        per_col = 4 * 2 * (k + c_out * n_big)           # f32, double-buffered
        tm = max(LANE, min(_VMEM_BUDGET // per_col, 4096) // LANE * LANE)
        tm = min(tm, _round_up(m, LANE))
        m_pad = _round_up(m, tm)              # pad the tail, don't assert

    if m_pad != m:
        cols = jnp.pad(cols, ((0, 0), (0, m_pad - m)))
        if residual is not None:
            residual = jnp.pad(residual, ((0, 0), (0, m_pad - m)))

    bias = b.reshape(c_out, 1)
    in_specs = [
        pl.BlockSpec((c_out, k), lambda i: (0, 0)),      # W resident
        pl.BlockSpec((k, tm), lambda i: (0, i)),         # cols column tile
        pl.BlockSpec((c_out, 1), lambda i: (0, 0)),      # bias resident
    ]
    args = [w2, cols, bias]
    if residual is not None:
        in_specs.append(pl.BlockSpec((c_out, tm), lambda i: (0, i)))
        args.append(residual)
        kernel = functools.partial(_mm_res_kernel, relu=relu)
    else:
        kernel = functools.partial(_mm_kernel, relu=relu)

    out = pl.pallas_call(
        kernel,
        out_shape=jax.ShapeDtypeStruct((c_out, m_pad), jnp.float32),
        grid=(m_pad // tm,),
        in_specs=in_specs,
        out_specs=pl.BlockSpec((c_out, tm), lambda i: (0, i)),
        compiler_params=pltpu.CompilerParams(
            dimension_semantics=("parallel",),
            vmem_limit_bytes=32 * 1024 * 1024),
    )(*args)
    return out[:, :m] if m_pad != m else out


# ------------------- XLA data movement (no FLOPs, no Pallas) ---------------- #

def _im2col(x_cnhw, kh, kw, stride, pad):
    """(C, N, H, W) -> (kh*kw*C, N*Ho*Wo) stacked tap columns (pure slicing)."""
    c, n, h, w = x_cnhw.shape
    ho = (h + 2 * pad - kh) // stride + 1
    wo = (w + 2 * pad - kw) // stride + 1
    xp = jnp.pad(x_cnhw, ((0, 0), (0, 0), (pad, pad), (pad, pad)))
    taps = []
    for dy in range(kh):
        for dx in range(kw):
            taps.append(jax.lax.slice(
                xp, (0, 0, dy, dx),
                (c, n, dy + (ho - 1) * stride + 1, dx + (wo - 1) * stride + 1),
                (1, 1, stride, stride)))                 # (C, N, Ho, Wo)
    cols = jnp.stack(taps, axis=0).reshape(kh * kw * c, n * ho * wo)
    return cols, ho, wo


def _upsample_nearest_cm(x_cm, n, hc, wc, hf, wf):
    """Nearest resize (F.interpolate semantics) as a static-index gather."""
    c = x_cm.shape[0]
    x4 = x_cm.reshape(c, n, hc, wc)
    iy = jnp.asarray(np.arange(hf) * hc // hf, jnp.int32)
    ix = jnp.asarray(np.arange(wf) * wc // wf, jnp.int32)
    up = jnp.take(jnp.take(x4, iy, axis=2), ix, axis=3)
    return up.reshape(c, n * hf * wf)


def conv2d_cm(x_cm, n, h, w, wconv, b, *, stride, pad, relu):
    """KxK conv on a lane-dense (C, M) activation: im2col + one MXU matmul."""
    o, c_in, kh, kw = wconv.shape
    x4 = x_cm.reshape(c_in, n, h, w)
    cols, ho, wo = _im2col(x4, kh, kw, stride, pad)
    w2 = jnp.transpose(wconv, (0, 2, 3, 1)).reshape(o, kh * kw * c_in)
    out = matmul_bias_act(w2, cols, b, relu=relu)
    return out, ho, wo


# ------------------------------- parameters -------------------------------- #

def init_params(key):
    def conv_init(k, o, i, ksz):
        kw_, kb_ = jax.random.split(k)
        fan_in = i * ksz * ksz
        w = jax.random.normal(kw_, (o, i, ksz, ksz), jnp.float32) / jnp.sqrt(
            jnp.float32(fan_in))
        b = 0.01 * jax.random.normal(kb_, (o,), jnp.float32)
        return w, b

    keys = jax.random.split(key, 9)
    body = []
    prev = IN_CH
    for idx, c in enumerate(IN_CHANNELS_LIST):
        body.append(conv_init(keys[idx], c, prev, 3))
        prev = c
    fpn_inner = [conv_init(keys[3 + i], OUT_CHANNEL, c, 1)
                 for i, c in enumerate(IN_CHANNELS_LIST)]
    fpn_layer = [conv_init(keys[6 + i], OUT_CHANNEL, OUT_CHANNEL, 3)
                 for i in range(len(IN_CHANNELS_LIST))]
    return {"body": body, "fpn_inner": fpn_inner, "fpn_layer": fpn_layer}


# ------------------------------ forward pass -------------------------------- #

def backbone_with_fpn_forward(params, x):
    n, cin, hh, ww = x.shape
    # NCHW -> lane-dense (C, M) with M = N*H*W (done once at the boundary).
    x_cm = jnp.transpose(x, (1, 0, 2, 3)).reshape(cin, n * hh * ww)

    # ---- body (IntermediateLayerGetter): 3x (3x3 s2 p1 conv + ReLU) ----------
    feats, spat = [], []
    cur, ch, cw = x_cm, hh, ww
    for (wconv, bconv) in params["body"]:
        cur, ch, cw = conv2d_cm(cur, n, ch, cw, wconv, bconv,
                                stride=2, pad=1, relu=True)
        feats.append(cur)
        spat.append((ch, cw))

    # ---- FPN: laterals (+ fused top-down add) + 3x3 output convs -------------
    def lateral(level, residual=None):
        wl, bl = params["fpn_inner"][level]
        return matmul_bias_act(wl.reshape(wl.shape[0], wl.shape[1]),
                               feats[level], bl, residual=residual)

    def out_conv(level, x_lvl):
        wo_, bo_ = params["fpn_layer"][level]
        out, _, _ = conv2d_cm(x_lvl, n, *spat[level], wo_, bo_,
                              stride=1, pad=1, relu=False)
        return out

    li2 = lateral(2)
    r2 = out_conv(2, li2)

    td1 = _upsample_nearest_cm(li2, n, *spat[2], *spat[1])
    li1 = lateral(1, residual=td1)           # lateral + top-down fused in-kernel
    r1 = out_conv(1, li1)

    td0 = _upsample_nearest_cm(li1, n, *spat[1], *spat[0])
    li0 = lateral(0, residual=td0)
    r0 = out_conv(0, li0)

    def to_nchw(r, fh, fw):
        return jnp.transpose(r.reshape(OUT_CHANNEL, n, fh, fw), (1, 0, 2, 3))

    out0 = to_nchw(r0, *spat[0])
    out1 = to_nchw(r1, *spat[1])
    out2 = to_nchw(r2, *spat[2])
    # extra block MaxpoolOnP5: F.max_pool2d(P5, kernel_size=1, stride=2) has a
    # 1x1 window -> pure stride-2 subsampling; a free XLA strided view.
    pool = out2[:, :, ::2, ::2]
    return {"0": out0, "1": out1, "2": out2, "pool": pool}


# --------------------------- pure-JAX reference ----------------------------- #

def _conv_ref(x, w, b, stride, pad):
    out = jax.lax.conv_general_dilated(
        x, w, (stride, stride), [(pad, pad), (pad, pad)],
        dimension_numbers=("NCHW", "OIHW", "NCHW"),
        precision=jax.lax.Precision.HIGHEST)
    return out + b.reshape(1, -1, 1, 1)


def forward_ref(params, x):
    feats = []
    h = x
    for (w, b) in params["body"]:
        h = jax.nn.relu(_conv_ref(h, w, b, 2, 1))
        feats.append(h)
    inner = [_conv_ref(f, w, b, 1, 0)
             for f, (w, b) in zip(feats, params["fpn_inner"])]
    last = inner[-1]
    results = [_conv_ref(last, *params["fpn_layer"][-1], 1, 1)]
    for idx in range(len(feats) - 2, -1, -1):
        up = jnp.repeat(jnp.repeat(last, 2, axis=2), 2, axis=3)
        last = inner[idx] + up
        results.insert(0, _conv_ref(last, *params["fpn_layer"][idx], 1, 1))
    results.append(results[-1][:, :, ::2, ::2])
    return dict(zip([str(i) for i in range(len(feats))] + ["pool"], results))


# ---------------------------------- main ------------------------------------ #

if __name__ == "__main__":
    key = jax.random.PRNGKey(0)
    pkey, xkey = jax.random.split(key)
    params = init_params(pkey)
    x = jax.random.normal(xkey, (2, IN_CH, 16, 16), jnp.float32)

    fwd = jax.jit(backbone_with_fpn_forward)
    out = fwd(params, x)
    out = jax.tree_util.tree_map(jax.block_until_ready, out)

    ref = forward_ref(params, x)
    expected_shapes = {"0": (2, 16, 8, 8), "1": (2, 16, 4, 4),
                       "2": (2, 16, 2, 2), "pool": (2, 16, 1, 1)}
    for name in ["0", "1", "2", "pool"]:
        assert out[name].shape == expected_shapes[name], (name, out[name].shape)
        assert jnp.allclose(out[name], ref[name], atol=2e-4, rtol=2e-4), name

    print("KERNEL_OK")
</pallas_src>

<mosaic_0001>
module attributes {stable_mosaic.version = 11 : i64} {
  func.func @_mm_kernel(%arg0: i32, %arg1: memref<8x36xf32, #tpu.memory_space<vmem>>, %arg2: memref<36x128xf32, #tpu.memory_space<vmem>>, %arg3: memref<8x1xf32, #tpu.memory_space<vmem>>, %arg4: memref<8x128xf32, #tpu.memory_space<vmem>>) attributes {dimension_semantics = [#tpu.dimension_semantics<parallel>], iteration_bounds = array<i64: 1>, scalar_prefetch = 0 : i64, scratch_operands = 0 : i64, tpu.core_type = #tpu.core_type<tc>, window_params = [{pipeline_mode = #tpu.pipeline_mode<synchronous>, transform_indices = @transform_0, window_bounds = array<i64: 8, 36>}, {transform_indices = @transform_1, window_bounds = array<i64: 36, 128>}, {pipeline_mode = #tpu.pipeline_mode<synchronous>, transform_indices = @transform_2, window_bounds = array<i64: 8, 1>}, {transform_indices = @transform_3, window_bounds = array<i64: 8, 128>}]} {
    %c0 = arith.constant 0 : index
    %c0_0 = arith.constant 0 : index
    %0 = vector.load %arg1[%c0, %c0_0] : memref<8x36xf32, #tpu.memory_space<vmem>>, vector<8x36xf32>
    %c0_1 = arith.constant 0 : index
    %c0_2 = arith.constant 0 : index
    %1 = vector.load %arg2[%c0_1, %c0_2] : memref<36x128xf32, #tpu.memory_space<vmem>>, vector<36x128xf32>
    %cst = arith.constant dense<0.000000e+00> : vector<8x128xf32>
    %2 = tpu.matmul %0, %1, %cst {dimension_numbers = #tpu.dot_dimension_numbers<[1], [0], [0], [1], [0, 0, 1, 1], [], []>, precision = #tpu.contract_precision<fp32>} : vector<8x36xf32>, vector<36x128xf32>, vector<8x128xf32> -> vector<8x128xf32>
    %c0_3 = arith.constant 0 : index
    %c0_4 = arith.constant 0 : index
    %3 = vector.load %arg3[%c0_3, %c0_4] : memref<8x1xf32, #tpu.memory_space<vmem>>, vector<8x1xf32>
    %4 = vector.broadcast %3 : vector<8x1xf32> to vector<8x128xf32>
    %5 = arith.addf %2, %4 : vector<8x128xf32>
    %cst_5 = arith.constant 0.000000e+00 : f32
    %6 = vector.broadcast %cst_5 : f32 to vector<8x128xf32>
    %7 = arith.maximumf %5, %6 : vector<8x128xf32>
    %c0_6 = arith.constant 0 : index
    %c0_7 = arith.constant 0 : index
    %8 = vector.load %arg4[%c0_6, %c0_7] : memref<8x128xf32, #tpu.memory_space<vmem>>, vector<8x128xf32>
    tpu.vector_store %arg4[%c0_6, %c0_7], %7 {strides = array<i32>} : memref<8x128xf32, #tpu.memory_space<vmem>>, vector<8x128xf32>,
    return
  }
  func.func @transform_0(%arg0: i32) -> (i32, i32) {
    %c0_i32 = arith.constant 0 : i32
    %c0_i32_0 = arith.constant 0 : i32
    %c0_i32_1 = arith.constant 0 : i32
    return %c0_i32, %c0_i32_0 : i32, i32
  }
  func.func @transform_1(%arg0: i32) -> (i32, i32) {
    %c0_i32 = arith.constant 0 : i32
    %c0_i32_0 = arith.constant 0 : i32
    return %c0_i32, %arg0 : i32, i32
  }
  func.func @transform_2(%arg0: i32) -> (i32, i32) {
    %c0_i32 = arith.constant 0 : i32
    %c0_i32_0 = arith.constant 0 : i32
    %c0_i32_1 = arith.constant 0 : i32
    return %c0_i32, %c0_i32_0 : i32, i32
  }
  func.func @transform_3(%arg0: i32) -> (i32, i32) {
    %c0_i32 = arith.constant 0 : i32
    %c0_i32_0 = arith.constant 0 : i32
    return %c0_i32, %arg0 : i32, i32
  }
}

module attributes {stable_mosaic.version = 11 : i64} {
  func.func @_mm_kernel(%arg0: i32, %arg1: memref<16x72xf32, #tpu.memory_space<vmem>>, %arg2: memref<72x32xf32, #tpu.memory_space<vmem>>, %arg3: memref<16x1xf32, #tpu.memory_space<vmem>>, %arg4: memref<16x32xf32, #tpu.memory_space<vmem>>) attributes {dimension_semantics = [#tpu.dimension_semantics<parallel>], iteration_bounds = array<i64: 1>, scalar_prefetch = 0 : i64, scratch_operands = 0 : i64, tpu.core_type = #tpu.core_type<tc>, window_params = [{pipeline_mode = #tpu.pipeline_mode<synchronous>, transform_indices = @transform_0, window_bounds = array<i64: 16, 72>}, {transform_indices = @transform_1, window_bounds = array<i64: 72, 32>}, {pipeline_mode = #tpu.pipeline_mode<synchronous>, transform_indices = @transform_2, window_bounds = array<i64: 16, 1>}, {transform_indices = @transform_3, window_bounds = array<i64: 16, 32>}]} {
    %c0 = arith.constant 0 : index
    %c0_0 = arith.constant 0 : index
    %0 = vector.load %arg1[%c0, %c0_0] : memref<16x72xf32, #tpu.memory_space<vmem>>, vector<16x72xf32>
    %c0_1 = arith.constant 0 : index
    %c0_2 = arith.constant 0 : index
    %1 = vector.load %arg2[%c0_1, %c0_2] : memref<72x32xf32, #tpu.memory_space<vmem>>, vector<72x32xf32>
    %cst = arith.constant dense<0.000000e+00> : vector<16x32xf32>
    %2 = tpu.matmul %0, %1, %cst {dimension_numbers = #tpu.dot_dimension_numbers<[1], [0], [0], [1], [0, 0, 1, 1], [], []>, precision = #tpu.contract_precision<fp32>} : vector<16x72xf32>, vector<72x32xf32>, vector<16x32xf32> -> vector<16x32xf32>
    %c0_3 = arith.constant 0 : index
    %c0_4 = arith.constant 0 : index
    %3 = vector.load %arg3[%c0_3, %c0_4] : memref<16x1xf32, #tpu.memory_space<vmem>>, vector<16x1xf32>
    %4 = vector.broadcast %3 : vector<16x1xf32> to vector<16x32xf32>
    %5 = arith.addf %2, %4 : vector<16x32xf32>
    %cst_5 = arith.constant 0.000000e+00 : f32
    %6 = vector.broadcast %cst_5 : f32 to vector<16x32xf32>
    %7 = arith.maximumf %5, %6 : vector<16x32xf32>
    %c0_6 = arith.constant 0 : index
    %c0_7 = arith.constant 0 : index
    %8 = vector.load %arg4[%c0_6, %c0_7] : memref<16x32xf32, #tpu.memory_space<vmem>>, vector<16x32xf32>
    tpu.vector_store %arg4[%c0_6, %c0_7], %7 {strides = array<i32>} : memref<16x32xf32, #tpu.memory_space<vmem>>, vector<16x32xf32>,
    return
  }
  func.func @transform_0(%arg0: i32) -> (i32, i32) {
    %c0_i32 = arith.constant 0 : i32
    %c0_i32_0 = arith.constant 0 : i32
    %c0_i32_1 = arith.constant 0 : i32
    return %c0_i32, %c0_i32_0 : i32, i32
  }
  func.func @transform_1(%arg0: i32) -> (i32, i32) {
    %c0_i32 = arith.constant 0 : i32
    %c0_i32_0 = arith.constant 0 : i32
    return %c0_i32, %arg0 : i32, i32
  }
  func.func @transform_2(%arg0: i32) -> (i32, i32) {
    %c0_i32 = arith.constant 0 : i32
    %c0_i32_0 = arith.constant 0 : i32
    %c0_i32_1 = arith.constant 0 : i32
    return %c0_i32, %c0_i32_0 : i32, i32
  }
  func.func @transform_3(%arg0: i32) -> (i32, i32) {
    %c0_i32 = arith.constant 0 : i32
    %c0_i32_0 = arith.constant 0 : i32
    return %c0_i32, %arg0 : i32, i32
  }
}

module attributes {stable_mosaic.version = 11 : i64} {
  func.func @_mm_kernel(%arg0: i32, %arg1: memref<32x144xf32, #tpu.memory_space<vmem>>, %arg2: memref<144x8xf32, #tpu.memory_space<vmem>>, %arg3: memref<32x1xf32, #tpu.memory_space<vmem>>, %arg4: memref<32x8xf32, #tpu.memory_space<vmem>>) attributes {dimension_semantics = [#tpu.dimension_semantics<parallel>], iteration_bounds = array<i64: 1>, scalar_prefetch = 0 : i64, scratch_operands = 0 : i64, tpu.core_type = #tpu.core_type<tc>, window_params = [{pipeline_mode = #tpu.pipeline_mode<synchronous>, transform_indices = @transform_0, window_bounds = array<i64: 32, 144>}, {transform_indices = @transform_1, window_bounds = array<i64: 144, 8>}, {pipeline_mode = #tpu.pipeline_mode<synchronous>, transform_indices = @transform_2, window_bounds = array<i64: 32, 1>}, {transform_indices = @transform_3, window_bounds = array<i64: 32, 8>}]} {
    %c0 = arith.constant 0 : index
    %c0_0 = arith.constant 0 : index
    %0 = vector.load %arg1[%c0, %c0_0] : memref<32x144xf32, #tpu.memory_space<vmem>>, vector<32x144xf32>
    %c0_1 = arith.constant 0 : index
    %c0_2 = arith.constant 0 : index
    %1 = vector.load %arg2[%c0_1, %c0_2] : memref<144x8xf32, #tpu.memory_space<vmem>>, vector<144x8xf32>
    %cst = arith.constant dense<0.000000e+00> : vector<32x8xf32>
    %2 = tpu.matmul %0, %1, %cst {dimension_numbers = #tpu.dot_dimension_numbers<[1], [0], [0], [1], [0, 0, 1, 1], [], []>, precision = #tpu.contract_precision<fp32>} : vector<32x144xf32>, vector<144x8xf32>, vector<32x8xf32> -> vector<32x8xf32>
    %c0_3 = arith.constant 0 : index
    %c0_4 = arith.constant 0 : index
    %3 = vector.load %arg3[%c0_3, %c0_4] : memref<32x1xf32, #tpu.memory_space<vmem>>, vector<32x1xf32>
    %4 = vector.broadcast %3 : vector<32x1xf32> to vector<32x8xf32>
    %5 = arith.addf %2, %4 : vector<32x8xf32>
    %cst_5 = arith.constant 0.000000e+00 : f32
    %6 = vector.broadcast %cst_5 : f32 to vector<32x8xf32>
    %7 = arith.maximumf %5, %6 : vector<32x8xf32>
    %c0_6 = arith.constant 0 : index
    %c0_7 = arith.constant 0 : index
    %8 = vector.load %arg4[%c0_6, %c0_7] : memref<32x8xf32, #tpu.memory_space<vmem>>, vector<32x8xf32>
    tpu.vector_store %arg4[%c0_6, %c0_7], %7 {strides = array<i32>} : memref<32x8xf32, #tpu.memory_space<vmem>>, vector<32x8xf32>,
    return
  }
  func.func @transform_0(%arg0: i32) -> (i32, i32) {
    %c0_i32 = arith.constant 0 : i32
    %c0_i32_0 = arith.constant 0 : i32
    %c0_i32_1 = arith.constant 0 : i32
    return %c0_i32, %c0_i32_0 : i32, i32
  }
  func.func @transform_1(%arg0: i32) -> (i32, i32) {
    %c0_i32 = arith.constant 0 : i32
    %c0_i32_0 = arith.constant 0 : i32
    return %c0_i32, %arg0 : i32, i32
  }
  func.func @transform_2(%arg0: i32) -> (i32, i32) {
    %c0_i32 = arith.constant 0 : i32
    %c0_i32_0 = arith.constant 0 : i32
    %c0_i32_1 = arith.constant 0 : i32
    return %c0_i32, %c0_i32_0 : i32, i32
  }
  func.func @transform_3(%arg0: i32) -> (i32, i32) {
    %c0_i32 = arith.constant 0 : i32
    %c0_i32_0 = arith.constant 0 : i32
    return %c0_i32, %arg0 : i32, i32
  }
}

module attributes {stable_mosaic.version = 11 : i64} {
  func.func @_mm_kernel(%arg0: i32, %arg1: memref<16x32xf32, #tpu.memory_space<vmem>>, %arg2: memref<32x8xf32, #tpu.memory_space<vmem>>, %arg3: memref<16x1xf32, #tpu.memory_space<vmem>>, %arg4: memref<16x8xf32, #tpu.memory_space<vmem>>) attributes {dimension_semantics = [#tpu.dimension_semantics<parallel>], iteration_bounds = array<i64: 1>, scalar_prefetch = 0 : i64, scratch_operands = 0 : i64, tpu.core_type = #tpu.core_type<tc>, window_params = [{pipeline_mode = #tpu.pipeline_mode<synchronous>, transform_indices = @transform_0, window_bounds = array<i64: 16, 32>}, {transform_indices = @transform_1, window_bounds = array<i64: 32, 8>}, {pipeline_mode = #tpu.pipeline_mode<synchronous>, transform_indices = @transform_2, window_bounds = array<i64: 16, 1>}, {transform_indices = @transform_3, window_bounds = array<i64: 16, 8>}]} {
    %c0 = arith.constant 0 : index
    %c0_0 = arith.constant 0 : index
    %0 = vector.load %arg1[%c0, %c0_0] : memref<16x32xf32, #tpu.memory_space<vmem>>, vector<16x32xf32>
    %c0_1 = arith.constant 0 : index
    %c0_2 = arith.constant 0 : index
    %1 = vector.load %arg2[%c0_1, %c0_2] : memref<32x8xf32, #tpu.memory_space<vmem>>, vector<32x8xf32>
    %cst = arith.constant dense<0.000000e+00> : vector<16x8xf32>
    %2 = tpu.matmul %0, %1, %cst {dimension_numbers = #tpu.dot_dimension_numbers<[1], [0], [0], [1], [0, 0, 1, 1], [], []>, precision = #tpu.contract_precision<fp32>} : vector<16x32xf32>, vector<32x8xf32>, vector<16x8xf32> -> vector<16x8xf32>
    %c0_3 = arith.constant 0 : index
    %c0_4 = arith.constant 0 : index
    %3 = vector.load %arg3[%c0_3, %c0_4] : memref<16x1xf32, #tpu.memory_space<vmem>>, vector<16x1xf32>
    %4 = vector.broadcast %3 : vector<16x1xf32> to vector<16x8xf32>
    %5 = arith.addf %2, %4 : vector<16x8xf32>
    %c0_5 = arith.constant 0 : index
    %c0_6 = arith.constant 0 : index
    %6 = vector.load %arg4[%c0_5, %c0_6] : memref<16x8xf32, #tpu.memory_space<vmem>>, vector<16x8xf32>
    tpu.vector_store %arg4[%c0_5, %c0_6], %5 {strides = array<i32>} : memref<16x8xf32, #tpu.memory_space<vmem>>, vector<16x8xf32>,
    return
  }
  func.func @transform_0(%arg0: i32) -> (i32, i32) {
    %c0_i32 = arith.constant 0 : i32
    %c0_i32_0 = arith.constant 0 : i32
    %c0_i32_1 = arith.constant 0 : i32
    return %c0_i32, %c0_i32_0 : i32, i32
  }
  func.func @transform_1(%arg0: i32) -> (i32, i32) {
    %c0_i32 = arith.constant 0 : i32
    %c0_i32_0 = arith.constant 0 : i32
    return %c0_i32, %arg0 : i32, i32
  }
  func.func @transform_2(%arg0: i32) -> (i32, i32) {
    %c0_i32 = arith.constant 0 : i32
    %c0_i32_0 = arith.constant 0 : i32
    %c0_i32_1 = arith.constant 0 : i32
    return %c0_i32, %c0_i32_0 : i32, i32
  }
  func.func @transform_3(%arg0: i32) -> (i32, i32) {
    %c0_i32 = arith.constant 0 : i32
    %c0_i32_0 = arith.constant 0 : i32
    return %c0_i32, %arg0 : i32, i32
  }
}

module attributes {stable_mosaic.version = 11 : i64} {
  func.func @_mm_kernel(%arg0: i32, %arg1: memref<16x144xf32, #tpu.memory_space<vmem>>, %arg2: memref<144x8xf32, #tpu.memory_space<vmem>>, %arg3: memref<16x1xf32, #tpu.memory_space<vmem>>, %arg4: memref<16x8xf32, #tpu.memory_space<vmem>>) attributes {dimension_semantics = [#tpu.dimension_semantics<parallel>], iteration_bounds = array<i64: 1>, scalar_prefetch = 0 : i64, scratch_operands = 0 : i64, tpu.core_type = #tpu.core_type<tc>, window_params = [{pipeline_mode = #tpu.pipeline_mode<synchronous>, transform_indices = @transform_0, window_bounds = array<i64: 16, 144>}, {transform_indices = @transform_1, window_bounds = array<i64: 144, 8>}, {pipeline_mode = #tpu.pipeline_mode<synchronous>, transform_indices = @transform_2, window_bounds = array<i64: 16, 1>}, {transform_indices = @transform_3, window_bounds = array<i64: 16, 8>}]} {
    %c0 = arith.constant 0 : index
    %c0_0 = arith.constant 0 : index
    %0 = vector.load %arg1[%c0, %c0_0] : memref<16x144xf32, #tpu.memory_space<vmem>>, vector<16x144xf32>
    %c0_1 = arith.constant 0 : index
    %c0_2 = arith.constant 0 : index
    %1 = vector.load %arg2[%c0_1, %c0_2] : memref<144x8xf32, #tpu.memory_space<vmem>>, vector<144x8xf32>
    %cst = arith.constant dense<0.000000e+00> : vector<16x8xf32>
    %2 = tpu.matmul %0, %1, %cst {dimension_numbers = #tpu.dot_dimension_numbers<[1], [0], [0], [1], [0, 0, 1, 1], [], []>, precision = #tpu.contract_precision<fp32>} : vector<16x144xf32>, vector<144x8xf32>, vector<16x8xf32> -> vector<16x8xf32>
    %c0_3 = arith.constant 0 : index
    %c0_4 = arith.constant 0 : index
    %3 = vector.load %arg3[%c0_3, %c0_4] : memref<16x1xf32, #tpu.memory_space<vmem>>, vector<16x1xf32>
    %4 = vector.broadcast %3 : vector<16x1xf32> to vector<16x8xf32>
    %5 = arith.addf %2, %4 : vector<16x8xf32>
    %c0_5 = arith.constant 0 : index
    %c0_6 = arith.constant 0 : index
    %6 = vector.load %arg4[%c0_5, %c0_6] : memref<16x8xf32, #tpu.memory_space<vmem>>, vector<16x8xf32>
    tpu.vector_store %arg4[%c0_5, %c0_6], %5 {strides = array<i32>} : memref<16x8xf32, #tpu.memory_space<vmem>>, vector<16x8xf32>,
    return
  }
  func.func @transform_0(%arg0: i32) -> (i32, i32) {
    %c0_i32 = arith.constant 0 : i32
    %c0_i32_0 = arith.constant 0 : i32
    %c0_i32_1 = arith.constant 0 : i32
    return %c0_i32, %c0_i32_0 : i32, i32
  }
  func.func @transform_1(%arg0: i32) -> (i32, i32) {
    %c0_i32 = arith.constant 0 : i32
    %c0_i32_0 = arith.constant 0 : i32
    return %c0_i32, %arg0 : i32, i32
  }
  func.func @transform_2(%arg0: i32) -> (i32, i32) {
    %c0_i32 = arith.constant 0 : i32
    %c0_i32_0 = arith.constant 0 : i32
    %c0_i32_1 = arith.constant 0 : i32
    return %c0_i32, %c0_i32_0 : i32, i32
  }
  func.func @transform_3(%arg0: i32) -> (i32, i32) {
    %c0_i32 = arith.constant 0 : i32
    %c0_i32_0 = arith.constant 0 : i32
    return %c0_i32, %arg0 : i32, i32
  }
}

module attributes {stable_mosaic.version = 11 : i64} {
  func.func @_mm_res_kernel(%arg0: i32, %arg1: memref<16x16xf32, #tpu.memory_space<vmem>>, %arg2: memref<16x32xf32, #tpu.memory_space<vmem>>, %arg3: memref<16x1xf32, #tpu.memory_space<vmem>>, %arg4: memref<16x32xf32, #tpu.memory_space<vmem>>, %arg5: memref<16x32xf32, #tpu.memory_space<vmem>>) attributes {dimension_semantics = [#tpu.dimension_semantics<parallel>], iteration_bounds = array<i64: 1>, scalar_prefetch = 0 : i64, scratch_operands = 0 : i64, tpu.core_type = #tpu.core_type<tc>, window_params = [{pipeline_mode = #tpu.pipeline_mode<synchronous>, transform_indices = @transform_0, window_bounds = array<i64: 16, 16>}, {transform_indices = @transform_1, window_bounds = array<i64: 16, 32>}, {pipeline_mode = #tpu.pipeline_mode<synchronous>, transform_indices = @transform_2, window_bounds = array<i64: 16, 1>}, {transform_indices = @transform_3, window_bounds = array<i64: 16, 32>}, {transform_indices = @transform_4, window_bounds = array<i64: 16, 32>}]} {
    %c0 = arith.constant 0 : index
    %c0_0 = arith.constant 0 : index
    %0 = vector.load %arg1[%c0, %c0_0] : memref<16x16xf32, #tpu.memory_space<vmem>>, vector<16x16xf32>
    %c0_1 = arith.constant 0 : index
    %c0_2 = arith.constant 0 : index
    %1 = vector.load %arg2[%c0_1, %c0_2] : memref<16x32xf32, #tpu.memory_space<vmem>>, vector<16x32xf32>
    %cst = arith.constant dense<0.000000e+00> : vector<16x32xf32>
    %2 = tpu.matmul %0, %1, %cst {dimension_numbers = #tpu.dot_dimension_numbers<[1], [0], [0], [1], [0, 0, 1, 1], [], []>, precision = #tpu.contract_precision<fp32>} : vector<16x16xf32>, vector<16x32xf32>, vector<16x32xf32> -> vector<16x32xf32>
    %c0_3 = arith.constant 0 : index
    %c0_4 = arith.constant 0 : index
    %3 = vector.load %arg3[%c0_3, %c0_4] : memref<16x1xf32, #tpu.memory_space<vmem>>, vector<16x1xf32>
    %4 = vector.broadcast %3 : vector<16x1xf32> to vector<16x32xf32>
    %5 = arith.addf %2, %4 : vector<16x32xf32>
    %c0_5 = arith.constant 0 : index
    %c0_6 = arith.constant 0 : index
    %6 = vector.load %arg4[%c0_5, %c0_6] : memref<16x32xf32, #tpu.memory_space<vmem>>, vector<16x32xf32>
    %7 = arith.addf %5, %6 : vector<16x32xf32>
    %c0_7 = arith.constant 0 : index
    %c0_8 = arith.constant 0 : index
    %8 = vector.load %arg5[%c0_7, %c0_8] : memref<16x32xf32, #tpu.memory_space<vmem>>, vector<16x32xf32>
    tpu.vector_store %arg5[%c0_7, %c0_8], %7 {strides = array<i32>} : memref<16x32xf32, #tpu.memory_space<vmem>>, vector<16x32xf32>,
    return
  }
  func.func @transform_0(%arg0: i32) -> (i32, i32) {
    %c0_i32 = arith.constant 0 : i32
    %c0_i32_0 = arith.constant 0 : i32
    %c0_i32_1 = arith.constant 0 : i32
    return %c0_i32, %c0_i32_0 : i32, i32
  }
  func.func @transform_1(%arg0: i32) -> (i32, i32) {
    %c0_i32 = arith.constant 0 : i32
    %c0_i32_0 = arith.constant 0 : i32
    return %c0_i32, %arg0 : i32, i32
  }
  func.func @transform_2(%arg0: i32) -> (i32, i32) {
    %c0_i32 = arith.constant 0 : i32
    %c0_i32_0 = arith.constant 0 : i32
    %c0_i32_1 = arith.constant 0 : i32
    return %c0_i32, %c0_i32_0 : i32, i32
  }
  func.func @transform_3(%arg0: i32) -> (i32, i32) {
    %c0_i32 = arith.constant 0 : i32
    %c0_i32_0 = arith.constant 0 : i32
    return %c0_i32, %arg0 : i32, i32
  }
  func.func @transform_4(%arg0: i32) -> (i32, i32) {
    %c0_i32 = arith.constant 0 : i32
    %c0_i32_0 = arith.constant 0 : i32
    return %c0_i32, %arg0 : i32, i32
  }
}

module attributes {stable_mosaic.version = 11 : i64} {
  func.func @_mm_kernel(%arg0: i32, %arg1: memref<16x144xf32, #tpu.memory_space<vmem>>, %arg2: memref<144x32xf32, #tpu.memory_space<vmem>>, %arg3: memref<16x1xf32, #tpu.memory_space<vmem>>, %arg4: memref<16x32xf32, #tpu.memory_space<vmem>>) attributes {dimension_semantics = [#tpu.dimension_semantics<parallel>], iteration_bounds = array<i64: 1>, scalar_prefetch = 0 : i64, scratch_operands = 0 : i64, tpu.core_type = #tpu.core_type<tc>, window_params = [{pipeline_mode = #tpu.pipeline_mode<synchronous>, transform_indices = @transform_0, window_bounds = array<i64: 16, 144>}, {transform_indices = @transform_1, window_bounds = array<i64: 144, 32>}, {pipeline_mode = #tpu.pipeline_mode<synchronous>, transform_indices = @transform_2, window_bounds = array<i64: 16, 1>}, {transform_indices = @transform_3, window_bounds = array<i64: 16, 32>}]} {
    %c0 = arith.constant 0 : index
    %c0_0 = arith.constant 0 : index
    %0 = vector.load %arg1[%c0, %c0_0] : memref<16x144xf32, #tpu.memory_space<vmem>>, vector<16x144xf32>
    %c0_1 = arith.constant 0 : index
    %c0_2 = arith.constant 0 : index
    %1 = vector.load %arg2[%c0_1, %c0_2] : memref<144x32xf32, #tpu.memory_space<vmem>>, vector<144x32xf32>
    %cst = arith.constant dense<0.000000e+00> : vector<16x32xf32>
    %2 = tpu.matmul %0, %1, %cst {dimension_numbers = #tpu.dot_dimension_numbers<[1], [0], [0], [1], [0, 0, 1, 1], [], []>, precision = #tpu.contract_precision<fp32>} : vector<16x144xf32>, vector<144x32xf32>, vector<16x32xf32> -> vector<16x32xf32>
    %c0_3 = arith.constant 0 : index
    %c0_4 = arith.constant 0 : index
    %3 = vector.load %arg3[%c0_3, %c0_4] : memref<16x1xf32, #tpu.memory_space<vmem>>, vector<16x1xf32>
    %4 = vector.broadcast %3 : vector<16x1xf32> to vector<16x32xf32>
    %5 = arith.addf %2, %4 : vector<16x32xf32>
    %c0_5 = arith.constant 0 : index
    %c0_6 = arith.constant 0 : index
    %6 = vector.load %arg4[%c0_5, %c0_6] : memref<16x32xf32, #tpu.memory_space<vmem>>, vector<16x32xf32>
    tpu.vector_store %arg4[%c0_5, %c0_6], %5 {strides = array<i32>} : memref<16x32xf32, #tpu.memory_space<vmem>>, vector<16x32xf32>,
    return
  }
  func.func @transform_0(%arg0: i32) -> (i32, i32) {
    %c0_i32 = arith.constant 0 : i32
    %c0_i32_0 = arith.constant 0 : i32
    %c0_i32_1 = arith.constant 0 : i32
    return %c0_i32, %c0_i32_0 : i32, i32
  }
  func.func @transform_1(%arg0: i32) -> (i32, i32) {
    %c0_i32 = arith.constant 0 : i32
    %c0_i32_0 = arith.constant 0 : i32
    return %c0_i32, %arg0 : i32, i32
  }
  func.func @transform_2(%arg0: i32) -> (i32, i32) {
    %c0_i32 = arith.constant 0 : i32
    %c0_i32_0 = arith.constant 0 : i32
    %c0_i32_1 = arith.constant 0 : i32
    return %c0_i32, %c0_i32_0 : i32, i32
  }
  func.func @transform_3(%arg0: i32) -> (i32, i32) {
    %c0_i32 = arith.constant 0 : i32
    %c0_i32_0 = arith.constant 0 : i32
    return %c0_i32, %arg0 : i32, i32
  }
}

module attributes {stable_mosaic.version = 11 : i64} {
  func.func @_mm_res_kernel(%arg0: i32, %arg1: memref<16x8xf32, #tpu.memory_space<vmem>>, %arg2: memref<8x128xf32, #tpu.memory_space<vmem>>, %arg3: memref<16x1xf32, #tpu.memory_space<vmem>>, %arg4: memref<16x128xf32, #tpu.memory_space<vmem>>, %arg5: memref<16x128xf32, #tpu.memory_space<vmem>>) attributes {dimension_semantics = [#tpu.dimension_semantics<parallel>], iteration_bounds = array<i64: 1>, scalar_prefetch = 0 : i64, scratch_operands = 0 : i64, tpu.core_type = #tpu.core_type<tc>, window_params = [{pipeline_mode = #tpu.pipeline_mode<synchronous>, transform_indices = @transform_0, window_bounds = array<i64: 16, 8>}, {transform_indices = @transform_1, window_bounds = array<i64: 8, 128>}, {pipeline_mode = #tpu.pipeline_mode<synchronous>, transform_indices = @transform_2, window_bounds = array<i64: 16, 1>}, {transform_indices = @transform_3, window_bounds = array<i64: 16, 128>}, {transform_indices = @transform_4, window_bounds = array<i64: 16, 128>}]} {
    %c0 = arith.constant 0 : index
    %c0_0 = arith.constant 0 : index
    %0 = vector.load %arg1[%c0, %c0_0] : memref<16x8xf32, #tpu.memory_space<vmem>>, vector<16x8xf32>
    %c0_1 = arith.constant 0 : index
    %c0_2 = arith.constant 0 : index
    %1 = vector.load %arg2[%c0_1, %c0_2] : memref<8x128xf32, #tpu.memory_space<vmem>>, vector<8x128xf32>
    %cst = arith.constant dense<0.000000e+00> : vector<16x128xf32>
    %2 = tpu.matmul %0, %1, %cst {dimension_numbers = #tpu.dot_dimension_numbers<[1], [0], [0], [1], [0, 0, 1, 1], [], []>, precision = #tpu.contract_precision<fp32>} : vector<16x8xf32>, vector<8x128xf32>, vector<16x128xf32> -> vector<16x128xf32>
    %c0_3 = arith.constant 0 : index
    %c0_4 = arith.constant 0 : index
    %3 = vector.load %arg3[%c0_3, %c0_4] : memref<16x1xf32, #tpu.memory_space<vmem>>, vector<16x1xf32>
    %4 = vector.broadcast %3 : vector<16x1xf32> to vector<16x128xf32>
    %5 = arith.addf %2, %4 : vector<16x128xf32>
    %c0_5 = arith.constant 0 : index
    %c0_6 = arith.constant 0 : index
    %6 = vector.load %arg4[%c0_5, %c0_6] : memref<16x128xf32, #tpu.memory_space<vmem>>, vector<16x128xf32>
    %7 = arith.addf %5, %6 : vector<16x128xf32>
    %c0_7 = arith.constant 0 : index
    %c0_8 = arith.constant 0 : index
    %8 = vector.load %arg5[%c0_7, %c0_8] : memref<16x128xf32, #tpu.memory_space<vmem>>, vector<16x128xf32>
    tpu.vector_store %arg5[%c0_7, %c0_8], %7 {strides = array<i32>} : memref<16x128xf32, #tpu.memory_space<vmem>>, vector<16x128xf32>,
    return
  }
  func.func @transform_0(%arg0: i32) -> (i32, i32) {
    %c0_i32 = arith.constant 0 : i32
    %c0_i32_0 = arith.constant 0 : i32
    %c0_i32_1 = arith.constant 0 : i32
    return %c0_i32, %c0_i32_0 : i32, i32
  }
  func.func @transform_1(%arg0: i32) -> (i32, i32) {
    %c0_i32 = arith.constant 0 : i32
    %c0_i32_0 = arith.constant 0 : i32
    return %c0_i32, %arg0 : i32, i32
  }
  func.func @transform_2(%arg0: i32) -> (i32, i32) {
    %c0_i32 = arith.constant 0 : i32
    %c0_i32_0 = arith.constant 0 : i32
    %c0_i32_1 = arith.constant 0 : i32
    return %c0_i32, %c0_i32_0 : i32, i32
  }
  func.func @transform_3(%arg0: i32) -> (i32, i32) {
    %c0_i32 = arith.constant 0 : i32
    %c0_i32_0 = arith.constant 0 : i32
    return %c0_i32, %arg0 : i32, i32
  }
  func.func @transform_4(%arg0: i32) -> (i32, i32) {
    %c0_i32 = arith.constant 0 : i32
    %c0_i32_0 = arith.constant 0 : i32
    return %c0_i32, %arg0 : i32, i32
  }
}

module attributes {stable_mosaic.version = 11 : i64} {
  func.func @_mm_kernel(%arg0: i32, %arg1: memref<16x144xf32, #tpu.memory_space<vmem>>, %arg2: memref<144x128xf32, #tpu.memory_space<vmem>>, %arg3: memref<16x1xf32, #tpu.memory_space<vmem>>, %arg4: memref<16x128xf32, #tpu.memory_space<vmem>>) attributes {dimension_semantics = [#tpu.dimension_semantics<parallel>], iteration_bounds = array<i64: 1>, scalar_prefetch = 0 : i64, scratch_operands = 0 : i64, tpu.core_type = #tpu.core_type<tc>, window_params = [{pipeline_mode = #tpu.pipeline_mode<synchronous>, transform_indices = @transform_0, window_bounds = array<i64: 16, 144>}, {transform_indices = @transform_1, window_bounds = array<i64: 144, 128>}, {pipeline_mode = #tpu.pipeline_mode<synchronous>, transform_indices = @transform_2, window_bounds = array<i64: 16, 1>}, {transform_indices = @transform_3, window_bounds = array<i64: 16, 128>}]} {
    %c0 = arith.constant 0 : index
    %c0_0 = arith.constant 0 : index
    %0 = vector.load %arg1[%c0, %c0_0] : memref<16x144xf32, #tpu.memory_space<vmem>>, vector<16x144xf32>
    %c0_1 = arith.constant 0 : index
    %c0_2 = arith.constant 0 : index
    %1 = vector.load %arg2[%c0_1, %c0_2] : memref<144x128xf32, #tpu.memory_space<vmem>>, vector<144x128xf32>
    %cst = arith.constant dense<0.000000e+00> : vector<16x128xf32>
    %2 = tpu.matmul %0, %1, %cst {dimension_numbers = #tpu.dot_dimension_numbers<[1], [0], [0], [1], [0, 0, 1, 1], [], []>, precision = #tpu.contract_precision<fp32>} : vector<16x144xf32>, vector<144x128xf32>, vector<16x128xf32> -> vector<16x128xf32>
    %c0_3 = arith.constant 0 : index
    %c0_4 = arith.constant 0 : index
    %3 = vector.load %arg3[%c0_3, %c0_4] : memref<16x1xf32, #tpu.memory_space<vmem>>, vector<16x1xf32>
    %4 = vector.broadcast %3 : vector<16x1xf32> to vector<16x128xf32>
    %5 = arith.addf %2, %4 : vector<16x128xf32>
    %c0_5 = arith.constant 0 : index
    %c0_6 = arith.constant 0 : index
    %6 = vector.load %arg4[%c0_5, %c0_6] : memref<16x128xf32, #tpu.memory_space<vmem>>, vector<16x128xf32>
    tpu.vector_store %arg4[%c0_5, %c0_6], %5 {strides = array<i32>} : memref<16x128xf32, #tpu.memory_space<vmem>>, vector<16x128xf32>,
    return
  }
  func.func @transform_0(%arg0: i32) -> (i32, i32) {
    %c0_i32 = arith.constant 0 : i32
    %c0_i32_0 = arith.constant 0 : i32
    %c0_i32_1 = arith.constant 0 : i32
    return %c0_i32, %c0_i32_0 : i32, i32
  }
  func.func @transform_1(%arg0: i32) -> (i32, i32) {
    %c0_i32 = arith.constant 0 : i32
    %c0_i32_0 = arith.constant 0 : i32
    return %c0_i32, %arg0 : i32, i32
  }
  func.func @transform_2(%arg0: i32) -> (i32, i32) {
    %c0_i32 = arith.constant 0 : i32
    %c0_i32_0 = arith.constant 0 : i32
    %c0_i32_1 = arith.constant 0 : i32
    return %c0_i32, %c0_i32_0 : i32, i32
  }
  func.func @transform_3(%arg0: i32) -> (i32, i32) {
    %c0_i32 = arith.constant 0 : i32
    %c0_i32_0 = arith.constant 0 : i32
    return %c0_i32, %arg0 : i32, i32
  }
}

</mosaic_0001>

<bundles_post_ra>
// kernel: backbone_with_fpn_forward.9
= control target key start
LH: loop header
LB: loop body
LE: loop exit
PB: predicated region body
PF: predicated region fallthrough
CT: control target
= control target key end

     0   :  { %vm30_vm0 = vcmask 1043456   ;;  %vm26_vm1 = vcmask 293888   ;;  %v240_v3 = vmov 0   ;;  %s298_s1 = inlined_call_operand.vmem [shape: f32[36,128], index: 1, kind: input, shape index: {}]   ;;  %s299_s0 = inlined_call_operand.vmem [shape: f32[8,36], index: 0, kind: input, shape index: {}]   ;;  %s300_s2 = inlined_call_operand.vmem [shape: f32[8,1], index: 2, kind: input, shape index: {}]   ;;  %s301_s3 = inlined_call_operand.vmem [shape: f32[8,128], index: 3, kind: output, shape index: {}]  }
   0x1   :  { %v19_v0 = vld [vmem:[%s298_s1 + $0x20] sm:$0xf]  ;;  %v18_v1 = vld [vmem:[%s298_s1 + $0x18] sm:$0xff]  ;;  %v17_v2 = vld [vmem:[%s298_s1 + $0x10] sm:$0xff]  ;;  %239 = vset.pattern.permute.xlu0 %v240_v3 }
   0x2   :  { %v32_v4 = vsel %vm30_vm0, %v19_v0, 0  ;;  %v270_v5 = vand.u32 4294901760, %v18_v1  ;;  %v272_v6 = vand.u32 4294901760, %v17_v2  ;;  %v16_v7 = vld [vmem:[%s298_s1 + $0x8] sm:$0xff]  ;;  %v15_v8 = vld [vmem:[%s298_s1] sm:$0xff] }
   0x3   :  { %v14_v9 = vld [vmem:[%s299_s0] sm:$0xff]  ;;  %v45_v10 = vand.u32 4294901760, %v32_v4  ;;  %v51_v11 = vand.u32 4294901760, %v16_v7  ;;  %v53_v12 = vand.u32 4294901760, %v15_v8 }
   0x4   :  { %v28_v13 = vsel %vm26_vm1, %v14_v9, 0  ;;  %v20_v14 = vld [vmem:[%s300_s2] sm:$0xff]  ;;  %v82_v15 = vsub.f32 %v18_v1, %v270_v5  ;;  %v88_v16 = vsub.f32 %v17_v2, %v272_v6 }
   0x5   :  { %v55_v17 = vand.u32 4294901760, %v28_v13  ;;  %23 = vperm.xlu0 %239, %v20_v14   ;;  %v76_v18 = vsub.f32 %v32_v4, %v45_v10  ;;  %46 = vmatpush.msra.mxu0 %v45_v10  ;;  %v94_v19 = vsub.f32 %v16_v7, %v51_v11  ;;  %v100_v20 = vsub.f32 %v15_v8, %v53_v12 }
   0x6   :  { %154 = vmatpush.msra.mxu3 %v45_v10  ;;  %v83_v21 = vand.u32 4294901760, %v82_v15  ;;  %v89_v22 = vand.u32 4294901760, %v88_v16 }
   0x7   :  { %v56_v23 = vsub.f32 %v28_v13, %v55_v17  ;;  %123 = vmatpush.msra.mxu2 %v76_v18  ;;  %48 = vmatpush.msra.mxu0 %v270_v5  ;;  %v77_v24 = vand.u32 4294901760, %v76_v18  ;;  %v95_v25 = vand.u32 4294901760, %v94_v19  ;;  %v101_v30 = vand.u32 4294901760, %v100_v20 }
   0x8   :  { %156 = vmatpush.msra.mxu3 %v270_v5  ;;  %v84_v26 = vsub.f32 %v82_v15, %v83_v21  ;;  %v90_v29 = vsub.f32 %v88_v16, %v89_v22 }
   0x9   :  { %v57_v27 = vand.u32 4294901760, %v56_v23  ;;  %126 = vmatpush.msra.mxu2 %v82_v15  ;;  %v78_v28 = vsub.f32 %v76_v18, %v77_v24  ;;  %50 = vmatpush.msra.mxu0 %v272_v6  ;;  %v96_v34 = vsub.f32 %v94_v19, %v95_v25  ;;  %v102_v37 = vsub.f32 %v100_v20, %v101_v30 }
   0xa   :  { %158 = vmatpush.msra.mxu3 %v272_v6  ;;  %v85_v33 = vand.u32 4294901760, %v84_v26  ;;  %v91_v35 = vand.u32 4294901760, %v90_v29 }
   0xb   :  { %v58_v31 = vsub.f32 %v56_v23, %v57_v27  ;;  %v79_v32 = vand.u32 4294901760, %v78_v28  ;;  %129 = vmatpush.msra.mxu2 %v88_v16  ;;  %52 = vmatpush.msra.mxu0 %v51_v11  ;;  %v97_v38 = vand.u32 4294901760, %v96_v34  ;;  %v103_v39 = vand.u32 4294901760, %v102_v37 }
   0xc   :  { %160 = vmatpush.msra.mxu3 %v51_v11 }
   0xd   :  { %80 = vmatpush.msra.mxu1 %v79_v32  ;;  %132 = vmatpush.msra.mxu2 %v94_v19  ;;  %v59_v36 = vand.u32 4294901760, %v58_v31 }
   0xe   :  { %54 = vmatpush.msra.mxu0 %v53_v12  ;;  %162 = vmatpush.msra.mxu3 %v53_v12 }
   0xf   :  { %86 = vmatpush.msra.mxu1 %v85_v33  ;;  %135 = vmatpush.msra.mxu2 %v100_v20 }
  0x10   :  { %138 = vmatmul.f32.vlgmr.msra.gmra.mxu2 %v56_v23  ;;  %184 = vmatpush.msrb.mxu0 %v77_v24 }
  0x11   :  { %92 = vmatpush.msra.mxu1 %v91_v35  ;;  %60 = vmatmul.f32.vlgmr.msra.gmra.mxu0 %v59_v36 }
  0x12   :  { %166 = vmatmul.f32.vlgmr.msra.gmra.mxu3 %v57_v27  ;;  %188 = vmatpush.msrb.mxu0 %v83_v21 }
  0x13   :  { %98 = vmatpush.msra.mxu1 %v97_v38 }
  0x14   :  { %192 = vmatpush.msrb.mxu0 %v89_v22 }
  0x15   :  { %104 = vmatpush.msra.mxu1 %v103_v39 }
  0x16   :  { %196 = vmatpush.msrb.mxu0 %v95_v25  ;;  %106 = vmatmul.f32.vlgmr.msra.gmra.mxu1 %v55_v17 }
  0x17   :  { %218 = vmatpush.msrb.mxu1 %v45_v10 }
  0x18   :  { %200 = vmatpush.msrb.mxu0 %v101_v30 }
  0x19   :  { %220 = vmatpush.msrb.mxu1 %v270_v5  ;;  %202 = vmatmul.f32.vlgmr.msrb.gmra.mxu0 %v55_v17 }
  0x1b   :  { %222 = vmatpush.msrb.mxu1 %v272_v6 }
  0x1d   :  { %224 = vmatpush.msrb.mxu1 %v51_v11 }
  0x1f   :  { %226 = vmatpush.msrb.mxu1 %v53_v12 }
  0x20   :  { %228 = vmatmul.f32.vlgmr.msrb.gmra.mxu1 %v55_v17 }
  0x77   :  { %v24_v40 = vpop.permute.xlu0 %23 }
  0x8e   :  { %v61_v41 = vpop.f32.mrf.mxu0 }
  0x8f   :  { %v62_v42 = vadd.f32 %v61_v41, %v24_v40 }
  0x93   :  { %v107_v43 = vpop.f32.mrf.mxu1  ;;  %v139_v44 = vpop.f32.mrf.mxu2 }
  0x94   :  { %v108_v45 = vadd.f32 %v107_v43, %v62_v42 }
  0x95   :  { %v167_v46 = vpop.f32.mrf.mxu3 }
  0x96   :  { %v140_v47 = vadd.f32 %v139_v44, %v108_v45  ;;  %v203_v48 = vpop.f32.mrf.mxu0 }
  0x98   :  { %v168_v49 = vadd.f32 %v167_v46, %v140_v47 }
  0x9a   :  { %v204_v50 = vadd.f32 %v203_v48, %v168_v49 }
  0x9d   :  { %v229_v51 = vpop.f32.mrf.mxu1 }
  0x9e   :  { %v230_v52 = vadd.f32 %v229_v51, %v204_v50 }
  0xa0   :  { %v232_v53 = vmax.f32 %v230_v52, 0.0 }
  0xa2   :  { %233 = vst [vmem:[%s301_s3] sm:$0xff] %v232_v53 }

// kernel: backbone_with_fpn_forward.10
= control target key start
LH: loop header
LB: loop body
LE: loop exit
PB: predicated region body
PF: predicated region fallthrough
CT: control target
= control target key end

     0   :  { %vm37_vm0 = vcmask 588800   ;;  %vm327_vm1 = vcmask 261120   ;;  %s542_s1 = inlined_call_operand.vmem [shape: f32[72,32], index: 1, kind: input, shape index: {}]   ;;  %s543_s0 = inlined_call_operand.vmem [shape: f32[16,72], index: 0, kind: input, shape index: {}]   ;;  %s544_s2 = inlined_call_operand.vmem [shape: f32[16,1], index: 2, kind: input, shape index: {}]   ;;  %s545_s3 = inlined_call_operand.vmem [shape: f32[16,32], index: 3, kind: output, shape index: {}]  }
   0x1   :  { %v24_v0 = vld [vmem:[%s542_s1 + $0x40] sm:$0xff]  ;;  %v23_v1 = vld [vmem:[%s542_s1 + $0x38] sm:$0xff]  ;;  %v22_v2 = vld [vmem:[%s542_s1 + $0x30] sm:$0xff] }
   0x2   :  { %v384_v3 = vand.u32 4294901760, %v24_v0  ;;  %v386_v4 = vand.u32 4294901760, %v23_v1  ;;  %v388_v5 = vand.u32 4294901760, %v22_v2  ;;  %v21_v6 = vld [vmem:[%s542_s1 + $0x28] sm:$0xff]  ;;  %v20_v7 = vld [vmem:[%s542_s1 + $0x20] sm:$0xff]  ;;  %v19_v8 = vld [vmem:[%s542_s1 + $0x18] sm:$0xff] }
   0x3   :  { %v399_v9 = vand.u32 4294901760, %v21_v6  ;;  %v401_v10 = vand.u32 4294901760, %v20_v7  ;;  %v403_v11 = vand.u32 4294901760, %v19_v8  ;;  %v18_v12 = vld [vmem:[%s542_s1 + $0x10] sm:$0xff]  ;;  %v17_v17 = vld [vmem:[%s542_s1 + $0x8] sm:$0xff]  ;;  %v14_v20 = vld [vmem:[%s543_s0] sm:$0xff] }
   0x4   :  { %52 = vmatpush.msra.mxu0 %v384_v3  ;;  %v94_v13 = vsub.f32 %v24_v0, %v384_v3  ;;  %v100_v14 = vsub.f32 %v23_v1, %v386_v4  ;;  %209 = vmatpush.msra.mxu3 %v384_v3  ;;  %v106_v15 = vsub.f32 %v22_v2, %v388_v5  ;;  %v413_v16 = vand.u32 4294901760, %v18_v12  ;;  %v16_v25 = vld [vmem:[%s542_s1] sm:$0xff]  ;;  %v15_v36 = vld [vmem:[%s543_s0 + $0x8] sm:$0xff] }
   0x5   :  { %v112_v18 = vsub.f32 %v21_v6, %v399_v9  ;;  %v118_v19 = vsub.f32 %v20_v7, %v401_v10  ;;  %v124_v24 = vsub.f32 %v19_v8, %v403_v11  ;;  %v435_v26 = vand.u32 4294901760, %v17_v17  ;;  %v25_v7 = vld [vmem:[%s544_s2] sm:$0xff] }
   0x6   :  { %54 = vmatpush.msra.mxu0 %v386_v4  ;;  %165 = vmatpush.msra.mxu2 %v94_v13  ;;  %v424_v21 = vand.u32 4294901760, %v94_v13  ;;  %v426_v22 = vand.u32 4294901760, %v100_v14  ;;  %v428_v23 = vand.u32 4294901760, %v106_v15  ;;  %v130_v28 = vsub.f32 %v18_v12, %v413_v16 }
   0x7   :  { %211 = vmatpush.msra.mxu3 %v386_v4  ;;  %v437_v27 = vand.u32 4294901760, %v112_v18  ;;  %v440_v29 = vand.u32 4294901760, %v118_v19  ;;  %v39_v33 = vsel %vm37_vm0, %v14_v20, 0  ;;  %v448_v34 = vand.u32 4294901760, %v16_v25 }
   0x8   :  { %56 = vmatpush.msra.mxu0 %v388_v5  ;;  %168 = vmatpush.msra.mxu2 %v100_v14  ;;  %v96_v30 = vsub.f32 %v94_v13, %v424_v21  ;;  %v102_v31 = vsub.f32 %v100_v14, %v426_v22  ;;  %v108_v32 = vsub.f32 %v106_v15, %v428_v23  ;;  %v450_v35 = vand.u32 4294901760, %v39_v33 }
   0x9   :  { %213 = vmatpush.msra.mxu3 %v388_v5  ;;  %v114_v39 = vsub.f32 %v112_v18, %v437_v27  ;;  %v457_v40 = vand.u32 4294901760, %v124_v24  ;;  %v136_v41 = vsub.f32 %v17_v17, %v435_v26  ;;  %v120_v44 = vsub.f32 %v118_v19, %v440_v29 }
   0xa   :  { %58 = vmatpush.msra.mxu0 %v399_v9  ;;  %171 = vmatpush.msra.mxu2 %v106_v15  ;;  %v97_v37 = vand.u32 4294901760, %v96_v30  ;;  %v103_v38 = vand.u32 4294901760, %v102_v31  ;;  %v70_v42 = vsub.f32 %v39_v33, %v450_v35  ;;  %v109_v43 = vand.u32 4294901760, %v108_v32 }
   0xb   :  { %215 = vmatpush.msra.mxu3 %v399_v9  ;;  %v464_v45 = vand.u32 4294901760, %v130_v28  ;;  %v42_v46 = vsel %vm37_vm0, %v15_v36, 0  ;;  %v115_v49 = vand.u32 4294901760, %v114_v39  ;;  %v126_v50 = vsub.f32 %v124_v24, %v457_v40 }
   0xc   :  { %60 = vmatpush.msra.mxu0 %v401_v10  ;;  %98 = vmatpush.msra.mxu1 %v97_v37  ;;  %v71_v47 = vand.u32 4294901760, %v70_v42  ;;  %v468_v48 = vand.u32 4294901760, %v42_v46  ;;  %v142_v51 = vsub.f32 %v16_v25, %v448_v34  ;;  %v474_v53 = vand.u32 4294901760, %v136_v41 }
   0xd   :  { %174 = vmatpush.msra.mxu2 %v112_v18  ;;  %217 = vmatpush.msra.mxu3 %v401_v10  ;;  %v121_v54 = vand.u32 4294901760, %v120_v44  ;;  %v132_v55 = vsub.f32 %v130_v28, %v464_v45  ;;  %v127_v58 = vand.u32 4294901760, %v126_v50  ;;  %v354_v8 = vmov 0  }
   0xe   :  { %62 = vmatpush.msra.mxu0 %v403_v11  ;;  %104 = vmatpush.msra.mxu1 %v103_v38  ;;  %v72_v52 = vsub.f32 %v70_v42, %v71_v47  ;;  %v78_v56 = vsub.f32 %v42_v46, %v468_v48  ;;  %v481_v59 = vand.u32 4294901760, %v142_v51  ;;  %v138_v60 = vsub.f32 %v136_v41, %v474_v53 }
   0xf   :  { %177 = vmatpush.msra.mxu2 %v118_v19  ;;  %219 = vmatpush.msra.mxu3 %v403_v11  ;;  %v133_v61 = vand.u32 4294901760, %v132_v55 }
  0x10   :  { %64 = vmatpush.msra.mxu0 %v413_v16  ;;  %110 = vmatpush.msra.mxu1 %v109_v43  ;;  %v73_v57 = vand.u32 4294901760, %v72_v52  ;;  %v79_v62 = vand.u32 4294901760, %v78_v56  ;;  %v144_v63 = vsub.f32 %v142_v51, %v481_v59  ;;  %v139_v0 = vand.u32 4294901760, %v138_v60 }
  0x11   :  { %180 = vmatpush.msra.mxu2 %v124_v24  ;;  %221 = vmatpush.msra.mxu3 %v413_v16 }
  0x12   :  { %66 = vmatpush.msra.mxu0 %v435_v26  ;;  %116 = vmatpush.msra.mxu1 %v115_v49  ;;  %v80_v1 = vsub.f32 %v78_v56, %v79_v62  ;;  %v145_v2 = vand.u32 4294901760, %v144_v63 }
  0x13   :  { %183 = vmatpush.msra.mxu2 %v130_v28  ;;  %223 = vmatpush.msra.mxu3 %v435_v26 }
  0x14   :  { %68 = vmatpush.msra.mxu0 %v448_v34  ;;  %122 = vmatpush.msra.mxu1 %v121_v54  ;;  %v81_v6 = vand.u32 4294901760, %v80_v1 }
  0x15   :  { %186 = vmatpush.msra.mxu2 %v136_v41  ;;  %74 = vmatmul.f32.vlgmr.msra.gmra.mxu0 %v73_v57 }
  0x16   :  { %249 = vmatpush.msrb.mxu0 %v424_v21  ;;  %128 = vmatpush.msra.mxu1 %v127_v58 }
  0x17   :  { %189 = vmatpush.msra.mxu2 %v142_v51  ;;  %225 = vmatpush.msra.mxu3 %v448_v34 }
  0x18   :  { %253 = vmatpush.msrb.mxu0 %v426_v22  ;;  %134 = vmatpush.msra.mxu1 %v133_v61 }
  0x19   :  { %334 = vmatpush.msrb.mxu2 %v424_v21  ;;  %343 = vmatpush.msrb.mxu3 %v384_v3 }
  0x1a   :  { %192 = vmatmul.f32.vlgmr.msra.gmra.mxu2 %v70_v42  ;;  %257 = vmatpush.msrb.mxu0 %v428_v23 }
  0x1b   :  { %335 = vmatpush.msrb.mxu2 %v426_v22  ;;  %140 = vmatpush.msra.mxu1 %v139_v0 }
  0x1c   :  { %229 = vmatmul.f32.vlgmr.msra.gmra.mxu3 %v71_v47  ;;  %261 = vmatpush.msrb.mxu0 %v437_v27 }
  0x1d   :  { %336 = vmatpush.msrb.mxu2 %v428_v23  ;;  %344 = vmatpush.msrb.mxu3 %v386_v4 }
  0x1e   :  { %146 = vmatpush.msra.mxu1 %v145_v2  ;;  %265 = vmatpush.msrb.mxu0 %v440_v29 }
  0x1f   :  { %337 = vmatpush.msrb.mxu2 %v437_v27  ;;  %148 = vmatmul.f32.vlgmr.msra.gmra.mxu1 %v450_v35 }
  0x20   :  { %299 = vmatpush.msrb.mxu1 %v384_v3  ;;  %345 = vmatpush.msrb.mxu3 %v388_v5  ;;  %v26_v3 = vld [vmem:[%s544_s2 + $0x8] sm:$0xff] }
  0x21   :  { %82 = vmatmul.f32.gmra.mxu0 %v81_v6  ;;  %338 = vmatpush.msrb.mxu2 %v440_v29 }
  0x22   :  { %269 = vmatpush.msrb.mxu0 %v457_v40  ;;  %301 = vmatpush.msrb.mxu1 %v386_v4 }
  0x23   :  { %346 = vmatpush.msrb.mxu3 %v399_v9  ;;  %353 = vset.pattern.permute.xlu0 %v354_v8 }
  0x24   :  { %197 = vmatmul.f32.gmra.mxu2 %v78_v56  ;;  %29 = vperm.xlu0 %353, %v25_v7  }
  0x25   :  { %339 = vmatpush.msrb.mxu2 %v457_v40  ;;  %273 = vmatpush.msrb.mxu0 %v464_v45 }
  0x26   :  { %303 = vmatpush.msrb.mxu1 %v388_v5  ;;  %347 = vmatpush.msrb.mxu3 %v401_v10 }
  0x27   :  { %235 = vmatmul.f32.gmra.mxu3 %v79_v62  ;;  %340 = vmatpush.msrb.mxu2 %v464_v45 }
  0x28   :  { %277 = vmatpush.msrb.mxu0 %v474_v53  ;;  %305 = vmatpush.msrb.mxu1 %v399_v9 }
  0x29   :  { %348 = vmatpush.msrb.mxu3 %v403_v11  ;;  %152 = vmatmul.f32.gmra.mxu1 %v468_v48 }
  0x2a   :  { %341 = vmatpush.msrb.mxu2 %v474_v53  ;;  %281 = vmatpush.msrb.mxu0 %v481_v59 }
  0x2b   :  { %307 = vmatpush.msrb.mxu1 %v401_v10  ;;  %349 = vmatpush.msrb.mxu3 %v413_v16 }
  0x2c   :  { %283 = vmatmul.f32.vlgmr.msrb.gmra.mxu0 %v450_v35  ;;  %342 = vmatpush.msrb.mxu2 %v481_v59 }
  0x2d   :  { %309 = vmatpush.msrb.mxu1 %v403_v11  ;;  %350 = vmatpush.msrb.mxu3 %v435_v26 }
  0x2e   :  { %287 = vmatmul.f32.vlgmr.msrb.gmra.mxu2 %v468_v48  ;;  %34 = vperm.xlu0 %353, %v26_v3  }
  0x2f   :  { %311 = vmatpush.msrb.mxu1 %v413_v16  ;;  %351 = vmatpush.msrb.mxu3 %v448_v34 }
  0x30   :  { %321 = vmatmul.f32.vlgmr.msrb.gmra.mxu3 %v468_v48 }
  0x31   :  { %313 = vmatpush.msrb.mxu1 %v435_v26 }
  0x33   :  { %315 = vmatpush.msrb.mxu1 %v448_v34 }
  0x34   :  { %317 = vmatmul.f32.vlgmr.msrb.gmra.mxu1 %v450_v35 }
  0x92   :  { %v75_v5 = vpop.f32.mrf.mxu0 }
  0x96   :  { %v30_v4 = vpop.permute.xlu0 %29 }
  0x97   :  { %v76_v12 = vadd.f32 %v75_v5, %v30_v4 }
  0x9c   :  { %v149_v9 = vpop.f32.mrf.mxu1 }
  0x9d   :  { %v193_v10 = vpop.f32.mrf.mxu2  ;;  %v150_v15 = vadd.f32 %v149_v9, %v76_v12 }
  0x9e   :  { %v83_v14 = vpop.f32.mrf.mxu0 }
  0x9f   :  { %v230_v11 = vpop.f32.mrf.mxu3  ;;  %v194_v20 = vadd.f32 %v193_v10, %v150_v15 }
  0xa0   :  { %v35_v13 = vpop.permute.xlu0 %34 }
  0xa1   :  { %v84_v16 = vadd.f32 %v83_v14, %v35_v13  ;;  %v231_v24 = vadd.f32 %v230_v11, %v194_v20 }
  0xa6   :  { %v153_v17 = vpop.f32.mrf.mxu1 }
  0xa7   :  { %v198_v18 = vpop.f32.mrf.mxu2  ;;  %v154_v19 = vadd.f32 %v153_v17, %v84_v16 }
  0xa9   :  { %v199_v22 = vadd.f32 %v198_v18, %v154_v19  ;;  %v284_v23 = vpop.f32.mrf.mxu0 }
  0xaa   :  { %v236_v21 = vpop.f32.mrf.mxu3  ;;  %v285_v25 = vadd.f32 %v284_v23, %v231_v24 }
  0xab   :  { %v237_v26 = vadd.f32 %v236_v21, %v199_v22 }
  0xb1   :  { %v288_v27 = vpop.f32.mrf.mxu2  ;;  %v318_v28 = vpop.f32.mrf.mxu1 }
  0xb2   :  { %v289_v29 = vadd.f32 %v288_v27, %v237_v26  ;;  %v319_v30 = vadd.f32 %v318_v28, %v285_v25 }
  0xb3   :  { %v322_v31 = vpop.f32.mrf.mxu3 }
  0xb4   :  { %v325_v32 = vmax.f32 %v319_v30, 0.0  ;;  %v323_v33 = vadd.f32 %v322_v31, %v289_v29 }
  0xb6   :  { %328 = vst.msk [vmem:[%s545_s3] sm:$0xff] %vm327_vm1, %v325_v32  ;;  %v326_v34 = vmax.f32 %v323_v33, 0.0 }
  0xb8   :  { %329 = vst.msk [vmem:[%s545_s3 + $0x8] sm:$0xff] %vm327_vm1, %v326_v34 }

// kernel: backbone_with_fpn_forward.12
= control target key start
LH: loop header
LB: loop body
LE: loop exit
PB: predicated region body
PF: predicated region fallthrough
CT: control target
= control target key end

     0   :  { %vm32_vm0 = vcmask 261120   ;;  %v272_v3 = vmov 0   ;;  %vm255_vm1 = vcmask 64512   ;;  %s357_s1 = inlined_call_operand.vmem [shape: f32[32,8], index: 1, kind: input, shape index: {}]   ;;  %s358_s0 = inlined_call_operand.vmem [shape: f32[16,32], index: 0, kind: input, shape index: {}]   ;;  %s359_s2 = inlined_call_operand.vmem [shape: f32[16,1], index: 2, kind: input, shape index: {}]   ;;  %s360_s3 = inlined_call_operand.vmem [shape: f32[16,8], index: 3, kind: output, shape index: {}]  }
   0x1   :  { %v19_v0 = vld [vmem:[%s357_s1 + $0x18] sm:$0xff]  ;;  %v18_v1 = vld [vmem:[%s357_s1 + $0x10] sm:$0xff]  ;;  %v17_v2 = vld [vmem:[%s357_s1 + $0x8] sm:$0xff]  ;;  %271 = vset.pattern.permute.xlu0 %v272_v3 }
   0x2   :  { %v302_v4 = vand.u32 4294901760, %v19_v0  ;;  %v304_v5 = vand.u32 4294901760, %v18_v1  ;;  %v306_v6 = vand.u32 4294901760, %v17_v2  ;;  %v16_v7 = vld [vmem:[%s357_s1] sm:$0xff]  ;;  %v15_v8 = vld [vmem:[%s358_s0 + $0x8] sm:$0xff] }
   0x3   :  { %v14_v9 = vld [vmem:[%s358_s0] sm:$0xff]  ;;  %v317_v10 = vand.u32 4294901760, %v16_v7  ;;  %v37_v11 = vsel %vm32_vm0, %v15_v8, 0  ;;  %v21_v40 = vld [vmem:[%s359_s2 + $0x8] sm:$0xff] }
   0x4   :  { %v34_v12 = vsel %vm32_vm0, %v14_v9, 0  ;;  %v20_v13 = vld [vmem:[%s359_s2] sm:$0xff]  ;;  %262 = vmatpush.msra.mxu2 %v302_v4  ;;  %v89_v14 = vsub.f32 %v19_v0, %v302_v4  ;;  %v324_v15 = vand.u32 4294901760, %v37_v11  ;;  %v95_v16 = vsub.f32 %v18_v1, %v304_v5  ;;  %52 = vmatpush.msra.mxu0 %v302_v4 }
   0x5   :  { %v101_v17 = vsub.f32 %v17_v2, %v306_v6  ;;  %v107_v18 = vsub.f32 %v16_v7, %v317_v10  ;;  %v59_v19 = vand.u32 4294901760, %v34_v12  ;;  %24 = vperm.xlu0 %271, %v20_v13  }
   0x6   :  { %263 = vmatpush.msra.mxu2 %v304_v5  ;;  %v90_v20 = vand.u32 4294901760, %v89_v14  ;;  %v68_v21 = vsub.f32 %v37_v11, %v324_v15  ;;  %v96_v22 = vand.u32 4294901760, %v95_v16  ;;  %54 = vmatpush.msra.mxu0 %v304_v5 }
   0x7   :  { %v102_v23 = vand.u32 4294901760, %v101_v17  ;;  %v108_v24 = vand.u32 4294901760, %v107_v18  ;;  %v60_v25 = vsub.f32 %v34_v12, %v59_v19 }
   0x8   :  { %264 = vmatpush.msra.mxu2 %v306_v6  ;;  %v91_v26 = vsub.f32 %v89_v14, %v90_v20  ;;  %v69_v27 = vand.u32 4294901760, %v68_v21  ;;  %v97_v28 = vsub.f32 %v95_v16, %v96_v22  ;;  %56 = vmatpush.msra.mxu0 %v306_v6 }
   0x9   :  { %v103_v29 = vsub.f32 %v101_v17, %v102_v23  ;;  %v61_v30 = vand.u32 4294901760, %v60_v25  ;;  %v109_v34 = vsub.f32 %v107_v18, %v108_v24 }
   0xa   :  { %265 = vmatpush.msra.mxu2 %v317_v10  ;;  %v92_v31 = vand.u32 4294901760, %v91_v26  ;;  %v70_v32 = vsub.f32 %v68_v21, %v69_v27  ;;  %v98_v33 = vand.u32 4294901760, %v97_v28  ;;  %58 = vmatpush.msra.mxu0 %v317_v10 }
   0xb   :  { %v62_v35 = vsub.f32 %v60_v25, %v61_v30  ;;  %v104_v37 = vand.u32 4294901760, %v103_v29  ;;  %v110_v39 = vand.u32 4294901760, %v109_v34 }
   0xc   :  { %135 = vmatpush.msrb.mxu2 %v89_v14  ;;  %204 = vmatpush.msrb.mxu0 %v90_v20  ;;  %v71_v36 = vand.u32 4294901760, %v70_v32 }
   0xd   :  { %266 = vmatpush.msra.mxu3 %v92_v31  ;;  %93 = vmatpush.msra.mxu1 %v92_v31  ;;  %v63_v38 = vand.u32 4294901760, %v62_v35 }
   0xe   :  { %138 = vmatpush.msrb.mxu2 %v95_v16  ;;  %208 = vmatpush.msrb.mxu0 %v96_v22 }
   0xf   :  { %72 = vmatmul.f32.vlgmr.msra.gmra.mxu2 %v71_v36  ;;  %267 = vmatpush.msra.mxu3 %v98_v33 }
  0x10   :  { %141 = vmatpush.msrb.mxu2 %v101_v17  ;;  %99 = vmatpush.msra.mxu1 %v98_v33 }
  0x11   :  { %268 = vmatpush.msra.mxu3 %v104_v37  ;;  %64 = vmatmul.f32.vlgmr.msra.gmra.mxu0 %v63_v38 }
  0x12   :  { %144 = vmatpush.msrb.mxu2 %v107_v18  ;;  %105 = vmatpush.msra.mxu1 %v104_v37 }
  0x13   :  { %269 = vmatpush.msra.mxu3 %v110_v39  ;;  %212 = vmatpush.msrb.mxu0 %v102_v23 }
  0x14   :  { %117 = vmatmul.f32.vlgmr.msra.gmra.mxu3 %v324_v15  ;;  %111 = vmatpush.msra.mxu1 %v110_v39 }
  0x15   :  { %169 = vmatpush.msrb.mxu3 %v302_v4  ;;  %113 = vmatmul.f32.vlgmr.msra.gmra.mxu1 %v59_v19 }
  0x16   :  { %239 = vmatpush.msrb.mxu1 %v302_v4  ;;  %216 = vmatpush.msrb.mxu0 %v108_v24 }
  0x17   :  { %147 = vmatmul.f32.vlgmr.msrb.gmra.mxu2 %v60_v25  ;;  %171 = vmatpush.msrb.mxu3 %v304_v5 }
  0x18   :  { %241 = vmatpush.msrb.mxu1 %v304_v5  ;;  %29 = vperm.xlu0 %271, %v21_v40  }
  0x19   :  { %173 = vmatpush.msrb.mxu3 %v306_v6  ;;  %218 = vmatmul.f32.vlgmr.msrb.gmra.mxu0 %v59_v19 }
  0x1a   :  { %243 = vmatpush.msrb.mxu1 %v306_v6 }
  0x1b   :  { %175 = vmatpush.msrb.mxu3 %v317_v10 }
  0x1c   :  { %179 = vmatmul.f32.vlgmr.msrb.gmra.mxu3 %v61_v30  ;;  %245 = vmatpush.msrb.mxu1 %v317_v10 }
  0x1d   :  { %247 = vmatmul.f32.vlgmr.msrb.gmra.mxu1 %v59_v19 }
  0x1f   :  { %152 = vmatmul.f32.gmra.mxu2 %v68_v21 }
  0x21   :  { %222 = vmatmul.f32.gmra.mxu0 %v324_v15 }
  0x24   :  { %185 = vmatmul.f32.gmra.mxu3 %v69_v27 }
  0x25   :  { %251 = vmatmul.f32.gmra.mxu1 %v324_v15 }
  0x77   :  { %v25_v43 = vpop.permute.xlu0 %24 }
  0x8a   :  { %v30_v50 = vpop.permute.xlu0 %29 }
  0x8e   :  { %v65_v41 = vpop.f32.mrf.mxu0 }
  0x8f   :  { %v66_v44 = vadd.f32 %v65_v41, %v25_v43 }
  0x92   :  { %v73_v42 = vpop.f32.mrf.mxu2  ;;  %v114_v45 = vpop.f32.mrf.mxu1 }
  0x93   :  { %v115_v47 = vadd.f32 %v114_v45, %v66_v44  ;;  %v74_v54 = vadd.f32 %v73_v42, %v30_v50 }
  0x96   :  { %v219_v51 = vpop.f32.mrf.mxu0 }
  0x97   :  { %v118_v46 = vpop.f32.mrf.mxu3 }
  0x98   :  { %v119_v58 = vadd.f32 %v118_v46, %v74_v54 }
  0x9a   :  { %v148_v48 = vpop.f32.mrf.mxu2  ;;  %v248_v53 = vpop.f32.mrf.mxu1 }
  0x9b   :  { %v149_v49 = vadd.f32 %v148_v48, %v115_v47 }
  0x9e   :  { %v223_v62 = vpop.f32.mrf.mxu0 }
  0x9f   :  { %v180_v52 = vpop.f32.mrf.mxu3 }
  0xa0   :  { %v181_v55 = vadd.f32 %v180_v52, %v149_v49 }
  0xa2   :  { %v220_v56 = vadd.f32 %v219_v51, %v181_v55  ;;  %v153_v57 = vpop.f32.mrf.mxu2  ;;  %v252_v0 = vpop.f32.mrf.mxu1 }
  0xa3   :  { %v154_v60 = vadd.f32 %v153_v57, %v119_v58 }
  0xa4   :  { %v249_v59 = vadd.f32 %v248_v53, %v220_v56 }
  0xa6   :  { %256 = vst.msk [vmem:[%s360_s3] sm:$0xff] %vm255_vm1, %v249_v59 }
  0xa7   :  { %v186_v61 = vpop.f32.mrf.mxu3 }
  0xa8   :  { %v187_v63 = vadd.f32 %v186_v61, %v154_v60 }
  0xaa   :  { %v224_v1 = vadd.f32 %v223_v62, %v187_v63 }
  0xac   :  { %v253_v2 = vadd.f32 %v252_v0, %v224_v1 }
  0xae   :  { %257 = vst.msk [vmem:[%s360_s3 + $0x8] sm:$0xff] %vm255_vm1, %v253_v2 }

// kernel: backbone_with_fpn_forward.11
= control target key start
LH: loop header
LB: loop body
LE: loop exit
PB: predicated region body
PF: predicated region fallthrough
CT: control target
= control target key end

     0   :  { %vm64_vm0 = vcmask 130048   ;;  %vm767_vm1 = vcmask 64512   ;;  %s1244_s1 = inlined_call_operand.vmem [shape: f32[144,8], index: 1, kind: input, shape index: {}]   ;;  %s1245_s0 = inlined_call_operand.vmem [shape: f32[32,144], index: 0, kind: input, shape index: {}]   ;;  %s1246_s2 = inlined_call_operand.vmem [shape: f32[32,1], index: 2, kind: input, shape index: {}]   ;;  %s1247_s3 = inlined_call_operand.vmem [shape: f32[32,8], index: 3, kind: output, shape index: {}]  }
   0x1   :  { %v37_v0 = vld [vmem:[%s1244_s1 + $0x78] sm:$0xff]  ;;  %v36_v1 = vld [vmem:[%s1244_s1 + $0x70] sm:$0xff]  ;;  %v35_v2 = vld [vmem:[%s1244_s1 + $0x68] sm:$0xff] }
   0x2   :  { %v809_v3 = vand.u32 4294901760, %v37_v0  ;;  %v811_v4 = vand.u32 4294901760, %v36_v1  ;;  %v813_v5 = vand.u32 4294901760, %v35_v2  ;;  %v34_v6 = vld [vmem:[%s1244_s1 + $0x60] sm:$0xff]  ;;  %v33_v7 = vld [vmem:[%s1244_s1 + $0x58] sm:$0xff]  ;;  %v32_v8 = vld [vmem:[%s1244_s1 + $0x50] sm:$0xff] }
   0x3   :  { %v824_v9 = vand.u32 4294901760, %v34_v6  ;;  %v826_v10 = vand.u32 4294901760, %v33_v7  ;;  %v828_v11 = vand.u32 4294901760, %v32_v8  ;;  %v31_v12 = vld [vmem:[%s1244_s1 + $0x48] sm:$0xff]  ;;  %v30_v13 = vld [vmem:[%s1244_s1 + $0x40] sm:$0xff]  ;;  %v29_v18 = vld [vmem:[%s1244_s1 + $0x38] sm:$0xff] }
   0x4   :  { %78 = vmatpush.msra.mxu0 %v809_v3  ;;  %v838_v14 = vsub.f32 %v37_v0, %v809_v3  ;;  %v841_v15 = vsub.f32 %v36_v1, %v811_v4  ;;  %325 = vmatpush.msra.mxu3 %v809_v3  ;;  %v845_v16 = vsub.f32 %v35_v2, %v813_v5  ;;  %v847_v17 = vand.u32 4294901760, %v31_v12  ;;  %v28_v29 = vld [vmem:[%s1244_s1 + $0x30] sm:$0xff]  ;;  %v27_v36 = vld [vmem:[%s1244_s1 + $0x28] sm:$0xff]  ;;  %v26_v43 = vld [vmem:[%s1244_s1 + $0x20] sm:$0xff] }
   0x5   :  { %v853_v19 = vsub.f32 %v34_v6, %v824_v9  ;;  %v856_v20 = vsub.f32 %v33_v7, %v826_v10  ;;  %v858_v21 = vand.u32 4294901760, %v30_v13  ;;  %v861_v22 = vsub.f32 %v32_v8, %v828_v11  ;;  %v25_v49 = vld [vmem:[%s1244_s1 + $0x18] sm:$0xff]  ;;  %v24_v55 = vld [vmem:[%s1244_s1 + $0x10] sm:$0xff]  ;;  %v14_v56 = vld [vmem:[%s1245_s0] sm:$0xff] }
   0x6   :  { %80 = vmatpush.msra.mxu0 %v811_v4  ;;  %257 = vmatpush.msra.mxu2 %v838_v14  ;;  %v144_v23 = vand.u32 4294901760, %v838_v14  ;;  %v150_v24 = vand.u32 4294901760, %v841_v15  ;;  %v156_v25 = vand.u32 4294901760, %v845_v16  ;;  %v870_v27 = vand.u32 4294901760, %v29_v18  ;;  %v23_v62 = vld [vmem:[%s1244_s1 + $0x8] sm:$0xff] }
   0x7   :  { %327 = vmatpush.msra.mxu3 %v811_v4  ;;  %v162_v26 = vand.u32 4294901760, %v853_v19  ;;  %v873_v28 = vsub.f32 %v31_v12, %v847_v17  ;;  %v168_v33 = vand.u32 4294901760, %v856_v20  ;;  %v174_v34 = vand.u32 4294901760, %v861_v22  ;;  %v39_v6 = vld [vmem:[%s1244_s1 + $0x88] sm:$0xff]  ;;  %v22_v12 = vld [vmem:[%s1244_s1] sm:$0xff] }
   0x8   :  { %82 = vmatpush.msra.mxu0 %v813_v5  ;;  %260 = vmatpush.msra.mxu2 %v841_v15  ;;  %v145_v30 = vsub.f32 %v838_v14, %v144_v23  ;;  %v151_v31 = vsub.f32 %v841_v15, %v150_v24  ;;  %v157_v32 = vsub.f32 %v845_v16, %v156_v25  ;;  %v903_v40 = vand.u32 4294901760, %v28_v29 }
   0x9   :  { %329 = vmatpush.msra.mxu3 %v813_v5  ;;  %v893_v35 = vsub.f32 %v30_v13, %v858_v21  ;;  %v163_v39 = vsub.f32 %v853_v19, %v162_v26  ;;  %v180_v41 = vand.u32 4294901760, %v873_v28  ;;  %v908_v42 = vsub.f32 %v29_v18, %v870_v27 }
   0xa   :  { %84 = vmatpush.msra.mxu0 %v824_v9  ;;  %v146_v37 = vand.u32 4294901760, %v145_v30  ;;  %263 = vmatpush.msra.mxu2 %v845_v16  ;;  %v152_v38 = vand.u32 4294901760, %v151_v31  ;;  %v158_v44 = vand.u32 4294901760, %v157_v32  ;;  %v169_v45 = vsub.f32 %v856_v20, %v168_v33 }
   0xb   :  { %331 = vmatpush.msra.mxu3 %v824_v9  ;;  %v917_v46 = vand.u32 4294901760, %v27_v36  ;;  %v175_v47 = vsub.f32 %v861_v22, %v174_v34  ;;  %v186_v48 = vand.u32 4294901760, %v893_v35  ;;  %v164_v50 = vand.u32 4294901760, %v163_v39 }
   0xc   :  { %86 = vmatpush.msra.mxu0 %v826_v10  ;;  %147 = vmatpush.msra.mxu1 %v146_v37  ;;  %v929_v51 = vand.u32 4294901760, %v26_v43  ;;  %v932_v52 = vsub.f32 %v28_v29, %v903_v40  ;;  %v181_v53 = vsub.f32 %v873_v28, %v180_v41  ;;  %v1252_v54 = vand.u32 4294901760, %v908_v42 }
   0xd   :  { %266 = vmatpush.msra.mxu2 %v853_v19  ;;  %333 = vmatpush.msra.mxu3 %v826_v10  ;;  %v170_v57 = vand.u32 4294901760, %v169_v45  ;;  %v947_v58 = vand.u32 4294901760, %v25_v49  ;;  %v950_v59 = vsub.f32 %v27_v36, %v917_v46  ;;  %v176_v60 = vand.u32 4294901760, %v175_v47  ;;  %v16_v36 = vld [vmem:[%s1245_s0 + $0x10] sm:$0xff] }
   0xe   :  { %88 = vmatpush.msra.mxu0 %v828_v11  ;;  %153 = vmatpush.msra.mxu1 %v152_v38  ;;  %v187_v61 = vsub.f32 %v893_v35, %v186_v48  ;;  %v961_v63 = vand.u32 4294901760, %v24_v55  ;;  %v1251_v0 = vand.u32 4294901760, %v932_v52  ;;  %v965_v1 = vsub.f32 %v26_v43, %v929_v51 }
   0xf   :  { %269 = vmatpush.msra.mxu2 %v856_v20  ;;  %335 = vmatpush.msra.mxu3 %v828_v11  ;;  %v967_v2 = vand.u32 4294901760, %v14_v56  ;;  %v182_v7 = vand.u32 4294901760, %v181_v53  ;;  %v193_v8 = vsub.f32 %v908_v42, %v1252_v54  ;;  %v981_v13 = vand.u32 4294901760, %v23_v62 }
  0x10   :  { %90 = vmatpush.msra.mxu0 %v847_v17  ;;  %159 = vmatpush.msra.mxu1 %v158_v44  ;;  %v1250_v18 = vand.u32 4294901760, %v950_v59  ;;  %v985_v29 = vsub.f32 %v25_v49, %v947_v58  ;;  %v188_v31 = vand.u32 4294901760, %v187_v61  ;;  %v992_v32 = vand.u32 4294901760, %v39_v6 }
  0x11   :  { %272 = vmatpush.msra.mxu2 %v861_v22  ;;  %337 = vmatpush.msra.mxu3 %v847_v17  ;;  %v988_v30 = vsub.f32 %v14_v56, %v967_v2  ;;  %v199_v37 = vsub.f32 %v932_v52, %v1251_v0  ;;  %v1001_v38 = vand.u32 4294901760, %v22_v12  ;;  %v1249_v39 = vand.u32 4294901760, %v965_v1 }
  0x12   :  { %92 = vmatpush.msra.mxu0 %v858_v21  ;;  %165 = vmatpush.msra.mxu1 %v164_v50  ;;  %v1005_v43 = vsub.f32 %v24_v55, %v961_v63  ;;  %v194_v44 = vand.u32 4294901760, %v193_v8  ;;  %v205_v47 = vsub.f32 %v950_v59, %v1250_v18  ;;  %v1248_v49 = vand.u32 4294901760, %v985_v29 }
  0x13   :  { %275 = vmatpush.msra.mxu2 %v873_v28  ;;  %339 = vmatpush.msra.mxu3 %v858_v21  ;;  %v111_v45 = vand.u32 4294901760, %v988_v30  ;;  %v1016_v50 = vsub.f32 %v23_v62, %v981_v13  ;;  %v1018_v53 = vand.u32 4294901760, %v16_v36  ;;  %v1023_v55 = vsub.f32 %v39_v6, %v992_v32  ;;  %v38_v62 = vld [vmem:[%s1244_s1 + $0x80] sm:$0xff]  ;;  %v17_v28 = vld [vmem:[%s1245_s0 + $0x18] sm:$0xff] }
  0x14   :  { %94 = vmatpush.msra.mxu0 %v870_v27  ;;  %171 = vmatpush.msra.mxu1 %v170_v57  ;;  %v200_v56 = vand.u32 4294901760, %v199_v37  ;;  %v211_v57 = vsub.f32 %v965_v1, %v1249_v39  ;;  %v1031_v61 = vsub.f32 %v22_v12, %v1001_v38  ;;  %v217_v8 = vsub.f32 %v985_v29, %v1248_v49 }
  0x15   :  { %278 = vmatpush.msra.mxu2 %v893_v35  ;;  %341 = vmatpush.msra.mxu3 %v870_v27  ;;  %v112_v6 = vsub.f32 %v988_v30, %v111_v45  ;;  %v1254_v12 = vand.u32 4294901760, %v1016_v50  ;;  %v1255_v37 = vand.u32 4294901760, %v1023_v55  ;;  %v69_v35 = vsel %vm64_vm0, %v17_v28, 0 }
  0x16   :  { %96 = vmatpush.msra.mxu0 %v903_v40  ;;  %177 = vmatpush.msra.mxu1 %v176_v60  ;;  %v1253_v60 = vand.u32 4294901760, %v1005_v43  ;;  %v212_v49 = vand.u32 4294901760, %v211_v57  ;;  %v234_v39 = vand.u32 4294901760, %v1031_v61  ;;  %v218_v0 = vand.u32 4294901760, %v217_v8 }
  0x17   :  { %281 = vmatpush.msra.mxu2 %v908_v42  ;;  %343 = vmatpush.msra.mxu3 %v903_v40  ;;  %v113_v18 = vand.u32 4294901760, %v112_v6  ;;  %v579_v6 = vsub.f32 %v1023_v55, %v1255_v37 }
  0x18   :  { %98 = vmatpush.msra.mxu0 %v917_v46  ;;  %183 = vmatpush.msra.mxu1 %v182_v7  ;;  %v206_v7 = vand.u32 4294901760, %v205_v47  ;;  %v1055_v47 = vand.u32 4294901760, %v38_v62  ;;  %v235_v8 = vsub.f32 %v1031_v61, %v234_v39 }
  0x19   :  { %284 = vmatpush.msra.mxu2 %v932_v52  ;;  %345 = vmatpush.msra.mxu3 %v917_v46 }
  0x1a   :  { %100 = vmatpush.msra.mxu0 %v929_v51  ;;  %189 = vmatpush.msra.mxu1 %v188_v31  ;;  %v1047_v31 = vsub.f32 %v16_v36, %v1018_v53  ;;  %v223_v36 = vsub.f32 %v1005_v43, %v1253_v60  ;;  %v1077_v60 = vsub.f32 %v38_v62, %v1055_v47  ;;  %v236_v14 = vand.u32 4294901760, %v235_v8 }
  0x1b   :  { %287 = vmatpush.msra.mxu2 %v950_v59  ;;  %347 = vmatpush.msra.mxu3 %v929_v51 }
  0x1c   :  { %102 = vmatpush.msra.mxu0 %v947_v58  ;;  %195 = vmatpush.msra.mxu1 %v194_v44  ;;  %v18_v44 = vld [vmem:[%s1245_s0 + $0x20] sm:$0xff]  ;;  %v119_v57 = vand.u32 4294901760, %v1047_v31 }
  0x1d   :  { %290 = vmatpush.msra.mxu2 %v965_v1  ;;  %349 = vmatpush.msra.mxu3 %v947_v58  ;;  %v1069_v54 = vand.u32 4294901760, %v18_v44 }
  0x1e   :  { %104 = vmatpush.msra.mxu0 %v961_v63  ;;  %201 = vmatpush.msra.mxu1 %v200_v56  ;;  %v229_v56 = vsub.f32 %v1016_v50, %v1254_v12  ;;  %v120_v37 = vsub.f32 %v1047_v31, %v119_v57 }
  0x1f   :  { %293 = vmatpush.msra.mxu2 %v985_v29  ;;  %351 = vmatpush.msra.mxu3 %v961_v63  ;;  %v1088_v62 = vsub.f32 %v18_v44, %v1069_v54 }
  0x20   :  { %106 = vmatpush.msra.mxu0 %v981_v13  ;;  %207 = vmatpush.msra.mxu1 %v206_v7  ;;  %v224_v7 = vand.u32 4294901760, %v223_v36  ;;  %v230_v12 = vand.u32 4294901760, %v229_v56  ;;  %v584_v36 = vand.u32 4294901760, %v1077_v60 }
  0x21   :  { %296 = vmatpush.msra.mxu2 %v1005_v43  ;;  %353 = vmatpush.msra.mxu3 %v981_v13 }
  0x22   :  { %108 = vmatpush.msra.mxu0 %v1001_v38  ;;  %213 = vmatpush.msra.mxu1 %v212_v49  ;;  %v580_v49 = vand.u32 4294901760, %v579_v6  ;;  %v585_v15 = vsub.f32 %v1077_v60, %v584_v36 }
  0x23   :  { %114 = vmatmul.f32.vlgmr.msra.gmra.mxu0 %v113_v18  ;;  %299 = vmatpush.msra.mxu2 %v1016_v50  ;;  %v127_v18 = vand.u32 4294901760, %v1088_v62 }
  0x24   :  { %219 = vmatpush.msra.mxu1 %v218_v0  ;;  %384 = vmatpush.msrb.mxu0 %v144_v23  ;;  %v20_v0 = vld [vmem:[%s1245_s0 + $0x30] sm:$0xff]  ;;  %v121_v23 = vand.u32 4294901760, %v120_v37  ;;  %v1263_v37 = vand.u32 4294901760, %v1016_v50 }
  0x25   :  { %302 = vmatpush.msra.mxu2 %v1031_v61  ;;  %355 = vmatpush.msra.mxu3 %v1001_v38  ;;  %v1103_v44 = vand.u32 4294901760, %v20_v0  ;;  %v128_v16 = vsub.f32 %v1088_v62, %v127_v18 }
  0x26   :  { %225 = vmatpush.msra.mxu1 %v224_v7  ;;  %388 = vmatpush.msrb.mxu0 %v150_v24  ;;  %v779_v24 = vmov 0  }
  0x27   :  { %305 = vmatmul.f32.vlgmr.msra.gmra.mxu2 %v988_v30  ;;  %359 = vmatmul.f32.vlgmr.msra.gmra.mxu3 %v111_v45  ;;  %v40_v30 = vld [vmem:[%s1246_s2] sm:$0xff]  ;;  %v586_v45 = vand.u32 4294901760, %v585_v15 }
  0x28   :  { %526 = vmatpush.msrb.mxu2 %v992_v32  ;;  %231 = vmatpush.msra.mxu1 %v230_v12  ;;  %v15_v12 = vld [vmem:[%s1245_s0 + $0x8] sm:$0xff] }
  0x29   :  { %392 = vmatpush.msrb.mxu0 %v156_v25  ;;  %581 = vmatpush.msrb.mxu3 %v580_v49  ;;  %v134_v25 = vsub.f32 %v20_v0, %v1103_v44  ;;  %v66_v20 = vsel %vm64_vm0, %v15_v12, 0 }
  0x2a   :  { %237 = vmatpush.msra.mxu1 %v236_v14  ;;  %777 = vset.pattern.permute.xlu0 %v779_v24  ;;  %v1143_v22 = vand.u32 4294901760, %v66_v20 }
  0x2b   :  { %396 = vmatpush.msrb.mxu0 %v162_v26  ;;  %239 = vmatmul.f32.vlgmr.msra.gmra.mxu1 %v967_v2  ;;  %v135_v19 = vand.u32 4294901760, %v134_v25  ;;  %v1256_v26 = vand.u32 4294901760, %v908_v42  ;;  %v1260_v42 = vand.u32 4294901760, %v965_v1  ;;  %v1262_v1 = vand.u32 4294901760, %v1005_v43 }
  0x2c   :  { %122 = vmatmul.f32.gmra.mxu0 %v121_v23  ;;  %463 = vmatpush.msrb.mxu1 %v809_v3  ;;  %v129_v3 = vand.u32 4294901760, %v128_v16 }
  0x2d   :  { %400 = vmatpush.msrb.mxu0 %v168_v33  ;;  %46 = vperm.xlu0 %777, %v40_v30   ;;  %v1257_v33 = vand.u32 4294901760, %v932_v52  ;;  %v1173_v52 = vand.u32 4294901760, %v69_v35 }
  0x2e   :  { %465 = vmatpush.msrb.mxu1 %v811_v4  ;;  %528 = vmatpush.msrb.mxu2 %v1055_v47  ;;  %v41_v4 = vld [vmem:[%s1246_s2 + $0x8] sm:$0xff] }
  0x2f   :  { %404 = vmatpush.msrb.mxu0 %v174_v34  ;;  %310 = vmatmul.f32.gmra.mxu2 %v1047_v31  ;;  %v1156_v34 = vsub.f32 %v66_v20, %v1143_v22 }
  0x30   :  { %467 = vmatpush.msrb.mxu1 %v813_v5  ;;  %365 = vmatmul.f32.gmra.mxu3 %v119_v57  ;;  %v42_v5 = vld [vmem:[%s1246_s2 + $0x10] sm:$0xff] }
  0x31   :  { %408 = vmatpush.msrb.mxu0 %v180_v41  ;;  %587 = vmatpush.msrb.mxu3 %v586_v45  ;;  %v1258_v41 = vand.u32 4294901760, %v950_v59  ;;  %v19_v59 = vld [vmem:[%s1245_s0 + $0x28] sm:$0xff] }
  0x32   :  { %469 = vmatpush.msrb.mxu1 %v824_v9  ;;  %778 = vset.pattern.permute.xlu1 %v779_v24  ;;  %v136_v9 = vsub.f32 %v134_v25, %v135_v19  ;;  %v72_v31 = vsel %vm64_vm0, %v19_v59, 0 }
  0x33   :  { %412 = vmatpush.msrb.mxu0 %v186_v48  ;;  %243 = vmatmul.f32.gmra.mxu1 %v1018_v53  ;;  %v43_v48 = vld [vmem:[%s1246_s2 + $0x18] sm:$0xff]  ;;  %v545_v56 = vand.u32 4294901760, %v72_v31 }
  0x34   :  { %130 = vmatmul.f32.gmra.mxu0 %v129_v3  ;;  %471 = vmatpush.msrb.mxu1 %v826_v10  ;;  %v137_v10 = vand.u32 4294901760, %v136_v9 }
  0x35   :  { %416 = vmatpush.msrb.mxu0 %v1256_v26  ;;  %51 = vperm.xlu0 %777, %v41_v4  }
  0x36   :  { %473 = vmatpush.msrb.mxu1 %v828_v11  ;;  %56 = vperm.xlu1 %778, %v42_v5   ;;  %v1259_v11 = vand.u32 4294901760, %v1023_v55 }
  0x37   :  { %420 = vmatpush.msrb.mxu0 %v1257_v33  ;;  %315 = vmatmul.f32.gmra.mxu2 %v1088_v62 }
  0x38   :  { %475 = vmatpush.msrb.mxu1 %v847_v17  ;;  %371 = vmatmul.f32.gmra.mxu3 %v127_v18  ;;  %v531_v17 = vand.u32 4294901760, %v1156_v34 }
  0x39   :  { %424 = vmatpush.msrb.mxu0 %v1258_v41  ;;  %706 = vmatpush.msra.mxu2 %v1259_v11 }
  0x3a   :  { %477 = vmatpush.msrb.mxu1 %v858_v21  ;;  %743 = vmatpush.msra.mxu3 %v992_v32  ;;  %v1261_v21 = vand.u32 4294901760, %v985_v29  ;;  %v538_v29 = vsub.f32 %v69_v35, %v1173_v52 }
  0x3b   :  { %428 = vmatpush.msrb.mxu0 %v1260_v42  ;;  %247 = vmatmul.f32.gmra.mxu1 %v1069_v54 }
  0x3c   :  { %138 = vmatmul.f32.gmra.mxu0 %v137_v10  ;;  %479 = vmatpush.msrb.mxu1 %v870_v27  ;;  %v532_v27 = vsub.f32 %v1156_v34, %v531_v17  ;;  %v539_v43 = vand.u32 4294901760, %v538_v29 }
  0x3d   :  { %432 = vmatpush.msrb.mxu0 %v1261_v21  ;;  %710 = vmatpush.msra.mxu2 %v584_v36 }
  0x3e   :  { %481 = vmatpush.msrb.mxu1 %v903_v40  ;;  %61 = vperm.xlu1 %778, %v43_v48   ;;  %v533_v40 = vand.u32 4294901760, %v532_v27 }
  0x3f   :  { %436 = vmatpush.msrb.mxu0 %v1262_v1  ;;  %320 = vmatmul.f32.gmra.mxu2 %v134_v25 }
  0x40   :  { %483 = vmatpush.msrb.mxu1 %v917_v46  ;;  %377 = vmatmul.f32.gmra.mxu3 %v135_v19  ;;  %v21_v46 = vld [vmem:[%s1245_s0 + $0x38] sm:$0xff] }
  0x41   :  { %440 = vmatpush.msrb.mxu0 %v1263_v37  ;;  %745 = vmatpush.msra.mxu3 %v1055_v47  ;;  %v75_v50 = vsel %vm64_vm0, %v21_v46, 0 }
  0x42   :  { %485 = vmatpush.msrb.mxu1 %v929_v51  ;;  %v540_v51 = vsub.f32 %v538_v29, %v539_v43  ;;  %v553_v61 = vand.u32 4294901760, %v75_v50 }
  0x43   :  { %444 = vmatpush.msrb.mxu0 %v234_v39  ;;  %251 = vmatmul.f32.gmra.mxu1 %v1103_v44  ;;  %v546_v39 = vsub.f32 %v72_v31, %v545_v56 }
  0x44   :  { %446 = vmatmul.f32.vlgmr.msrb.gmra.mxu0 %v967_v2  ;;  %487 = vmatpush.msrb.mxu1 %v947_v58  ;;  %v541_v58 = vand.u32 4294901760, %v540_v51 }
  0x45   :  { %621 = vmatpush.msra.mxu0 %v1023_v55  ;;  %v547_v55 = vand.u32 4294901760, %v546_v39 }
  0x46   :  { %489 = vmatpush.msrb.mxu1 %v961_v63 }
  0x47   :  { %534 = vmatmul.f32.vlgmr.msrb.gmra.mxu2 %v533_v40  ;;  %624 = vmatpush.msra.mxu0 %v1077_v60  ;;  %v548_v63 = vsub.f32 %v546_v39, %v547_v55 }
  0x48   :  { %491 = vmatpush.msrb.mxu1 %v981_v13  ;;  %589 = vmatmul.f32.vlgmr.msrb.gmra.mxu3 %v1143_v22  ;;  %v554_v13 = vsub.f32 %v75_v50, %v553_v61 }
  0x49   :  { %v549_v60 = vand.u32 4294901760, %v548_v63 }
  0x4a   :  { %493 = vmatpush.msrb.mxu1 %v1001_v38  ;;  %v555_v38 = vand.u32 4294901760, %v554_v13 }
  0x4b   :  { %495 = vmatmul.f32.vlgmr.msrb.gmra.mxu1 %v967_v2 }
  0x4c   :  { %450 = vmatmul.f32.gmra.mxu0 %v1018_v53  ;;  %661 = vmatpush.msra.mxu1 %v992_v32  ;;  %v556_v2 = vsub.f32 %v554_v13, %v555_v38 }
  0x4e   :  { %663 = vmatpush.msra.mxu1 %v1055_v47  ;;  %v557_v57 = vand.u32 4294901760, %v556_v2 }
  0x4f   :  { %542 = vmatmul.f32.gmra.mxu2 %v541_v58 }
  0x50   :  { %593 = vmatmul.f32.gmra.mxu3 %v1173_v52 }
  0x53   :  { %499 = vmatmul.f32.gmra.mxu1 %v1018_v53 }
  0x54   :  { %454 = vmatmul.f32.gmra.mxu0 %v1069_v54 }
  0x57   :  { %550 = vmatmul.f32.gmra.mxu2 %v549_v60 }
  0x58   :  { %597 = vmatmul.f32.gmra.mxu3 %v545_v56 }
  0x5b   :  { %503 = vmatmul.f32.gmra.mxu1 %v1069_v54 }
  0x5c   :  { %458 = vmatmul.f32.gmra.mxu0 %v1103_v44 }
  0x5f   :  { %558 = vmatmul.f32.gmra.mxu2 %v557_v57 }
  0x60   :  { %601 = vmatmul.f32.gmra.mxu3 %v553_v61 }
  0x63   :  { %507 = vmatmul.f32.gmra.mxu1 %v1103_v44 }
  0x64   :  { %627 = vmatmul.f32.vlgmr.msra.gmra.mxu0 %v1156_v34 }
  0x67   :  { %712 = vmatmul.f32.vlgmr.msra.gmra.mxu2 %v1143_v22 }
  0x68   :  { %747 = vmatmul.f32.vlgmr.msra.gmra.mxu3 %v1143_v22 }
  0x6b   :  { %667 = vmatmul.f32.vlgmr.msra.gmra.mxu1 %v531_v17 }
  0x6c   :  { %632 = vmatmul.f32.gmra.mxu0 %v538_v29 }
  0x6f   :  { %716 = vmatmul.f32.gmra.mxu2 %v1173_v52 }
  0x70   :  { %751 = vmatmul.f32.gmra.mxu3 %v1173_v52 }
  0x73   :  { %673 = vmatmul.f32.gmra.mxu1 %v539_v43 }
  0x74   :  { %637 = vmatmul.f32.gmra.mxu0 %v546_v39 }
  0x77   :  { %720 = vmatmul.f32.gmra.mxu2 %v545_v56 }
  0x78   :  { %755 = vmatmul.f32.gmra.mxu3 %v545_v56 }
  0x7b   :  { %679 = vmatmul.f32.gmra.mxu1 %v547_v55 }
  0x7c   :  { %642 = vmatmul.f32.gmra.mxu0 %v554_v13 }
  0x7f   :  { %724 = vmatmul.f32.gmra.mxu2 %v553_v61 }
  0x80   :  { %759 = vmatmul.f32.gmra.mxu3 %v553_v61 }
  0x83   :  { %685 = vmatmul.f32.gmra.mxu1 %v555_v38 }
  0x9f   :  { %v47_v30 = vpop.permute.xlu0 %46 }
  0xa0   :  { %v115_v54 = vpop.f32.mrf.mxu0 }
  0xa1   :  { %v116_v3 = vadd.f32 %v115_v54, %v47_v30 }
  0xa7   :  { %v52_v5 = vpop.permute.xlu0 %51 }
  0xa8   :  { %v240_v32 = vpop.f32.mrf.mxu1  ;;  %v57_v33 = vpop.permute.xlu1 %56 }
  0xa9   :  { %v123_v53 = vpop.f32.mrf.mxu0  ;;  %v241_v20 = vadd.f32 %v240_v32, %v116_v3 }
  0xaa   :  { %v306_v47 = vpop.f32.mrf.mxu2  ;;  %v360_v6 = vpop.f32.mrf.mxu3  ;;  %v124_v28 = vadd.f32 %v123_v53, %v52_v5 }
  0xab   :  { %v307_v26 = vadd.f32 %v306_v47, %v241_v20 }
  0xad   :  { %v361_v10 = vadd.f32 %v360_v6, %v307_v26 }
  0xb0   :  { %v244_v7 = vpop.f32.mrf.mxu1  ;;  %v62_v37 = vpop.permute.xlu1 %61 }
  0xb1   :  { %v131_v8 = vpop.f32.mrf.mxu0  ;;  %v245_v35 = vadd.f32 %v244_v7, %v124_v28 }
  0xb2   :  { %v311_v62 = vpop.f32.mrf.mxu2  ;;  %v132_v52 = vadd.f32 %v131_v8, %v57_v33 }
  0xb3   :  { %v366_v49 = vpop.f32.mrf.mxu3  ;;  %v312_v48 = vadd.f32 %v311_v62, %v245_v35 }
  0xb5   :  { %v367_v1 = vadd.f32 %v366_v49, %v312_v48 }
  0xb8   :  { %v248_v36 = vpop.f32.mrf.mxu1 }
  0xb9   :  { %v139_v0 = vpop.f32.mrf.mxu0  ;;  %v249_v27 = vadd.f32 %v248_v36, %v132_v52 }
  0xba   :  { %v316_v14 = vpop.f32.mrf.mxu2  ;;  %v140_v51 = vadd.f32 %v139_v0, %v62_v37 }
  0xbb   :  { %v372_v23 = vpop.f32.mrf.mxu3  ;;  %v317_v46 = vadd.f32 %v316_v14, %v249_v27 }
  0xbd   :  { %v373_v61 = vadd.f32 %v372_v23, %v317_v46 }
  0xc0   :  { %v252_v18 = vpop.f32.mrf.mxu1 }
  0xc1   :  { %v447_v44 = vpop.f32.mrf.mxu0  ;;  %v253_v63 = vadd.f32 %v252_v18, %v140_v51 }
  0xc2   :  { %v321_v15 = vpop.f32.mrf.mxu2  ;;  %v448_v42 = vadd.f32 %v447_v44, %v361_v10 }
  0xc3   :  { %v378_v24 = vpop.f32.mrf.mxu3  ;;  %v322_v53 = vadd.f32 %v321_v15, %v253_v63 }
  0xc5   :  { %v379_v36 = vadd.f32 %v378_v24, %v322_v53 }
  0xc8   :  { %v496_v16 = vpop.f32.mrf.mxu1 }
  0xc9   :  { %v451_v25 = vpop.f32.mrf.mxu0  ;;  %v497_v21 = vadd.f32 %v496_v16, %v448_v42 }
  0xca   :  { %v535_v45 = vpop.f32.mrf.mxu2  ;;  %v452_v43 = vadd.f32 %v451_v25, %v367_v1 }
  0xcb   :  { %v590_v12 = vpop.f32.mrf.mxu3  ;;  %v536_v29 = vadd.f32 %v535_v45, %v497_v21 }
  0xcd   :  { %v591_v39 = vadd.f32 %v590_v12, %v536_v29 }
  0xd0   :  { %v500_v19 = vpop.f32.mrf.mxu1 }
  0xd1   :  { %v455_v4 = vpop.f32.mrf.mxu0  ;;  %v501_v50 = vadd.f32 %v500_v19, %v452_v43 }
  0xd2   :  { %v543_v22 = vpop.f32.mrf.mxu2  ;;  %v456_v57 = vadd.f32 %v455_v4, %v373_v61 }
  0xd3   :  { %v594_v9 = vpop.f32.mrf.mxu3  ;;  %v544_v13 = vadd.f32 %v543_v22, %v501_v50 }
  0xd5   :  { %v595_v47 = vadd.f32 %v594_v9, %v544_v13 }
  0xd8   :  { %v504_v34 = vpop.f32.mrf.mxu1 }
  0xd9   :  { %v459_v41 = vpop.f32.mrf.mxu0  ;;  %v505_v6 = vadd.f32 %v504_v34, %v456_v57 }
  0xda   :  { %v551_v11 = vpop.f32.mrf.mxu2  ;;  %v460_v44 = vadd.f32 %v459_v41, %v379_v36 }
  0xdb   :  { %v598_v17 = vpop.f32.mrf.mxu3  ;;  %v552_v0 = vadd.f32 %v551_v11, %v505_v6 }
  0xdd   :  { %v599_v16 = vadd.f32 %v598_v17, %v552_v0 }
  0xe0   :  { %v508_v59 = vpop.f32.mrf.mxu1 }
  0xe1   :  { %v628_v31 = vpop.f32.mrf.mxu0  ;;  %v509_v25 = vadd.f32 %v508_v59, %v460_v44 }
  0xe2   :  { %v559_v40 = vpop.f32.mrf.mxu2  ;;  %v629_v58 = vadd.f32 %v628_v31, %v591_v39 }
  0xe3   :  { %v602_v56 = vpop.f32.mrf.mxu3  ;;  %v560_v20 = vadd.f32 %v559_v40, %v509_v25 }
  0xe5   :  { %v603_v26 = vadd.f32 %v602_v56, %v560_v20 }
  0xe8   :  { %v668_v55 = vpop.f32.mrf.mxu1 }
  0xe9   :  { %v633_v60 = vpop.f32.mrf.mxu0  ;;  %v669_v38 = vadd.f32 %v668_v55, %v629_v58 }
  0xea   :  { %v713_v2 = vpop.f32.mrf.mxu2  ;;  %v634_v8 = vadd.f32 %v633_v60, %v595_v47 }
  0xeb   :  { %v714_v54 = vadd.f32 %v713_v2, %v669_v38  ;;  %v748_v32 = vpop.f32.mrf.mxu3 }
  0xed   :  { %v749_v7 = vadd.f32 %v748_v32, %v714_v54 }
  0xef   :  { %v763_v62 = vmax.f32 %v749_v7, 0.0 }
  0xf0   :  { %v674_v49 = vpop.f32.mrf.mxu1 }
  0xf1   :  { %768 = vst.msk [vmem:[%s1247_s3] sm:$0xff] %vm767_vm1, %v763_v62  ;;  %v675_v14 = vadd.f32 %v674_v49, %v634_v8  ;;  %v638_v23 = vpop.f32.mrf.mxu0 }
  0xf2   :  { %v717_v18 = vpop.f32.mrf.mxu2  ;;  %v639_v12 = vadd.f32 %v638_v23, %v599_v16 }
  0xf3   :  { %v718_v30 = vadd.f32 %v717_v18, %v675_v14  ;;  %v752_v15 = vpop.f32.mrf.mxu3 }
  0xf5   :  { %v753_v45 = vadd.f32 %v752_v15, %v718_v30 }
  0xf7   :  { %v764_v3 = vmax.f32 %v753_v45, 0.0 }
  0xf8   :  { %v680_v19 = vpop.f32.mrf.mxu1 }
  0xf9   :  { %769 = vst.msk [vmem:[%s1247_s3 + $0x8] sm:$0xff] %vm767_vm1, %v764_v3  ;;  %v681_v24 = vadd.f32 %v680_v19, %v639_v12  ;;  %v643_v9 = vpop.f32.mrf.mxu0 }
  0xfa   :  { %v721_v4 = vpop.f32.mrf.mxu2  ;;  %v644_v33 = vadd.f32 %v643_v9, %v603_v26 }
  0xfb   :  { %v722_v5 = vadd.f32 %v721_v4, %v681_v24  ;;  %v756_v22 = vpop.f32.mrf.mxu3 }
  0xfd   :  { %v757_v28 = vadd.f32 %v756_v22, %v722_v5 }
  0xff   :  { %v765_v34 = vmax.f32 %v757_v28, 0.0 }
 0x100   :  { %v686_v10 = vpop.f32.mrf.mxu1 }
 0x101   :  { %770 = vst.msk [vmem:[%s1247_s3 + $0x10] sm:$0xff] %vm767_vm1, %v765_v34  ;;  %v687_v35 = vadd.f32 %v686_v10, %v644_v33 }
 0x102   :  { %v725_v41 = vpop.f32.mrf.mxu2 }
 0x103   :  { %v726_v11 = vadd.f32 %v725_v41, %v687_v35  ;;  %v760_v42 = vpop.f32.mrf.mxu3 }
 0x105   :  { %v761_v17 = vadd.f32 %v760_v42, %v726_v11 }
 0x107   :  { %v766_v48 = vmax.f32 %v761_v17, 0.0 }
 0x109   :  { %771 = vst.msk [vmem:[%s1247_s3 + $0x18] sm:$0xff] %vm767_vm1, %v766_v48 }

// kernel: backbone_with_fpn_forward.13
= control target key start
LH: loop header
LB: loop body
LE: loop exit
PB: predicated region body
PF: predicated region fallthrough
CT: control target
= control target key end

     0   :  { %vm48_vm0 = vcmask 130048   ;;  %vm617_vm1 = vcmask 64512   ;;  %s1039_s1 = inlined_call_operand.vmem [shape: f32[144,8], index: 1, kind: input, shape index: {}]   ;;  %s1040_s0 = inlined_call_operand.vmem [shape: f32[16,144], index: 0, kind: input, shape index: {}]   ;;  %s1041_s2 = inlined_call_operand.vmem [shape: f32[16,1], index: 2, kind: input, shape index: {}]   ;;  %s1042_s3 = inlined_call_operand.vmem [shape: f32[16,8], index: 3, kind: output, shape index: {}]  }
   0x1   :  { %v33_v0 = vld [vmem:[%s1039_s1 + $0x78] sm:$0xff]  ;;  %v32_v1 = vld [vmem:[%s1039_s1 + $0x70] sm:$0xff]  ;;  %v31_v2 = vld [vmem:[%s1039_s1 + $0x68] sm:$0xff] }
   0x2   :  { %v660_v3 = vand.u32 4294901760, %v33_v0  ;;  %v662_v4 = vand.u32 4294901760, %v32_v1  ;;  %v664_v5 = vand.u32 4294901760, %v31_v2  ;;  %v30_v6 = vld [vmem:[%s1039_s1 + $0x60] sm:$0xff]  ;;  %v29_v7 = vld [vmem:[%s1039_s1 + $0x58] sm:$0xff]  ;;  %v28_v8 = vld [vmem:[%s1039_s1 + $0x50] sm:$0xff] }
   0x3   :  { %v675_v9 = vand.u32 4294901760, %v30_v6  ;;  %v677_v10 = vand.u32 4294901760, %v29_v7  ;;  %v679_v11 = vand.u32 4294901760, %v28_v8  ;;  %v27_v12 = vld [vmem:[%s1039_s1 + $0x48] sm:$0xff]  ;;  %v26_v13 = vld [vmem:[%s1039_s1 + $0x40] sm:$0xff]  ;;  %v25_v18 = vld [vmem:[%s1039_s1 + $0x38] sm:$0xff] }
   0x4   :  { %56 = vmatpush.msra.mxu0 %v660_v3  ;;  %v689_v14 = vsub.f32 %v33_v0, %v660_v3  ;;  %v692_v15 = vsub.f32 %v32_v1, %v662_v4  ;;  %269 = vmatpush.msra.mxu3 %v660_v3  ;;  %v696_v16 = vsub.f32 %v31_v2, %v664_v5  ;;  %v698_v17 = vand.u32 4294901760, %v27_v12  ;;  %v24_v26 = vld [vmem:[%s1039_s1 + $0x30] sm:$0xff]  ;;  %v23_v36 = vld [vmem:[%s1039_s1 + $0x28] sm:$0xff]  ;;  %v22_v42 = vld [vmem:[%s1039_s1 + $0x20] sm:$0xff] }
   0x5   :  { %v704_v19 = vsub.f32 %v30_v6, %v675_v9  ;;  %v707_v20 = vsub.f32 %v29_v7, %v677_v10  ;;  %v709_v21 = vand.u32 4294901760, %v26_v13  ;;  %v717_v25 = vsub.f32 %v28_v8, %v679_v11  ;;  %v21_v48 = vld [vmem:[%s1039_s1 + $0x18] sm:$0xff]  ;;  %v20_v54 = vld [vmem:[%s1039_s1 + $0x10] sm:$0xff]  ;;  %v19_v60 = vld [vmem:[%s1039_s1 + $0x8] sm:$0xff] }
   0x6   :  { %58 = vmatpush.msra.mxu0 %v662_v4  ;;  %211 = vmatpush.msra.mxu2 %v689_v14  ;;  %v106_v22 = vand.u32 4294901760, %v689_v14  ;;  %v112_v23 = vand.u32 4294901760, %v692_v15  ;;  %v118_v24 = vand.u32 4294901760, %v696_v16  ;;  %v725_v28 = vsub.f32 %v27_v12, %v698_v17  ;;  %v14_v1 = vld [vmem:[%s1040_s0] sm:$0xff]  ;;  %v35_v2 = vld [vmem:[%s1039_s1 + $0x88] sm:$0xff] }
   0x7   :  { %271 = vmatpush.msra.mxu3 %v662_v4  ;;  %v124_v27 = vand.u32 4294901760, %v704_v19  ;;  %v727_v29 = vand.u32 4294901760, %v25_v18  ;;  %v130_v33 = vand.u32 4294901760, %v707_v20  ;;  %v743_v34 = vsub.f32 %v26_v13, %v709_v21  ;;  %v18_v7 = vld [vmem:[%s1039_s1] sm:$0xff] }
   0x8   :  { %60 = vmatpush.msra.mxu0 %v664_v5  ;;  %214 = vmatpush.msra.mxu2 %v692_v15  ;;  %v107_v30 = vsub.f32 %v689_v14, %v106_v22  ;;  %v113_v31 = vsub.f32 %v692_v15, %v112_v23  ;;  %v119_v32 = vsub.f32 %v696_v16, %v118_v24  ;;  %v745_v35 = vand.u32 4294901760, %v24_v26  ;;  %v17_v14 = vld [vmem:[%s1040_s0 + $0x18] sm:$0xff] }
   0x9   :  { %273 = vmatpush.msra.mxu3 %v664_v5  ;;  %v125_v39 = vsub.f32 %v704_v19, %v124_v27  ;;  %v136_v40 = vand.u32 4294901760, %v717_v25  ;;  %v142_v41 = vand.u32 4294901760, %v725_v28  ;;  %v131_v44 = vsub.f32 %v707_v20, %v130_v33 }
   0xa   :  { %62 = vmatpush.msra.mxu0 %v675_v9  ;;  %217 = vmatpush.msra.mxu2 %v696_v16  ;;  %v108_v37 = vand.u32 4294901760, %v107_v30  ;;  %v114_v38 = vand.u32 4294901760, %v113_v31  ;;  %v120_v43 = vand.u32 4294901760, %v119_v32  ;;  %v766_v45 = vsub.f32 %v25_v18, %v727_v29 }
   0xb   :  { %275 = vmatpush.msra.mxu3 %v675_v9  ;;  %v768_v46 = vand.u32 4294901760, %v23_v36  ;;  %v148_v47 = vand.u32 4294901760, %v743_v34  ;;  %v126_v49 = vand.u32 4294901760, %v125_v39  ;;  %v137_v50 = vsub.f32 %v717_v25, %v136_v40  ;;  %v34_v39 = vld [vmem:[%s1039_s1 + $0x80] sm:$0xff] }
   0xc   :  { %64 = vmatpush.msra.mxu0 %v677_v10  ;;  %109 = vmatpush.msra.mxu1 %v108_v37  ;;  %v781_v51 = vsub.f32 %v24_v26, %v745_v35  ;;  %v783_v52 = vand.u32 4294901760, %v22_v42  ;;  %v143_v53 = vsub.f32 %v725_v28, %v142_v41  ;;  %v132_v55 = vand.u32 4294901760, %v131_v44 }
   0xd   :  { %220 = vmatpush.msra.mxu2 %v704_v19  ;;  %277 = vmatpush.msra.mxu3 %v677_v10  ;;  %v795_v56 = vsub.f32 %v23_v36, %v768_v46  ;;  %v797_v57 = vand.u32 4294901760, %v21_v48  ;;  %v1049_v58 = vand.u32 4294901760, %v766_v45  ;;  %v149_v59 = vsub.f32 %v743_v34, %v148_v47 }
   0xe   :  { %66 = vmatpush.msra.mxu0 %v679_v11  ;;  %115 = vmatpush.msra.mxu1 %v114_v38  ;;  %v138_v61 = vand.u32 4294901760, %v137_v50  ;;  %v810_v62 = vsub.f32 %v22_v42, %v783_v52  ;;  %v812_v63 = vand.u32 4294901760, %v20_v54  ;;  %v1047_v0 = vand.u32 4294901760, %v781_v51 }
   0xf   :  { %223 = vmatpush.msra.mxu2 %v707_v20  ;;  %279 = vmatpush.msra.mxu3 %v679_v11  ;;  %v144_v6 = vand.u32 4294901760, %v143_v53  ;;  %v155_v8 = vsub.f32 %v766_v45, %v1049_v58  ;;  %v831_v12 = vsub.f32 %v21_v48, %v797_v57  ;;  %v833_v13 = vand.u32 4294901760, %v19_v60  ;;  %v16_v53 = vld [vmem:[%s1040_s0 + $0x10] sm:$0xff] }
  0x10   :  { %68 = vmatpush.msra.mxu0 %v698_v17  ;;  %121 = vmatpush.msra.mxu1 %v120_v43  ;;  %v1045_v18 = vand.u32 4294901760, %v795_v56  ;;  %v150_v26 = vand.u32 4294901760, %v149_v59  ;;  %v838_v30 = vand.u32 4294901760, %v14_v1  ;;  %v840_v31 = vand.u32 4294901760, %v35_v2 }
  0x11   :  { %226 = vmatpush.msra.mxu2 %v717_v25  ;;  %281 = vmatpush.msra.mxu3 %v698_v17  ;;  %v161_v32 = vsub.f32 %v781_v51, %v1047_v0  ;;  %v847_v36 = vsub.f32 %v20_v54, %v812_v63  ;;  %v849_v37 = vand.u32 4294901760, %v18_v7  ;;  %v1044_v38 = vand.u32 4294901760, %v810_v62 }
  0x12   :  { %70 = vmatpush.msra.mxu0 %v709_v21  ;;  %127 = vmatpush.msra.mxu1 %v126_v49  ;;  %v156_v42 = vand.u32 4294901760, %v155_v8  ;;  %v167_v43 = vsub.f32 %v795_v56, %v1045_v18  ;;  %v862_v44 = vsub.f32 %v19_v60, %v833_v13  ;;  %v1043_v48 = vand.u32 4294901760, %v831_v12 }
  0x13   :  { %229 = vmatpush.msra.mxu2 %v725_v28  ;;  %283 = vmatpush.msra.mxu3 %v709_v21  ;;  %v868_v49 = vsub.f32 %v14_v1, %v838_v30  ;;  %v871_v50 = vsub.f32 %v35_v2, %v840_v31  ;;  %v876_v54 = vand.u32 4294901760, %v34_v39  ;;  %v173_v59 = vsub.f32 %v810_v62, %v1044_v38 }
  0x14   :  { %72 = vmatpush.msra.mxu0 %v727_v29  ;;  %133 = vmatpush.msra.mxu1 %v132_v55  ;;  %v162_v55 = vand.u32 4294901760, %v161_v32  ;;  %v883_v60 = vsub.f32 %v18_v7, %v849_v37  ;;  %v168_v1 = vand.u32 4294901760, %v167_v43  ;;  %v179_v2 = vsub.f32 %v831_v12, %v1043_v48 }
  0x15   :  { %232 = vmatpush.msra.mxu2 %v743_v34  ;;  %285 = vmatpush.msra.mxu3 %v727_v29  ;;  %v893_v8 = vand.u32 4294901760, %v16_v53  ;;  %v89_v7 = vand.u32 4294901760, %v868_v49  ;;  %v902_v32 = vsub.f32 %v34_v39, %v876_v54  ;;  %v174_v43 = vand.u32 4294901760, %v173_v59 }
  0x16   :  { %74 = vmatpush.msra.mxu0 %v745_v35  ;;  %139 = vmatpush.msra.mxu1 %v138_v61  ;;  %v1046_v61 = vand.u32 4294901760, %v847_v36  ;;  %v1050_v38 = vand.u32 4294901760, %v883_v60  ;;  %v180_v39 = vand.u32 4294901760, %v179_v2  ;;  %v1051_v25 = vand.u32 4294901760, %v766_v45 }
  0x17   :  { %235 = vmatpush.msra.mxu2 %v766_v45  ;;  %287 = vmatpush.msra.mxu3 %v745_v35  ;;  %v96_v0 = vsub.f32 %v16_v53, %v893_v8  ;;  %v1053_v34 = vand.u32 4294901760, %v795_v56 }
  0x18   :  { %76 = vmatpush.msra.mxu0 %v768_v46  ;;  %145 = vmatpush.msra.mxu1 %v144_v6  ;;  %v1048_v6 = vand.u32 4294901760, %v862_v44  ;;  %v185_v48 = vsub.f32 %v847_v36, %v1046_v61  ;;  %v90_v61 = vsub.f32 %v868_v49, %v89_v7 }
  0x19   :  { %238 = vmatpush.msra.mxu2 %v781_v51  ;;  %289 = vmatpush.msra.mxu3 %v768_v46  ;;  %v97_v58 = vand.u32 4294901760, %v96_v0 }
  0x1a   :  { %78 = vmatpush.msra.mxu0 %v783_v52  ;;  %151 = vmatpush.msra.mxu1 %v150_v26  ;;  %v899_v26 = vand.u32 4294901760, %v871_v50  ;;  %v191_v18 = vsub.f32 %v862_v44, %v1048_v6  ;;  %v186_v2 = vand.u32 4294901760, %v185_v48 }
  0x1b   :  { %241 = vmatpush.msra.mxu2 %v795_v56  ;;  %291 = vmatpush.msra.mxu3 %v783_v52 }
  0x1c   :  { %80 = vmatpush.msra.mxu0 %v797_v57  ;;  %157 = vmatpush.msra.mxu1 %v156_v42  ;;  %v15_v42 = vld [vmem:[%s1040_s0 + $0x8] sm:$0xff]  ;;  %v479_v59 = vsub.f32 %v871_v50, %v899_v26  ;;  %v192_v53 = vand.u32 4294901760, %v191_v18 }
  0x1d   :  { %244 = vmatpush.msra.mxu2 %v810_v62  ;;  %293 = vmatpush.msra.mxu3 %v797_v57 }
  0x1e   :  { %82 = vmatpush.msra.mxu0 %v812_v63  ;;  %163 = vmatpush.msra.mxu1 %v162_v55  ;;  %v50_v55 = vsel %vm48_vm0, %v15_v42, 0  ;;  %v197_v42 = vsub.f32 %v883_v60, %v1050_v38  ;;  %v480_v48 = vand.u32 4294901760, %v479_v59 }
  0x1f   :  { %247 = vmatpush.msra.mxu2 %v831_v12  ;;  %295 = vmatpush.msra.mxu3 %v812_v63  ;;  %v935_v6 = vand.u32 4294901760, %v50_v55 }
  0x20   :  { %84 = vmatpush.msra.mxu0 %v833_v13  ;;  %169 = vmatpush.msra.mxu1 %v168_v1  ;;  %v926_v1 = vand.u32 4294901760, %v902_v32 }
  0x21   :  { %250 = vmatpush.msra.mxu2 %v847_v36  ;;  %297 = vmatpush.msra.mxu3 %v833_v13  ;;  %v951_v15 = vsub.f32 %v50_v55, %v935_v6 }
  0x22   :  { %86 = vmatpush.msra.mxu0 %v849_v37  ;;  %175 = vmatpush.msra.mxu1 %v174_v43  ;;  %v91_v43 = vand.u32 4294901760, %v90_v61  ;;  %v485_v38 = vsub.f32 %v902_v32, %v926_v1  ;;  %v98_v61 = vsub.f32 %v96_v0, %v97_v58 }
  0x23   :  { %253 = vmatpush.msra.mxu2 %v862_v44  ;;  %299 = vmatpush.msra.mxu3 %v849_v37  ;;  %v447_v16 = vand.u32 4294901760, %v951_v15 }
  0x24   :  { %316 = vmatpush.msrb.mxu0 %v106_v22  ;;  %181 = vmatpush.msra.mxu1 %v180_v39  ;;  %v198_v22 = vand.u32 4294901760, %v197_v42  ;;  %v486_v18 = vand.u32 4294901760, %v485_v38  ;;  %v36_v38 = vld [vmem:[%s1041_s2] sm:$0xff]  ;;  %v99_v19 = vand.u32 4294901760, %v98_v61 }
  0x25   :  { %256 = vmatpush.msra.mxu2 %v883_v60  ;;  %303 = vmatmul.f32.vlgmr.msra.gmra.mxu3 %v89_v7  ;;  %v448_v20 = vsub.f32 %v951_v15, %v447_v16 }
  0x26   :  { %320 = vmatpush.msrb.mxu0 %v112_v23  ;;  %187 = vmatpush.msra.mxu1 %v186_v2  ;;  %v53_v23 = vsel %vm48_vm0, %v17_v14, 0 }
  0x27   :  { %259 = vmatmul.f32.vlgmr.msra.gmra.mxu2 %v868_v49  ;;  %481 = vmatpush.msrb.mxu3 %v480_v48 }
  0x28   :  { %442 = vmatpush.msrb.mxu2 %v840_v31  ;;  %324 = vmatpush.msrb.mxu0 %v118_v24  ;;  %v959_v24 = vand.u32 4294901760, %v53_v23 }
  0x29   :  { %193 = vmatpush.msra.mxu1 %v192_v53  ;;  %92 = vmatmul.f32.vlgmr.msra.gmra.mxu0 %v91_v43 }
  0x2a   :  { %328 = vmatpush.msrb.mxu0 %v124_v27  ;;  %444 = vmatpush.msrb.mxu2 %v876_v54  ;;  %v630_v27 = vmov 0  }
  0x2b   :  { %199 = vmatpush.msra.mxu1 %v198_v22  ;;  %487 = vmatpush.msrb.mxu3 %v486_v18 }
  0x2c   :  { %201 = vmatmul.f32.vlgmr.msra.gmra.mxu1 %v838_v30  ;;  %332 = vmatpush.msrb.mxu0 %v130_v33  ;;  %v454_v33 = vsub.f32 %v53_v23, %v959_v24 }
  0x2d   :  { %387 = vmatpush.msrb.mxu1 %v660_v3  ;;  %629 = vset.pattern.permute.xlu0 %v630_v27  ;;  %v449_v3 = vand.u32 4294901760, %v448_v20 }
  0x2e   :  { %336 = vmatpush.msrb.mxu0 %v136_v40  ;;  %40 = vperm.xlu0 %629, %v36_v38  }
  0x2f   :  { %389 = vmatpush.msrb.mxu1 %v662_v4  ;;  %264 = vmatmul.f32.gmra.mxu2 %v96_v0  ;;  %v455_v4 = vand.u32 4294901760, %v454_v33 }
  0x30   :  { %340 = vmatpush.msrb.mxu0 %v142_v41  ;;  %309 = vmatmul.f32.gmra.mxu3 %v97_v58  ;;  %v1058_v41 = vand.u32 4294901760, %v883_v60 }
  0x31   :  { %391 = vmatpush.msrb.mxu1 %v664_v5  ;;  %100 = vmatmul.f32.gmra.mxu0 %v99_v19  ;;  %v37_v5 = vld [vmem:[%s1041_s2 + $0x8] sm:$0xff]  ;;  %v456_v28 = vsub.f32 %v454_v33, %v455_v4 }
  0x32   :  { %344 = vmatpush.msrb.mxu0 %v148_v47  ;;  %513 = vmatpush.msra.mxu2 %v871_v50 }
  0x33   :  { %393 = vmatpush.msrb.mxu1 %v675_v9  ;;  %543 = vmatpush.msra.mxu3 %v840_v31  ;;  %v1052_v9 = vand.u32 4294901760, %v781_v51  ;;  %v457_v40 = vand.u32 4294901760, %v456_v28 }
  0x34   :  { %205 = vmatmul.f32.gmra.mxu1 %v893_v8  ;;  %348 = vmatpush.msrb.mxu0 %v1051_v25 }
  0x35   :  { %395 = vmatpush.msrb.mxu1 %v677_v10  ;;  %516 = vmatpush.msra.mxu2 %v902_v32  ;;  %v1054_v10 = vand.u32 4294901760, %v810_v62 }
  0x36   :  { %352 = vmatpush.msrb.mxu0 %v1052_v9  ;;  %45 = vperm.xlu0 %629, %v37_v5  }
  0x37   :  { %397 = vmatpush.msrb.mxu1 %v679_v11  ;;  %450 = vmatmul.f32.vlgmr.msrb.gmra.mxu2 %v449_v3  ;;  %v1055_v11 = vand.u32 4294901760, %v831_v12 }
  0x38   :  { %356 = vmatpush.msrb.mxu0 %v1053_v34  ;;  %489 = vmatmul.f32.vlgmr.msrb.gmra.mxu3 %v935_v6 }
  0x39   :  { %399 = vmatpush.msrb.mxu1 %v698_v17  ;;  %624 = vmatpush.msrb.mxu2 %v899_v26  ;;  %v1056_v17 = vand.u32 4294901760, %v847_v36 }
  0x3a   :  { %360 = vmatpush.msrb.mxu0 %v1054_v10  ;;  %545 = vmatpush.msra.mxu3 %v876_v54 }
  0x3b   :  { %401 = vmatpush.msrb.mxu1 %v709_v21  ;;  %625 = vmatpush.msrb.mxu2 %v926_v1  ;;  %v1057_v21 = vand.u32 4294901760, %v862_v44 }
  0x3c   :  { %364 = vmatpush.msrb.mxu0 %v1055_v11  ;;  %626 = vmatpush.msrb.mxu3 %v840_v31 }
  0x3d   :  { %403 = vmatpush.msrb.mxu1 %v727_v29 }
  0x3e   :  { %368 = vmatpush.msrb.mxu0 %v1056_v17  ;;  %627 = vmatpush.msrb.mxu3 %v876_v54 }
  0x3f   :  { %405 = vmatpush.msrb.mxu1 %v745_v35  ;;  %458 = vmatmul.f32.gmra.mxu2 %v457_v40 }
  0x40   :  { %372 = vmatpush.msrb.mxu0 %v1057_v21  ;;  %493 = vmatmul.f32.gmra.mxu3 %v959_v24 }
  0x41   :  { %407 = vmatpush.msrb.mxu1 %v768_v46 }
  0x42   :  { %376 = vmatpush.msrb.mxu0 %v1058_v41 }
  0x43   :  { %409 = vmatpush.msrb.mxu1 %v783_v52  ;;  %378 = vmatmul.f32.vlgmr.msrb.gmra.mxu0 %v838_v30 }
  0x44   :  { %576 = vmatpush.msra.mxu0 %v899_v26 }
  0x45   :  { %411 = vmatpush.msrb.mxu1 %v797_v57 }
  0x46   :  { %580 = vmatpush.msra.mxu0 %v926_v1 }
  0x47   :  { %413 = vmatpush.msrb.mxu1 %v812_v63  ;;  %519 = vmatmul.f32.vlgmr.msra.gmra.mxu2 %v951_v15 }
  0x48   :  { %549 = vmatmul.f32.vlgmr.msra.gmra.mxu3 %v447_v16 }
  0x49   :  { %415 = vmatpush.msrb.mxu1 %v833_v13 }
  0x4b   :  { %417 = vmatpush.msrb.mxu1 %v849_v37  ;;  %382 = vmatmul.f32.gmra.mxu0 %v893_v8 }
  0x4c   :  { %419 = vmatmul.f32.vlgmr.msrb.gmra.mxu1 %v838_v30 }
  0x4d   :  { %605 = vmatpush.msra.mxu1 %v840_v31 }
  0x4f   :  { %607 = vmatpush.msra.mxu1 %v876_v54  ;;  %524 = vmatmul.f32.gmra.mxu2 %v454_v33 }
  0x50   :  { %555 = vmatmul.f32.gmra.mxu3 %v455_v4 }
  0x53   :  { %582 = vmatmul.f32.vlgmr.msra.gmra.mxu0 %v935_v6 }
  0x54   :  { %423 = vmatmul.f32.gmra.mxu1 %v893_v8 }
  0x57   :  { %586 = vmatmul.f32.vlgmr.msrb.gmra.mxu2 %v959_v24 }
  0x58   :  { %613 = vmatmul.f32.vlgmr.msrb.gmra.mxu3 %v959_v24 }
  0x5c   :  { %609 = vmatmul.f32.vlgmr.msra.gmra.mxu1 %v935_v6 }
  0xa0   :  { %v41_v47 = vpop.permute.xlu0 %40 }
  0xa6   :  { %v93_v45 = vpop.f32.mrf.mxu0 }
  0xa7   :  { %v94_v56 = vadd.f32 %v93_v45, %v41_v47 }
  0xa8   :  { %v304_v35 = vpop.f32.mrf.mxu3  ;;  %v46_v0 = vpop.permute.xlu0 %45 }
  0xa9   :  { %v202_v52 = vpop.f32.mrf.mxu1 }
  0xaa   :  { %v260_v29 = vpop.f32.mrf.mxu2  ;;  %v203_v63 = vadd.f32 %v202_v52, %v94_v56 }
  0xac   :  { %v261_v13 = vadd.f32 %v260_v29, %v203_v63 }
  0xae   :  { %v101_v57 = vpop.f32.mrf.mxu0  ;;  %v305_v44 = vadd.f32 %v304_v35, %v261_v13 }
  0xaf   :  { %v102_v30 = vadd.f32 %v101_v57, %v46_v0 }
  0xb1   :  { %v206_v12 = vpop.f32.mrf.mxu1 }
  0xb2   :  { %v265_v46 = vpop.f32.mrf.mxu2  ;;  %v207_v49 = vadd.f32 %v206_v12, %v102_v30 }
  0xb3   :  { %v310_v51 = vpop.f32.mrf.mxu3 }
  0xb4   :  { %v266_v60 = vadd.f32 %v265_v46, %v207_v49 }
  0xb6   :  { %v311_v39 = vadd.f32 %v310_v51, %v266_v60 }
  0xba   :  { %v451_v58 = vpop.f32.mrf.mxu2 }
  0xbb   :  { %v490_v62 = vpop.f32.mrf.mxu3 }
  0xc0   :  { %v379_v31 = vpop.f32.mrf.mxu0 }
  0xc1   :  { %v380_v50 = vadd.f32 %v379_v31, %v305_v44 }
  0xc2   :  { %v459_v36 = vpop.f32.mrf.mxu2 }
  0xc3   :  { %v494_v37 = vpop.f32.mrf.mxu3 }
  0xc8   :  { %v383_v26 = vpop.f32.mrf.mxu0 }
  0xc9   :  { %v420_v54 = vpop.f32.mrf.mxu1  ;;  %v384_v59 = vadd.f32 %v383_v26, %v311_v39 }
  0xca   :  { %v421_v6 = vadd.f32 %v420_v54, %v380_v50  ;;  %v520_v8 = vpop.f32.mrf.mxu2 }
  0xcb   :  { %v550_v32 = vpop.f32.mrf.mxu3 }
  0xcc   :  { %v452_v7 = vadd.f32 %v451_v58, %v421_v6 }
  0xce   :  { %v491_v55 = vadd.f32 %v490_v62, %v452_v7 }
  0xd0   :  { %v521_v1 = vadd.f32 %v520_v8, %v491_v55  ;;  %v583_v14 = vpop.f32.mrf.mxu0 }
  0xd1   :  { %v424_v2 = vpop.f32.mrf.mxu1 }
  0xd2   :  { %v425_v42 = vadd.f32 %v424_v2, %v384_v59  ;;  %v525_v53 = vpop.f32.mrf.mxu2  ;;  %v551_v48 = vadd.f32 %v550_v32, %v521_v1 }
  0xd3   :  { %v556_v22 = vpop.f32.mrf.mxu3 }
  0xd4   :  { %v460_v43 = vadd.f32 %v459_v36, %v425_v42  ;;  %v584_v18 = vadd.f32 %v583_v14, %v551_v48 }
  0xd6   :  { %v495_v15 = vadd.f32 %v494_v37, %v460_v43 }
  0xd8   :  { %v526_v23 = vadd.f32 %v525_v53, %v495_v15 }
  0xd9   :  { %v610_v61 = vpop.f32.mrf.mxu1 }
  0xda   :  { %v557_v16 = vadd.f32 %v556_v22, %v526_v23  ;;  %v611_v24 = vadd.f32 %v610_v61, %v584_v18  ;;  %v587_v38 = vpop.f32.mrf.mxu2 }
  0xdb   :  { %v614_v27 = vpop.f32.mrf.mxu3 }
  0xdc   :  { %618 = vst.msk [vmem:[%s1042_s3] sm:$0xff] %vm617_vm1, %v611_v24  ;;  %v588_v19 = vadd.f32 %v587_v38, %v557_v16 }
  0xde   :  { %v615_v20 = vadd.f32 %v614_v27, %v588_v19 }
  0xe0   :  { %619 = vst.msk [vmem:[%s1042_s3 + $0x8] sm:$0xff] %vm617_vm1, %v615_v20 }

// kernel: backbone_with_fpn_forward.14
= control target key start
LH: loop header
LB: loop body
LE: loop exit
PB: predicated region body
PF: predicated region fallthrough
CT: control target
= control target key end

     0   :  { %vm33_vm0 = vcmask 130048   ;;  %v247_v3 = vmov 0   ;;  %vm234_vm1 = vcmask 261120   ;;  %s303_s1 = inlined_call_operand.vmem [shape: f32[16,32], index: 1, kind: input, shape index: {}]   ;;  %s304_s0 = inlined_call_operand.vmem [shape: f32[16,16], index: 0, kind: input, shape index: {}]   ;;  %s305_s2 = inlined_call_operand.vmem [shape: f32[16,1], index: 2, kind: input, shape index: {}]   ;;  %s306_s3 = inlined_call_operand.vmem [shape: f32[16,32], index: 3, kind: input, shape index: {}]   ;;  %s307_s4 = inlined_call_operand.vmem [shape: f32[16,32], index: 4, kind: output, shape index: {}]  }
   0x1   :  { %v20_v0 = vld [vmem:[%s303_s1 + $0x8] sm:$0xff]  ;;  %v19_v1 = vld [vmem:[%s303_s1] sm:$0xff]  ;;  %246 = vset.pattern.permute.xlu0 %v247_v3 }
   0x2   :  { %v18_v2 = vld [vmem:[%s304_s0 + $0x8] sm:$0xff]  ;;  %v54_v4 = vand.u32 4294901760, %v20_v0  ;;  %v56_v5 = vand.u32 4294901760, %v19_v1  ;;  %v17_v7 = vld [vmem:[%s304_s0] sm:$0xff] }
   0x3   :  { %v38_v6 = vsel %vm33_vm0, %v18_v2, 0  ;;  %v21_v8 = vld [vmem:[%s305_s2] sm:$0xff]  ;;  %v35_v10 = vsel %vm33_vm0, %v17_v7, 0  ;;  %v22_v22 = vld [vmem:[%s305_s2 + $0x8] sm:$0xff] }
   0x4   :  { %v66_v9 = vand.u32 4294901760, %v38_v6  ;;  %25 = vperm.xlu0 %246, %v21_v8   ;;  %241 = vmatpush.msra.mxu2 %v54_v4  ;;  %v90_v11 = vsub.f32 %v20_v0, %v54_v4  ;;  %v96_v12 = vsub.f32 %v19_v1, %v56_v5  ;;  %v58_v13 = vand.u32 4294901760, %v35_v10  ;;  %v230_v45 = vld [vmem:[%s306_s3] sm:$0xff]  ;;  %v231_v56 = vld [vmem:[%s306_s3 + $0x8] sm:$0xff] }
   0x5   :  { %55 = vmatpush.msra.mxu0 %v54_v4 }
   0x6   :  { %v67_v14 = vsub.f32 %v38_v6, %v66_v9  ;;  %242 = vmatpush.msra.mxu2 %v56_v5  ;;  %v91_v15 = vand.u32 4294901760, %v90_v11  ;;  %v97_v16 = vand.u32 4294901760, %v96_v12  ;;  %v59_v17 = vsub.f32 %v35_v10, %v58_v13 }
   0x7   :  { %57 = vmatpush.msra.mxu0 %v56_v5 }
   0x8   :  { %v68_v18 = vand.u32 4294901760, %v67_v14  ;;  %126 = vmatpush.msrb.mxu2 %v90_v11  ;;  %v92_v19 = vsub.f32 %v90_v11, %v91_v15  ;;  %v98_v20 = vsub.f32 %v96_v12, %v97_v16  ;;  %v60_v21 = vand.u32 4294901760, %v59_v17 }
   0x9   :  { %189 = vmatpush.msrb.mxu0 %v91_v15 }
   0xa   :  { %v69_v23 = vsub.f32 %v67_v14, %v68_v18  ;;  %129 = vmatpush.msrb.mxu2 %v96_v12  ;;  %v93_v24 = vand.u32 4294901760, %v92_v19  ;;  %v99_v25 = vand.u32 4294901760, %v98_v20  ;;  %v61_v26 = vsub.f32 %v59_v17, %v60_v21 }
   0xb   :  { %193 = vmatpush.msrb.mxu0 %v97_v16 }
   0xc   :  { %v70_v27 = vand.u32 4294901760, %v69_v23  ;;  %30 = vperm.xlu0 %246, %v22_v22   ;;  %243 = vmatpush.msra.mxu3 %v93_v24  ;;  %v62_v28 = vand.u32 4294901760, %v61_v26 }
   0xd   :  { %94 = vmatpush.msra.mxu1 %v93_v24 }
   0xe   :  { %71 = vmatmul.f32.vlgmr.msra.gmra.mxu2 %v70_v27  ;;  %244 = vmatpush.msra.mxu3 %v99_v25 }
   0xf   :  { %63 = vmatmul.f32.vlgmr.msra.gmra.mxu0 %v62_v28  ;;  %106 = vmatmul.f32.vlgmr.msra.gmra.mxu3 %v66_v9 }
  0x10   :  { %100 = vmatpush.msra.mxu1 %v99_v25  ;;  %156 = vmatpush.msrb.mxu3 %v54_v4 }
  0x11   :  { %102 = vmatmul.f32.vlgmr.msra.gmra.mxu1 %v58_v13 }
  0x12   :  { %218 = vmatpush.msrb.mxu1 %v54_v4  ;;  %158 = vmatpush.msrb.mxu3 %v56_v5 }
  0x14   :  { %220 = vmatpush.msrb.mxu1 %v56_v5 }
  0x16   :  { %132 = vmatmul.f32.vlgmr.msrb.gmra.mxu2 %v59_v17 }
  0x17   :  { %195 = vmatmul.f32.vlgmr.msrb.gmra.mxu0 %v58_v13  ;;  %162 = vmatmul.f32.vlgmr.msrb.gmra.mxu3 %v60_v21 }
  0x19   :  { %222 = vmatmul.f32.vlgmr.msrb.gmra.mxu1 %v58_v13 }
  0x1e   :  { %137 = vmatmul.f32.gmra.mxu2 %v67_v14 }
  0x1f   :  { %199 = vmatmul.f32.gmra.mxu0 %v66_v9  ;;  %168 = vmatmul.f32.gmra.mxu3 %v68_v18 }
  0x21   :  { %226 = vmatmul.f32.gmra.mxu1 %v66_v9 }
  0x76   :  { %v26_v29 = vpop.permute.xlu0 %25 }
  0x7e   :  { %v31_v36 = vpop.permute.xlu0 %30 }
  0x8c   :  { %v64_v30 = vpop.f32.mrf.mxu0 }
  0x8d   :  { %v65_v33 = vadd.f32 %v64_v30, %v26_v29 }
  0x8e   :  { %v103_v32 = vpop.f32.mrf.mxu1 }
  0x8f   :  { %v104_v35 = vadd.f32 %v103_v32, %v65_v33 }
  0x91   :  { %v72_v31 = vpop.f32.mrf.mxu2 }
  0x92   :  { %v107_v34 = vpop.f32.mrf.mxu3  ;;  %v73_v42 = vadd.f32 %v72_v31, %v31_v36 }
  0x94   :  { %v196_v38 = vpop.f32.mrf.mxu0  ;;  %v108_v46 = vadd.f32 %v107_v34, %v73_v42 }
  0x96   :  { %v223_v41 = vpop.f32.mrf.mxu1 }
  0x99   :  { %v133_v37 = vpop.f32.mrf.mxu2 }
  0x9a   :  { %v134_v39 = vadd.f32 %v133_v37, %v104_v35  ;;  %v163_v40 = vpop.f32.mrf.mxu3 }
  0x9c   :  { %v164_v43 = vadd.f32 %v163_v40, %v134_v39  ;;  %v200_v52 = vpop.f32.mrf.mxu0 }
  0x9e   :  { %v197_v44 = vadd.f32 %v196_v38, %v164_v43  ;;  %v227_v54 = vpop.f32.mrf.mxu1 }
  0xa0   :  { %v224_v47 = vadd.f32 %v223_v41, %v197_v44 }
  0xa1   :  { %v138_v48 = vpop.f32.mrf.mxu2 }
  0xa2   :  { %v232_v49 = vadd.f32 %v230_v45, %v224_v47  ;;  %v139_v50 = vadd.f32 %v138_v48, %v108_v46  ;;  %v169_v51 = vpop.f32.mrf.mxu3 }
  0xa4   :  { %235 = vst.msk [vmem:[%s307_s4] sm:$0xff] %vm234_vm1, %v232_v49  ;;  %v170_v53 = vadd.f32 %v169_v51, %v139_v50 }
  0xa6   :  { %v201_v55 = vadd.f32 %v200_v52, %v170_v53 }
  0xa8   :  { %v228_v57 = vadd.f32 %v227_v54, %v201_v55 }
  0xaa   :  { %v233_v58 = vadd.f32 %v231_v56, %v228_v57 }
  0xac   :  { %236 = vst.msk [vmem:[%s307_s4 + $0x8] sm:$0xff] %vm234_vm1, %v233_v58 }

// kernel: backbone_with_fpn_forward.15
= control target key start
LH: loop header
LB: loop body
LE: loop exit
PB: predicated region body
PF: predicated region fallthrough
CT: control target
= control target key end

     0   :  { %vm48_vm0 = vcmask 130048   ;;  %vm617_vm1 = vcmask 261120   ;;  %s1039_s1 = inlined_call_operand.vmem [shape: f32[144,32], index: 1, kind: input, shape index: {}]   ;;  %s1040_s0 = inlined_call_operand.vmem [shape: f32[16,144], index: 0, kind: input, shape index: {}]   ;;  %s1041_s2 = inlined_call_operand.vmem [shape: f32[16,1], index: 2, kind: input, shape index: {}]   ;;  %s1042_s3 = inlined_call_operand.vmem [shape: f32[16,32], index: 3, kind: output, shape index: {}]  }
   0x1   :  { %v33_v0 = vld [vmem:[%s1039_s1 + $0x78] sm:$0xff]  ;;  %v32_v1 = vld [vmem:[%s1039_s1 + $0x70] sm:$0xff]  ;;  %v31_v2 = vld [vmem:[%s1039_s1 + $0x68] sm:$0xff] }
   0x2   :  { %v660_v3 = vand.u32 4294901760, %v33_v0  ;;  %v662_v4 = vand.u32 4294901760, %v32_v1  ;;  %v664_v5 = vand.u32 4294901760, %v31_v2  ;;  %v30_v6 = vld [vmem:[%s1039_s1 + $0x60] sm:$0xff]  ;;  %v29_v7 = vld [vmem:[%s1039_s1 + $0x58] sm:$0xff]  ;;  %v28_v8 = vld [vmem:[%s1039_s1 + $0x50] sm:$0xff] }
   0x3   :  { %v675_v9 = vand.u32 4294901760, %v30_v6  ;;  %v677_v10 = vand.u32 4294901760, %v29_v7  ;;  %v679_v11 = vand.u32 4294901760, %v28_v8  ;;  %v27_v12 = vld [vmem:[%s1039_s1 + $0x48] sm:$0xff]  ;;  %v26_v13 = vld [vmem:[%s1039_s1 + $0x40] sm:$0xff]  ;;  %v25_v18 = vld [vmem:[%s1039_s1 + $0x38] sm:$0xff] }
   0x4   :  { %56 = vmatpush.msra.mxu0 %v660_v3  ;;  %v689_v14 = vsub.f32 %v33_v0, %v660_v3  ;;  %v692_v15 = vsub.f32 %v32_v1, %v662_v4  ;;  %269 = vmatpush.msra.mxu3 %v660_v3  ;;  %v696_v16 = vsub.f32 %v31_v2, %v664_v5  ;;  %v698_v17 = vand.u32 4294901760, %v27_v12  ;;  %v24_v26 = vld [vmem:[%s1039_s1 + $0x30] sm:$0xff]  ;;  %v23_v36 = vld [vmem:[%s1039_s1 + $0x28] sm:$0xff]  ;;  %v22_v42 = vld [vmem:[%s1039_s1 + $0x20] sm:$0xff] }
   0x5   :  { %v704_v19 = vsub.f32 %v30_v6, %v675_v9  ;;  %v707_v20 = vsub.f32 %v29_v7, %v677_v10  ;;  %v709_v21 = vand.u32 4294901760, %v26_v13  ;;  %v717_v25 = vsub.f32 %v28_v8, %v679_v11  ;;  %v21_v48 = vld [vmem:[%s1039_s1 + $0x18] sm:$0xff]  ;;  %v20_v54 = vld [vmem:[%s1039_s1 + $0x10] sm:$0xff]  ;;  %v19_v60 = vld [vmem:[%s1039_s1 + $0x8] sm:$0xff] }
   0x6   :  { %58 = vmatpush.msra.mxu0 %v662_v4  ;;  %211 = vmatpush.msra.mxu2 %v689_v14  ;;  %v106_v22 = vand.u32 4294901760, %v689_v14  ;;  %v112_v23 = vand.u32 4294901760, %v692_v15  ;;  %v118_v24 = vand.u32 4294901760, %v696_v16  ;;  %v725_v28 = vsub.f32 %v27_v12, %v698_v17  ;;  %v14_v1 = vld [vmem:[%s1040_s0] sm:$0xff]  ;;  %v35_v2 = vld [vmem:[%s1039_s1 + $0x88] sm:$0xff] }
   0x7   :  { %271 = vmatpush.msra.mxu3 %v662_v4  ;;  %v124_v27 = vand.u32 4294901760, %v704_v19  ;;  %v727_v29 = vand.u32 4294901760, %v25_v18  ;;  %v130_v33 = vand.u32 4294901760, %v707_v20  ;;  %v743_v34 = vsub.f32 %v26_v13, %v709_v21  ;;  %v18_v7 = vld [vmem:[%s1039_s1] sm:$0xff] }
   0x8   :  { %60 = vmatpush.msra.mxu0 %v664_v5  ;;  %214 = vmatpush.msra.mxu2 %v692_v15  ;;  %v107_v30 = vsub.f32 %v689_v14, %v106_v22  ;;  %v113_v31 = vsub.f32 %v692_v15, %v112_v23  ;;  %v119_v32 = vsub.f32 %v696_v16, %v118_v24  ;;  %v745_v35 = vand.u32 4294901760, %v24_v26  ;;  %v17_v14 = vld [vmem:[%s1040_s0 + $0x18] sm:$0xff] }
   0x9   :  { %273 = vmatpush.msra.mxu3 %v664_v5  ;;  %v125_v39 = vsub.f32 %v704_v19, %v124_v27  ;;  %v136_v40 = vand.u32 4294901760, %v717_v25  ;;  %v142_v41 = vand.u32 4294901760, %v725_v28  ;;  %v131_v44 = vsub.f32 %v707_v20, %v130_v33 }
   0xa   :  { %62 = vmatpush.msra.mxu0 %v675_v9  ;;  %217 = vmatpush.msra.mxu2 %v696_v16  ;;  %v108_v37 = vand.u32 4294901760, %v107_v30  ;;  %v114_v38 = vand.u32 4294901760, %v113_v31  ;;  %v120_v43 = vand.u32 4294901760, %v119_v32  ;;  %v766_v45 = vsub.f32 %v25_v18, %v727_v29 }
   0xb   :  { %275 = vmatpush.msra.mxu3 %v675_v9  ;;  %v768_v46 = vand.u32 4294901760, %v23_v36  ;;  %v148_v47 = vand.u32 4294901760, %v743_v34  ;;  %v126_v49 = vand.u32 4294901760, %v125_v39  ;;  %v137_v50 = vsub.f32 %v717_v25, %v136_v40  ;;  %v34_v39 = vld [vmem:[%s1039_s1 + $0x80] sm:$0xff] }
   0xc   :  { %64 = vmatpush.msra.mxu0 %v677_v10  ;;  %109 = vmatpush.msra.mxu1 %v108_v37  ;;  %v781_v51 = vsub.f32 %v24_v26, %v745_v35  ;;  %v783_v52 = vand.u32 4294901760, %v22_v42  ;;  %v143_v53 = vsub.f32 %v725_v28, %v142_v41  ;;  %v132_v55 = vand.u32 4294901760, %v131_v44 }
   0xd   :  { %220 = vmatpush.msra.mxu2 %v704_v19  ;;  %277 = vmatpush.msra.mxu3 %v677_v10  ;;  %v795_v56 = vsub.f32 %v23_v36, %v768_v46  ;;  %v797_v57 = vand.u32 4294901760, %v21_v48  ;;  %v1049_v58 = vand.u32 4294901760, %v766_v45  ;;  %v149_v59 = vsub.f32 %v743_v34, %v148_v47 }
   0xe   :  { %66 = vmatpush.msra.mxu0 %v679_v11  ;;  %115 = vmatpush.msra.mxu1 %v114_v38  ;;  %v138_v61 = vand.u32 4294901760, %v137_v50  ;;  %v810_v62 = vsub.f32 %v22_v42, %v783_v52  ;;  %v812_v63 = vand.u32 4294901760, %v20_v54  ;;  %v1047_v0 = vand.u32 4294901760, %v781_v51 }
   0xf   :  { %223 = vmatpush.msra.mxu2 %v707_v20  ;;  %279 = vmatpush.msra.mxu3 %v679_v11  ;;  %v144_v6 = vand.u32 4294901760, %v143_v53  ;;  %v155_v8 = vsub.f32 %v766_v45, %v1049_v58  ;;  %v831_v12 = vsub.f32 %v21_v48, %v797_v57  ;;  %v833_v13 = vand.u32 4294901760, %v19_v60  ;;  %v16_v53 = vld [vmem:[%s1040_s0 + $0x10] sm:$0xff] }
  0x10   :  { %68 = vmatpush.msra.mxu0 %v698_v17  ;;  %121 = vmatpush.msra.mxu1 %v120_v43  ;;  %v1045_v18 = vand.u32 4294901760, %v795_v56  ;;  %v150_v26 = vand.u32 4294901760, %v149_v59  ;;  %v838_v30 = vand.u32 4294901760, %v14_v1  ;;  %v840_v31 = vand.u32 4294901760, %v35_v2 }
  0x11   :  { %226 = vmatpush.msra.mxu2 %v717_v25  ;;  %281 = vmatpush.msra.mxu3 %v698_v17  ;;  %v161_v32 = vsub.f32 %v781_v51, %v1047_v0  ;;  %v847_v36 = vsub.f32 %v20_v54, %v812_v63  ;;  %v849_v37 = vand.u32 4294901760, %v18_v7  ;;  %v1044_v38 = vand.u32 4294901760, %v810_v62 }
  0x12   :  { %70 = vmatpush.msra.mxu0 %v709_v21  ;;  %127 = vmatpush.msra.mxu1 %v126_v49  ;;  %v156_v42 = vand.u32 4294901760, %v155_v8  ;;  %v167_v43 = vsub.f32 %v795_v56, %v1045_v18  ;;  %v862_v44 = vsub.f32 %v19_v60, %v833_v13  ;;  %v1043_v48 = vand.u32 4294901760, %v831_v12 }
  0x13   :  { %229 = vmatpush.msra.mxu2 %v725_v28  ;;  %283 = vmatpush.msra.mxu3 %v709_v21  ;;  %v868_v49 = vsub.f32 %v14_v1, %v838_v30  ;;  %v871_v50 = vsub.f32 %v35_v2, %v840_v31  ;;  %v876_v54 = vand.u32 4294901760, %v34_v39  ;;  %v173_v59 = vsub.f32 %v810_v62, %v1044_v38 }
  0x14   :  { %72 = vmatpush.msra.mxu0 %v727_v29  ;;  %133 = vmatpush.msra.mxu1 %v132_v55  ;;  %v162_v55 = vand.u32 4294901760, %v161_v32  ;;  %v883_v60 = vsub.f32 %v18_v7, %v849_v37  ;;  %v168_v1 = vand.u32 4294901760, %v167_v43  ;;  %v179_v2 = vsub.f32 %v831_v12, %v1043_v48 }
  0x15   :  { %232 = vmatpush.msra.mxu2 %v743_v34  ;;  %285 = vmatpush.msra.mxu3 %v727_v29  ;;  %v893_v8 = vand.u32 4294901760, %v16_v53  ;;  %v89_v7 = vand.u32 4294901760, %v868_v49  ;;  %v902_v32 = vsub.f32 %v34_v39, %v876_v54  ;;  %v174_v43 = vand.u32 4294901760, %v173_v59 }
  0x16   :  { %74 = vmatpush.msra.mxu0 %v745_v35  ;;  %139 = vmatpush.msra.mxu1 %v138_v61  ;;  %v1046_v61 = vand.u32 4294901760, %v847_v36  ;;  %v1050_v38 = vand.u32 4294901760, %v883_v60  ;;  %v180_v39 = vand.u32 4294901760, %v179_v2  ;;  %v1051_v25 = vand.u32 4294901760, %v766_v45 }
  0x17   :  { %235 = vmatpush.msra.mxu2 %v766_v45  ;;  %287 = vmatpush.msra.mxu3 %v745_v35  ;;  %v96_v0 = vsub.f32 %v16_v53, %v893_v8  ;;  %v1053_v34 = vand.u32 4294901760, %v795_v56 }
  0x18   :  { %76 = vmatpush.msra.mxu0 %v768_v46  ;;  %145 = vmatpush.msra.mxu1 %v144_v6  ;;  %v1048_v6 = vand.u32 4294901760, %v862_v44  ;;  %v185_v48 = vsub.f32 %v847_v36, %v1046_v61  ;;  %v90_v61 = vsub.f32 %v868_v49, %v89_v7 }
  0x19   :  { %238 = vmatpush.msra.mxu2 %v781_v51  ;;  %289 = vmatpush.msra.mxu3 %v768_v46  ;;  %v97_v58 = vand.u32 4294901760, %v96_v0 }
  0x1a   :  { %78 = vmatpush.msra.mxu0 %v783_v52  ;;  %151 = vmatpush.msra.mxu1 %v150_v26  ;;  %v899_v26 = vand.u32 4294901760, %v871_v50  ;;  %v191_v18 = vsub.f32 %v862_v44, %v1048_v6  ;;  %v186_v2 = vand.u32 4294901760, %v185_v48 }
  0x1b   :  { %241 = vmatpush.msra.mxu2 %v795_v56  ;;  %291 = vmatpush.msra.mxu3 %v783_v52 }
  0x1c   :  { %80 = vmatpush.msra.mxu0 %v797_v57  ;;  %157 = vmatpush.msra.mxu1 %v156_v42  ;;  %v15_v42 = vld [vmem:[%s1040_s0 + $0x8] sm:$0xff]  ;;  %v479_v59 = vsub.f32 %v871_v50, %v899_v26  ;;  %v192_v53 = vand.u32 4294901760, %v191_v18 }
  0x1d   :  { %244 = vmatpush.msra.mxu2 %v810_v62  ;;  %293 = vmatpush.msra.mxu3 %v797_v57 }
  0x1e   :  { %82 = vmatpush.msra.mxu0 %v812_v63  ;;  %163 = vmatpush.msra.mxu1 %v162_v55  ;;  %v50_v55 = vsel %vm48_vm0, %v15_v42, 0  ;;  %v197_v42 = vsub.f32 %v883_v60, %v1050_v38  ;;  %v480_v48 = vand.u32 4294901760, %v479_v59 }
  0x1f   :  { %247 = vmatpush.msra.mxu2 %v831_v12  ;;  %295 = vmatpush.msra.mxu3 %v812_v63  ;;  %v935_v6 = vand.u32 4294901760, %v50_v55 }
  0x20   :  { %84 = vmatpush.msra.mxu0 %v833_v13  ;;  %169 = vmatpush.msra.mxu1 %v168_v1  ;;  %v926_v1 = vand.u32 4294901760, %v902_v32 }
  0x21   :  { %250 = vmatpush.msra.mxu2 %v847_v36  ;;  %297 = vmatpush.msra.mxu3 %v833_v13  ;;  %v951_v15 = vsub.f32 %v50_v55, %v935_v6 }
  0x22   :  { %86 = vmatpush.msra.mxu0 %v849_v37  ;;  %175 = vmatpush.msra.mxu1 %v174_v43  ;;  %v91_v43 = vand.u32 4294901760, %v90_v61  ;;  %v485_v38 = vsub.f32 %v902_v32, %v926_v1  ;;  %v98_v61 = vsub.f32 %v96_v0, %v97_v58 }
  0x23   :  { %253 = vmatpush.msra.mxu2 %v862_v44  ;;  %299 = vmatpush.msra.mxu3 %v849_v37  ;;  %v447_v16 = vand.u32 4294901760, %v951_v15 }
  0x24   :  { %316 = vmatpush.msrb.mxu0 %v106_v22  ;;  %181 = vmatpush.msra.mxu1 %v180_v39  ;;  %v198_v22 = vand.u32 4294901760, %v197_v42  ;;  %v486_v18 = vand.u32 4294901760, %v485_v38  ;;  %v36_v38 = vld [vmem:[%s1041_s2] sm:$0xff]  ;;  %v99_v19 = vand.u32 4294901760, %v98_v61 }
  0x25   :  { %256 = vmatpush.msra.mxu2 %v883_v60  ;;  %303 = vmatmul.f32.vlgmr.msra.gmra.mxu3 %v89_v7  ;;  %v448_v20 = vsub.f32 %v951_v15, %v447_v16 }
  0x26   :  { %320 = vmatpush.msrb.mxu0 %v112_v23  ;;  %187 = vmatpush.msra.mxu1 %v186_v2  ;;  %v53_v23 = vsel %vm48_vm0, %v17_v14, 0 }
  0x27   :  { %259 = vmatmul.f32.vlgmr.msra.gmra.mxu2 %v868_v49  ;;  %481 = vmatpush.msrb.mxu3 %v480_v48 }
  0x28   :  { %442 = vmatpush.msrb.mxu2 %v840_v31  ;;  %324 = vmatpush.msrb.mxu0 %v118_v24  ;;  %v959_v24 = vand.u32 4294901760, %v53_v23 }
  0x29   :  { %193 = vmatpush.msra.mxu1 %v192_v53  ;;  %92 = vmatmul.f32.vlgmr.msra.gmra.mxu0 %v91_v43 }
  0x2a   :  { %328 = vmatpush.msrb.mxu0 %v124_v27  ;;  %444 = vmatpush.msrb.mxu2 %v876_v54  ;;  %v630_v27 = vmov 0  }
  0x2b   :  { %199 = vmatpush.msra.mxu1 %v198_v22  ;;  %487 = vmatpush.msrb.mxu3 %v486_v18 }
  0x2c   :  { %201 = vmatmul.f32.vlgmr.msra.gmra.mxu1 %v838_v30  ;;  %332 = vmatpush.msrb.mxu0 %v130_v33  ;;  %v454_v33 = vsub.f32 %v53_v23, %v959_v24 }
  0x2d   :  { %387 = vmatpush.msrb.mxu1 %v660_v3  ;;  %629 = vset.pattern.permute.xlu0 %v630_v27  ;;  %v449_v3 = vand.u32 4294901760, %v448_v20 }
  0x2e   :  { %336 = vmatpush.msrb.mxu0 %v136_v40  ;;  %40 = vperm.xlu0 %629, %v36_v38  }
  0x2f   :  { %389 = vmatpush.msrb.mxu1 %v662_v4  ;;  %264 = vmatmul.f32.gmra.mxu2 %v96_v0  ;;  %v455_v4 = vand.u32 4294901760, %v454_v33 }
  0x30   :  { %340 = vmatpush.msrb.mxu0 %v142_v41  ;;  %309 = vmatmul.f32.gmra.mxu3 %v97_v58  ;;  %v1058_v41 = vand.u32 4294901760, %v883_v60 }
  0x31   :  { %391 = vmatpush.msrb.mxu1 %v664_v5  ;;  %100 = vmatmul.f32.gmra.mxu0 %v99_v19  ;;  %v37_v5 = vld [vmem:[%s1041_s2 + $0x8] sm:$0xff]  ;;  %v456_v28 = vsub.f32 %v454_v33, %v455_v4 }
  0x32   :  { %344 = vmatpush.msrb.mxu0 %v148_v47  ;;  %513 = vmatpush.msra.mxu2 %v871_v50 }
  0x33   :  { %393 = vmatpush.msrb.mxu1 %v675_v9  ;;  %543 = vmatpush.msra.mxu3 %v840_v31  ;;  %v1052_v9 = vand.u32 4294901760, %v781_v51  ;;  %v457_v40 = vand.u32 4294901760, %v456_v28 }
  0x34   :  { %205 = vmatmul.f32.gmra.mxu1 %v893_v8  ;;  %348 = vmatpush.msrb.mxu0 %v1051_v25 }
  0x35   :  { %395 = vmatpush.msrb.mxu1 %v677_v10  ;;  %516 = vmatpush.msra.mxu2 %v902_v32  ;;  %v1054_v10 = vand.u32 4294901760, %v810_v62 }
  0x36   :  { %352 = vmatpush.msrb.mxu0 %v1052_v9  ;;  %45 = vperm.xlu0 %629, %v37_v5  }
  0x37   :  { %397 = vmatpush.msrb.mxu1 %v679_v11  ;;  %450 = vmatmul.f32.vlgmr.msrb.gmra.mxu2 %v449_v3  ;;  %v1055_v11 = vand.u32 4294901760, %v831_v12 }
  0x38   :  { %356 = vmatpush.msrb.mxu0 %v1053_v34  ;;  %489 = vmatmul.f32.vlgmr.msrb.gmra.mxu3 %v935_v6 }
  0x39   :  { %399 = vmatpush.msrb.mxu1 %v698_v17  ;;  %624 = vmatpush.msrb.mxu2 %v899_v26  ;;  %v1056_v17 = vand.u32 4294901760, %v847_v36 }
  0x3a   :  { %360 = vmatpush.msrb.mxu0 %v1054_v10  ;;  %545 = vmatpush.msra.mxu3 %v876_v54 }
  0x3b   :  { %401 = vmatpush.msrb.mxu1 %v709_v21  ;;  %625 = vmatpush.msrb.mxu2 %v926_v1  ;;  %v1057_v21 = vand.u32 4294901760, %v862_v44 }
  0x3c   :  { %364 = vmatpush.msrb.mxu0 %v1055_v11  ;;  %626 = vmatpush.msrb.mxu3 %v840_v31 }
  0x3d   :  { %403 = vmatpush.msrb.mxu1 %v727_v29 }
  0x3e   :  { %368 = vmatpush.msrb.mxu0 %v1056_v17  ;;  %627 = vmatpush.msrb.mxu3 %v876_v54 }
  0x3f   :  { %405 = vmatpush.msrb.mxu1 %v745_v35  ;;  %458 = vmatmul.f32.gmra.mxu2 %v457_v40 }
  0x40   :  { %372 = vmatpush.msrb.mxu0 %v1057_v21  ;;  %493 = vmatmul.f32.gmra.mxu3 %v959_v24 }
  0x41   :  { %407 = vmatpush.msrb.mxu1 %v768_v46 }
  0x42   :  { %376 = vmatpush.msrb.mxu0 %v1058_v41 }
  0x43   :  { %409 = vmatpush.msrb.mxu1 %v783_v52  ;;  %378 = vmatmul.f32.vlgmr.msrb.gmra.mxu0 %v838_v30 }
  0x44   :  { %576 = vmatpush.msra.mxu0 %v899_v26 }
  0x45   :  { %411 = vmatpush.msrb.mxu1 %v797_v57 }
  0x46   :  { %580 = vmatpush.msra.mxu0 %v926_v1 }
  0x47   :  { %413 = vmatpush.msrb.mxu1 %v812_v63  ;;  %519 = vmatmul.f32.vlgmr.msra.gmra.mxu2 %v951_v15 }
  0x48   :  { %549 = vmatmul.f32.vlgmr.msra.gmra.mxu3 %v447_v16 }
  0x49   :  { %415 = vmatpush.msrb.mxu1 %v833_v13 }
  0x4b   :  { %417 = vmatpush.msrb.mxu1 %v849_v37  ;;  %382 = vmatmul.f32.gmra.mxu0 %v893_v8 }
  0x4c   :  { %419 = vmatmul.f32.vlgmr.msrb.gmra.mxu1 %v838_v30 }
  0x4d   :  { %605 = vmatpush.msra.mxu1 %v840_v31 }
  0x4f   :  { %607 = vmatpush.msra.mxu1 %v876_v54  ;;  %524 = vmatmul.f32.gmra.mxu2 %v454_v33 }
  0x50   :  { %555 = vmatmul.f32.gmra.mxu3 %v455_v4 }
  0x53   :  { %582 = vmatmul.f32.vlgmr.msra.gmra.mxu0 %v935_v6 }
  0x54   :  { %423 = vmatmul.f32.gmra.mxu1 %v893_v8 }
  0x57   :  { %586 = vmatmul.f32.vlgmr.msrb.gmra.mxu2 %v959_v24 }
  0x58   :  { %613 = vmatmul.f32.vlgmr.msrb.gmra.mxu3 %v959_v24 }
  0x5c   :  { %609 = vmatmul.f32.vlgmr.msra.gmra.mxu1 %v935_v6 }
  0xa0   :  { %v41_v47 = vpop.permute.xlu0 %40 }
  0xa6   :  { %v93_v45 = vpop.f32.mrf.mxu0 }
  0xa7   :  { %v94_v56 = vadd.f32 %v93_v45, %v41_v47 }
  0xa8   :  { %v304_v35 = vpop.f32.mrf.mxu3  ;;  %v46_v0 = vpop.permute.xlu0 %45 }
  0xa9   :  { %v202_v52 = vpop.f32.mrf.mxu1 }
  0xaa   :  { %v260_v29 = vpop.f32.mrf.mxu2  ;;  %v203_v63 = vadd.f32 %v202_v52, %v94_v56 }
  0xac   :  { %v261_v13 = vadd.f32 %v260_v29, %v203_v63 }
  0xae   :  { %v101_v57 = vpop.f32.mrf.mxu0  ;;  %v305_v44 = vadd.f32 %v304_v35, %v261_v13 }
  0xaf   :  { %v102_v30 = vadd.f32 %v101_v57, %v46_v0 }
  0xb1   :  { %v206_v12 = vpop.f32.mrf.mxu1 }
  0xb2   :  { %v265_v46 = vpop.f32.mrf.mxu2  ;;  %v207_v49 = vadd.f32 %v206_v12, %v102_v30 }
  0xb3   :  { %v310_v51 = vpop.f32.mrf.mxu3 }
  0xb4   :  { %v266_v60 = vadd.f32 %v265_v46, %v207_v49 }
  0xb6   :  { %v311_v39 = vadd.f32 %v310_v51, %v266_v60 }
  0xba   :  { %v451_v58 = vpop.f32.mrf.mxu2 }
  0xbb   :  { %v490_v62 = vpop.f32.mrf.mxu3 }
  0xc0   :  { %v379_v31 = vpop.f32.mrf.mxu0 }
  0xc1   :  { %v380_v50 = vadd.f32 %v379_v31, %v305_v44 }
  0xc2   :  { %v459_v36 = vpop.f32.mrf.mxu2 }
  0xc3   :  { %v494_v37 = vpop.f32.mrf.mxu3 }
  0xc8   :  { %v383_v26 = vpop.f32.mrf.mxu0 }
  0xc9   :  { %v420_v54 = vpop.f32.mrf.mxu1  ;;  %v384_v59 = vadd.f32 %v383_v26, %v311_v39 }
  0xca   :  { %v421_v6 = vadd.f32 %v420_v54, %v380_v50  ;;  %v520_v8 = vpop.f32.mrf.mxu2 }
  0xcb   :  { %v550_v32 = vpop.f32.mrf.mxu3 }
  0xcc   :  { %v452_v7 = vadd.f32 %v451_v58, %v421_v6 }
  0xce   :  { %v491_v55 = vadd.f32 %v490_v62, %v452_v7 }
  0xd0   :  { %v521_v1 = vadd.f32 %v520_v8, %v491_v55  ;;  %v583_v14 = vpop.f32.mrf.mxu0 }
  0xd1   :  { %v424_v2 = vpop.f32.mrf.mxu1 }
  0xd2   :  { %v425_v42 = vadd.f32 %v424_v2, %v384_v59  ;;  %v525_v53 = vpop.f32.mrf.mxu2  ;;  %v551_v48 = vadd.f32 %v550_v32, %v521_v1 }
  0xd3   :  { %v556_v22 = vpop.f32.mrf.mxu3 }
  0xd4   :  { %v460_v43 = vadd.f32 %v459_v36, %v425_v42  ;;  %v584_v18 = vadd.f32 %v583_v14, %v551_v48 }
  0xd6   :  { %v495_v15 = vadd.f32 %v494_v37, %v460_v43 }
  0xd8   :  { %v526_v23 = vadd.f32 %v525_v53, %v495_v15 }
  0xd9   :  { %v610_v61 = vpop.f32.mrf.mxu1 }
  0xda   :  { %v557_v16 = vadd.f32 %v556_v22, %v526_v23  ;;  %v611_v24 = vadd.f32 %v610_v61, %v584_v18  ;;  %v587_v38 = vpop.f32.mrf.mxu2 }
  0xdb   :  { %v614_v27 = vpop.f32.mrf.mxu3 }
  0xdc   :  { %618 = vst.msk [vmem:[%s1042_s3] sm:$0xff] %vm617_vm1, %v611_v24  ;;  %v588_v19 = vadd.f32 %v587_v38, %v557_v16 }
  0xde   :  { %v615_v20 = vadd.f32 %v614_v27, %v588_v19 }
  0xe0   :  { %619 = vst.msk [vmem:[%s1042_s3 + $0x8] sm:$0xff] %vm617_vm1, %v615_v20 }

// kernel: backbone_with_fpn_forward.16
= control target key start
LH: loop header
LB: loop body
LE: loop exit
PB: predicated region body
PF: predicated region fallthrough
CT: control target
= control target key end

     0   :  { %vm32_vm0 = vcmask 64512   ;;  %v230_v2 = vmov 0   ;;  %s283_s1 = inlined_call_operand.vmem [shape: f32[8,128], index: 1, kind: input, shape index: {}]   ;;  %s284_s0 = inlined_call_operand.vmem [shape: f32[16,8], index: 0, kind: input, shape index: {}]   ;;  %s285_s2 = inlined_call_operand.vmem [shape: f32[16,1], index: 2, kind: input, shape index: {}]   ;;  %s286_s3 = inlined_call_operand.vmem [shape: f32[16,128], index: 3, kind: input, shape index: {}]   ;;  %s287_s4 = inlined_call_operand.vmem [shape: f32[16,128], index: 4, kind: output, shape index: {}]  }
   0x1   :  { %v19_v0 = vld [vmem:[%s283_s1] sm:$0xff]  ;;  %v18_v1 = vld [vmem:[%s284_s0 + $0x8] sm:$0xff]  ;;  %229 = vset.pattern.permute.xlu0 %v230_v2 }
   0x2   :  { %v17_v3 = vld [vmem:[%s284_s0] sm:$0xff]  ;;  %v54_v4 = vand.u32 4294901760, %v19_v0  ;;  %v37_v5 = vsel %vm32_vm0, %v18_v1, 0  ;;  %v21_v17 = vld [vmem:[%s285_s2 + $0x8] sm:$0xff] }
   0x3   :  { %v34_v6 = vsel %vm32_vm0, %v17_v3, 0  ;;  %v20_v7 = vld [vmem:[%s285_s2] sm:$0xff]  ;;  %v64_v8 = vand.u32 4294901760, %v37_v5  ;;  %v217_v50 = vld [vmem:[%s286_s3 + $0x8] sm:$0xff] }
   0x4   :  { %v56_v9 = vand.u32 4294901760, %v34_v6  ;;  %24 = vperm.xlu0 %229, %v20_v7   ;;  %226 = vmatpush.msra.mxu2 %v54_v4  ;;  %v89_v10 = vsub.f32 %v19_v0, %v54_v4  ;;  %v216_v39 = vld [vmem:[%s286_s3] sm:$0xff] }
   0x5   :  { %55 = vmatpush.msra.mxu0 %v54_v4  ;;  %v65_v11 = vsub.f32 %v37_v5, %v64_v8 }
   0x6   :  { %v57_v12 = vsub.f32 %v34_v6, %v56_v9  ;;  %120 = vmatpush.msrb.mxu2 %v89_v10  ;;  %v90_v13 = vand.u32 4294901760, %v89_v10 }
   0x7   :  { %v66_v14 = vand.u32 4294901760, %v65_v11 }
   0x8   :  { %v58_v15 = vand.u32 4294901760, %v57_v12  ;;  %v91_v16 = vsub.f32 %v89_v10, %v90_v13  ;;  %180 = vmatpush.msrb.mxu0 %v90_v13 }
   0x9   :  { %v67_v18 = vsub.f32 %v65_v11, %v66_v14 }
   0xa   :  { %v59_v19 = vsub.f32 %v57_v12, %v58_v15  ;;  %v92_v20 = vand.u32 4294901760, %v91_v16 }
   0xb   :  { %v68_v21 = vand.u32 4294901760, %v67_v18 }
   0xc   :  { %v60_v22 = vand.u32 4294901760, %v59_v19  ;;  %29 = vperm.xlu0 %229, %v21_v17   ;;  %227 = vmatpush.msra.mxu3 %v92_v20 }
   0xd   :  { %93 = vmatpush.msra.mxu1 %v92_v20  ;;  %69 = vmatmul.f32.vlgmr.msra.gmra.mxu2 %v68_v21 }
   0xe   :  { %99 = vmatmul.f32.vlgmr.msra.gmra.mxu3 %v64_v8  ;;  %61 = vmatmul.f32.vlgmr.msra.gmra.mxu0 %v60_v22 }
   0xf   :  { %148 = vmatpush.msrb.mxu3 %v54_v4  ;;  %95 = vmatmul.f32.vlgmr.msra.gmra.mxu1 %v56_v9 }
  0x10   :  { %206 = vmatpush.msrb.mxu1 %v54_v4 }
  0x15   :  { %123 = vmatmul.f32.vlgmr.msrb.gmra.mxu2 %v57_v12 }
  0x16   :  { %152 = vmatmul.f32.vlgmr.msrb.gmra.mxu3 %v58_v15  ;;  %182 = vmatmul.f32.vlgmr.msrb.gmra.mxu0 %v56_v9 }
  0x17   :  { %208 = vmatmul.f32.vlgmr.msrb.gmra.mxu1 %v56_v9 }
  0x1d   :  { %128 = vmatmul.f32.gmra.mxu2 %v65_v11 }
  0x1e   :  { %158 = vmatmul.f32.gmra.mxu3 %v66_v14  ;;  %186 = vmatmul.f32.gmra.mxu0 %v64_v8 }
  0x1f   :  { %212 = vmatmul.f32.gmra.mxu1 %v64_v8 }
  0x76   :  { %v25_v23 = vpop.permute.xlu0 %24 }
  0x7e   :  { %v30_v30 = vpop.permute.xlu0 %29 }
  0x8b   :  { %v62_v24 = vpop.f32.mrf.mxu0 }
  0x8c   :  { %v96_v25 = vpop.f32.mrf.mxu1  ;;  %v63_v28 = vadd.f32 %v62_v24, %v25_v23 }
  0x8e   :  { %v97_v29 = vadd.f32 %v96_v25, %v63_v28 }
  0x90   :  { %v70_v26 = vpop.f32.mrf.mxu2 }
  0x91   :  { %v100_v27 = vpop.f32.mrf.mxu3  ;;  %v71_v36 = vadd.f32 %v70_v26, %v30_v30 }
  0x93   :  { %v183_v31 = vpop.f32.mrf.mxu0  ;;  %v101_v40 = vadd.f32 %v100_v27, %v71_v36 }
  0x94   :  { %v209_v35 = vpop.f32.mrf.mxu1 }
  0x98   :  { %v124_v32 = vpop.f32.mrf.mxu2 }
  0x99   :  { %v153_v33 = vpop.f32.mrf.mxu3  ;;  %v125_v34 = vadd.f32 %v124_v32, %v97_v29 }
  0x9b   :  { %v154_v37 = vadd.f32 %v153_v33, %v125_v34  ;;  %v187_v46 = vpop.f32.mrf.mxu0 }
  0x9c   :  { %v213_v48 = vpop.f32.mrf.mxu1 }
  0x9d   :  { %v184_v38 = vadd.f32 %v183_v31, %v154_v37 }
  0x9f   :  { %v210_v41 = vadd.f32 %v209_v35, %v184_v38 }
  0xa0   :  { %v129_v42 = vpop.f32.mrf.mxu2 }
  0xa1   :  { %v159_v43 = vpop.f32.mrf.mxu3  ;;  %v218_v44 = vadd.f32 %v216_v39, %v210_v41  ;;  %v130_v45 = vadd.f32 %v129_v42, %v101_v40 }
  0xa3   :  { %220 = vst [vmem:[%s287_s4] sm:$0xff] %v218_v44  ;;  %v160_v47 = vadd.f32 %v159_v43, %v130_v45 }
  0xa5   :  { %v188_v49 = vadd.f32 %v187_v46, %v160_v47 }
  0xa7   :  { %v214_v51 = vadd.f32 %v213_v48, %v188_v49 }
  0xa9   :  { %v219_v52 = vadd.f32 %v217_v50, %v214_v51 }
  0xab   :  { %221 = vst [vmem:[%s287_s4 + $0x8] sm:$0xff] %v219_v52 }

// kernel: backbone_with_fpn_forward.17
= control target key start
LH: loop header
LB: loop body
LE: loop exit
PB: predicated region body
PF: predicated region fallthrough
CT: control target
= control target key end

     0   :  { %vm48_vm0 = vcmask 130048   ;;  %s1038_s1 = inlined_call_operand.vmem [shape: f32[144,128], index: 1, kind: input, shape index: {}]   ;;  %s1039_s0 = inlined_call_operand.vmem [shape: f32[16,144], index: 0, kind: input, shape index: {}]   ;;  %s1040_s2 = inlined_call_operand.vmem [shape: f32[16,1], index: 2, kind: input, shape index: {}]   ;;  %s1041_s3 = inlined_call_operand.vmem [shape: f32[16,128], index: 3, kind: output, shape index: {}]  }
   0x1   :  { %v33_v0 = vld [vmem:[%s1038_s1 + $0x78] sm:$0xff]  ;;  %v32_v1 = vld [vmem:[%s1038_s1 + $0x70] sm:$0xff]  ;;  %v31_v2 = vld [vmem:[%s1038_s1 + $0x68] sm:$0xff] }
   0x2   :  { %v659_v3 = vand.u32 4294901760, %v33_v0  ;;  %v661_v4 = vand.u32 4294901760, %v32_v1  ;;  %v663_v5 = vand.u32 4294901760, %v31_v2  ;;  %v30_v6 = vld [vmem:[%s1038_s1 + $0x60] sm:$0xff]  ;;  %v29_v7 = vld [vmem:[%s1038_s1 + $0x58] sm:$0xff]  ;;  %v28_v8 = vld [vmem:[%s1038_s1 + $0x50] sm:$0xff] }
   0x3   :  { %v674_v9 = vand.u32 4294901760, %v30_v6  ;;  %v676_v10 = vand.u32 4294901760, %v29_v7  ;;  %v678_v11 = vand.u32 4294901760, %v28_v8  ;;  %v27_v12 = vld [vmem:[%s1038_s1 + $0x48] sm:$0xff]  ;;  %v26_v13 = vld [vmem:[%s1038_s1 + $0x40] sm:$0xff]  ;;  %v25_v18 = vld [vmem:[%s1038_s1 + $0x38] sm:$0xff] }
   0x4   :  { %56 = vmatpush.msra.mxu0 %v659_v3  ;;  %v688_v14 = vsub.f32 %v33_v0, %v659_v3  ;;  %v691_v15 = vsub.f32 %v32_v1, %v661_v4  ;;  %269 = vmatpush.msra.mxu3 %v659_v3  ;;  %v695_v16 = vsub.f32 %v31_v2, %v663_v5  ;;  %v697_v17 = vand.u32 4294901760, %v27_v12  ;;  %v24_v26 = vld [vmem:[%s1038_s1 + $0x30] sm:$0xff]  ;;  %v23_v36 = vld [vmem:[%s1038_s1 + $0x28] sm:$0xff]  ;;  %v22_v42 = vld [vmem:[%s1038_s1 + $0x20] sm:$0xff] }
   0x5   :  { %v703_v19 = vsub.f32 %v30_v6, %v674_v9  ;;  %v706_v20 = vsub.f32 %v29_v7, %v676_v10  ;;  %v708_v21 = vand.u32 4294901760, %v26_v13  ;;  %v716_v25 = vsub.f32 %v28_v8, %v678_v11  ;;  %v21_v48 = vld [vmem:[%s1038_s1 + $0x18] sm:$0xff]  ;;  %v20_v54 = vld [vmem:[%s1038_s1 + $0x10] sm:$0xff]  ;;  %v19_v60 = vld [vmem:[%s1038_s1 + $0x8] sm:$0xff] }
   0x6   :  { %58 = vmatpush.msra.mxu0 %v661_v4  ;;  %211 = vmatpush.msra.mxu2 %v688_v14  ;;  %v106_v22 = vand.u32 4294901760, %v688_v14  ;;  %v112_v23 = vand.u32 4294901760, %v691_v15  ;;  %v118_v24 = vand.u32 4294901760, %v695_v16  ;;  %v724_v28 = vsub.f32 %v27_v12, %v697_v17  ;;  %v14_v1 = vld [vmem:[%s1039_s0] sm:$0xff]  ;;  %v35_v2 = vld [vmem:[%s1038_s1 + $0x88] sm:$0xff] }
   0x7   :  { %271 = vmatpush.msra.mxu3 %v661_v4  ;;  %v124_v27 = vand.u32 4294901760, %v703_v19  ;;  %v726_v29 = vand.u32 4294901760, %v25_v18  ;;  %v130_v33 = vand.u32 4294901760, %v706_v20  ;;  %v742_v34 = vsub.f32 %v26_v13, %v708_v21  ;;  %v18_v7 = vld [vmem:[%s1038_s1] sm:$0xff] }
   0x8   :  { %60 = vmatpush.msra.mxu0 %v663_v5  ;;  %214 = vmatpush.msra.mxu2 %v691_v15  ;;  %v107_v30 = vsub.f32 %v688_v14, %v106_v22  ;;  %v113_v31 = vsub.f32 %v691_v15, %v112_v23  ;;  %v119_v32 = vsub.f32 %v695_v16, %v118_v24  ;;  %v744_v35 = vand.u32 4294901760, %v24_v26  ;;  %v17_v14 = vld [vmem:[%s1039_s0 + $0x18] sm:$0xff] }
   0x9   :  { %273 = vmatpush.msra.mxu3 %v663_v5  ;;  %v125_v39 = vsub.f32 %v703_v19, %v124_v27  ;;  %v136_v40 = vand.u32 4294901760, %v716_v25  ;;  %v142_v41 = vand.u32 4294901760, %v724_v28  ;;  %v131_v44 = vsub.f32 %v706_v20, %v130_v33 }
   0xa   :  { %62 = vmatpush.msra.mxu0 %v674_v9  ;;  %217 = vmatpush.msra.mxu2 %v695_v16  ;;  %v108_v37 = vand.u32 4294901760, %v107_v30  ;;  %v114_v38 = vand.u32 4294901760, %v113_v31  ;;  %v120_v43 = vand.u32 4294901760, %v119_v32  ;;  %v765_v45 = vsub.f32 %v25_v18, %v726_v29 }
   0xb   :  { %275 = vmatpush.msra.mxu3 %v674_v9  ;;  %v767_v46 = vand.u32 4294901760, %v23_v36  ;;  %v148_v47 = vand.u32 4294901760, %v742_v34  ;;  %v126_v49 = vand.u32 4294901760, %v125_v39  ;;  %v137_v50 = vsub.f32 %v716_v25, %v136_v40  ;;  %v34_v39 = vld [vmem:[%s1038_s1 + $0x80] sm:$0xff] }
   0xc   :  { %64 = vmatpush.msra.mxu0 %v676_v10  ;;  %109 = vmatpush.msra.mxu1 %v108_v37  ;;  %v780_v51 = vsub.f32 %v24_v26, %v744_v35  ;;  %v782_v52 = vand.u32 4294901760, %v22_v42  ;;  %v143_v53 = vsub.f32 %v724_v28, %v142_v41  ;;  %v132_v55 = vand.u32 4294901760, %v131_v44 }
   0xd   :  { %220 = vmatpush.msra.mxu2 %v703_v19  ;;  %277 = vmatpush.msra.mxu3 %v676_v10  ;;  %v794_v56 = vsub.f32 %v23_v36, %v767_v46  ;;  %v796_v57 = vand.u32 4294901760, %v21_v48  ;;  %v1048_v58 = vand.u32 4294901760, %v765_v45  ;;  %v149_v59 = vsub.f32 %v742_v34, %v148_v47 }
   0xe   :  { %66 = vmatpush.msra.mxu0 %v678_v11  ;;  %115 = vmatpush.msra.mxu1 %v114_v38  ;;  %v138_v61 = vand.u32 4294901760, %v137_v50  ;;  %v809_v62 = vsub.f32 %v22_v42, %v782_v52  ;;  %v811_v63 = vand.u32 4294901760, %v20_v54  ;;  %v1046_v0 = vand.u32 4294901760, %v780_v51 }
   0xf   :  { %223 = vmatpush.msra.mxu2 %v706_v20  ;;  %279 = vmatpush.msra.mxu3 %v678_v11  ;;  %v144_v6 = vand.u32 4294901760, %v143_v53  ;;  %v155_v8 = vsub.f32 %v765_v45, %v1048_v58  ;;  %v830_v12 = vsub.f32 %v21_v48, %v796_v57  ;;  %v832_v13 = vand.u32 4294901760, %v19_v60  ;;  %v16_v53 = vld [vmem:[%s1039_s0 + $0x10] sm:$0xff] }
  0x10   :  { %68 = vmatpush.msra.mxu0 %v697_v17  ;;  %121 = vmatpush.msra.mxu1 %v120_v43  ;;  %v1044_v18 = vand.u32 4294901760, %v794_v56  ;;  %v150_v26 = vand.u32 4294901760, %v149_v59  ;;  %v837_v30 = vand.u32 4294901760, %v14_v1  ;;  %v839_v31 = vand.u32 4294901760, %v35_v2 }
  0x11   :  { %226 = vmatpush.msra.mxu2 %v716_v25  ;;  %281 = vmatpush.msra.mxu3 %v697_v17  ;;  %v161_v32 = vsub.f32 %v780_v51, %v1046_v0  ;;  %v846_v36 = vsub.f32 %v20_v54, %v811_v63  ;;  %v848_v37 = vand.u32 4294901760, %v18_v7  ;;  %v1043_v38 = vand.u32 4294901760, %v809_v62 }
  0x12   :  { %70 = vmatpush.msra.mxu0 %v708_v21  ;;  %127 = vmatpush.msra.mxu1 %v126_v49  ;;  %v156_v42 = vand.u32 4294901760, %v155_v8  ;;  %v167_v43 = vsub.f32 %v794_v56, %v1044_v18  ;;  %v861_v44 = vsub.f32 %v19_v60, %v832_v13  ;;  %v1042_v48 = vand.u32 4294901760, %v830_v12 }
  0x13   :  { %229 = vmatpush.msra.mxu2 %v724_v28  ;;  %283 = vmatpush.msra.mxu3 %v708_v21  ;;  %v867_v49 = vsub.f32 %v14_v1, %v837_v30  ;;  %v870_v50 = vsub.f32 %v35_v2, %v839_v31  ;;  %v875_v54 = vand.u32 4294901760, %v34_v39  ;;  %v173_v59 = vsub.f32 %v809_v62, %v1043_v38 }
  0x14   :  { %72 = vmatpush.msra.mxu0 %v726_v29  ;;  %133 = vmatpush.msra.mxu1 %v132_v55  ;;  %v162_v55 = vand.u32 4294901760, %v161_v32  ;;  %v882_v60 = vsub.f32 %v18_v7, %v848_v37  ;;  %v168_v1 = vand.u32 4294901760, %v167_v43  ;;  %v179_v2 = vsub.f32 %v830_v12, %v1042_v48 }
  0x15   :  { %232 = vmatpush.msra.mxu2 %v742_v34  ;;  %285 = vmatpush.msra.mxu3 %v726_v29  ;;  %v892_v8 = vand.u32 4294901760, %v16_v53  ;;  %v89_v7 = vand.u32 4294901760, %v867_v49  ;;  %v901_v32 = vsub.f32 %v34_v39, %v875_v54  ;;  %v174_v43 = vand.u32 4294901760, %v173_v59 }
  0x16   :  { %74 = vmatpush.msra.mxu0 %v744_v35  ;;  %139 = vmatpush.msra.mxu1 %v138_v61  ;;  %v1045_v61 = vand.u32 4294901760, %v846_v36  ;;  %v1049_v38 = vand.u32 4294901760, %v882_v60  ;;  %v180_v39 = vand.u32 4294901760, %v179_v2  ;;  %v1050_v25 = vand.u32 4294901760, %v765_v45 }
  0x17   :  { %235 = vmatpush.msra.mxu2 %v765_v45  ;;  %287 = vmatpush.msra.mxu3 %v744_v35  ;;  %v96_v0 = vsub.f32 %v16_v53, %v892_v8  ;;  %v1052_v34 = vand.u32 4294901760, %v794_v56 }
  0x18   :  { %76 = vmatpush.msra.mxu0 %v767_v46  ;;  %145 = vmatpush.msra.mxu1 %v144_v6  ;;  %v1047_v6 = vand.u32 4294901760, %v861_v44  ;;  %v185_v48 = vsub.f32 %v846_v36, %v1045_v61  ;;  %v90_v61 = vsub.f32 %v867_v49, %v89_v7 }
  0x19   :  { %238 = vmatpush.msra.mxu2 %v780_v51  ;;  %289 = vmatpush.msra.mxu3 %v767_v46  ;;  %v97_v58 = vand.u32 4294901760, %v96_v0 }
  0x1a   :  { %78 = vmatpush.msra.mxu0 %v782_v52  ;;  %151 = vmatpush.msra.mxu1 %v150_v26  ;;  %v898_v26 = vand.u32 4294901760, %v870_v50  ;;  %v191_v18 = vsub.f32 %v861_v44, %v1047_v6  ;;  %v186_v2 = vand.u32 4294901760, %v185_v48 }
  0x1b   :  { %241 = vmatpush.msra.mxu2 %v794_v56  ;;  %291 = vmatpush.msra.mxu3 %v782_v52 }
  0x1c   :  { %80 = vmatpush.msra.mxu0 %v796_v57  ;;  %157 = vmatpush.msra.mxu1 %v156_v42  ;;  %v15_v42 = vld [vmem:[%s1039_s0 + $0x8] sm:$0xff]  ;;  %v479_v59 = vsub.f32 %v870_v50, %v898_v26  ;;  %v192_v53 = vand.u32 4294901760, %v191_v18 }
  0x1d   :  { %244 = vmatpush.msra.mxu2 %v809_v62  ;;  %293 = vmatpush.msra.mxu3 %v796_v57 }
  0x1e   :  { %82 = vmatpush.msra.mxu0 %v811_v63  ;;  %163 = vmatpush.msra.mxu1 %v162_v55  ;;  %v50_v55 = vsel %vm48_vm0, %v15_v42, 0  ;;  %v197_v42 = vsub.f32 %v882_v60, %v1049_v38  ;;  %v480_v48 = vand.u32 4294901760, %v479_v59 }
  0x1f   :  { %247 = vmatpush.msra.mxu2 %v830_v12  ;;  %295 = vmatpush.msra.mxu3 %v811_v63  ;;  %v934_v6 = vand.u32 4294901760, %v50_v55 }
  0x20   :  { %84 = vmatpush.msra.mxu0 %v832_v13  ;;  %169 = vmatpush.msra.mxu1 %v168_v1  ;;  %v925_v1 = vand.u32 4294901760, %v901_v32 }
  0x21   :  { %250 = vmatpush.msra.mxu2 %v846_v36  ;;  %297 = vmatpush.msra.mxu3 %v832_v13  ;;  %v950_v15 = vsub.f32 %v50_v55, %v934_v6 }
  0x22   :  { %86 = vmatpush.msra.mxu0 %v848_v37  ;;  %175 = vmatpush.msra.mxu1 %v174_v43  ;;  %v91_v43 = vand.u32 4294901760, %v90_v61  ;;  %v485_v38 = vsub.f32 %v901_v32, %v925_v1  ;;  %v98_v61 = vsub.f32 %v96_v0, %v97_v58 }
  0x23   :  { %253 = vmatpush.msra.mxu2 %v861_v44  ;;  %299 = vmatpush.msra.mxu3 %v848_v37  ;;  %v447_v16 = vand.u32 4294901760, %v950_v15 }
  0x24   :  { %316 = vmatpush.msrb.mxu0 %v106_v22  ;;  %181 = vmatpush.msra.mxu1 %v180_v39  ;;  %v198_v22 = vand.u32 4294901760, %v197_v42  ;;  %v486_v18 = vand.u32 4294901760, %v485_v38  ;;  %v36_v38 = vld [vmem:[%s1040_s2] sm:$0xff]  ;;  %v99_v19 = vand.u32 4294901760, %v98_v61 }
  0x25   :  { %256 = vmatpush.msra.mxu2 %v882_v60  ;;  %303 = vmatmul.f32.vlgmr.msra.gmra.mxu3 %v89_v7  ;;  %v448_v20 = vsub.f32 %v950_v15, %v447_v16 }
  0x26   :  { %320 = vmatpush.msrb.mxu0 %v112_v23  ;;  %187 = vmatpush.msra.mxu1 %v186_v2  ;;  %v53_v23 = vsel %vm48_vm0, %v17_v14, 0 }
  0x27   :  { %259 = vmatmul.f32.vlgmr.msra.gmra.mxu2 %v867_v49  ;;  %481 = vmatpush.msrb.mxu3 %v480_v48 }
  0x28   :  { %442 = vmatpush.msrb.mxu2 %v839_v31  ;;  %324 = vmatpush.msrb.mxu0 %v118_v24  ;;  %v958_v24 = vand.u32 4294901760, %v53_v23 }
  0x29   :  { %193 = vmatpush.msra.mxu1 %v192_v53  ;;  %92 = vmatmul.f32.vlgmr.msra.gmra.mxu0 %v91_v43 }
  0x2a   :  { %328 = vmatpush.msrb.mxu0 %v124_v27  ;;  %444 = vmatpush.msrb.mxu2 %v875_v54  ;;  %v629_v27 = vmov 0  }
  0x2b   :  { %199 = vmatpush.msra.mxu1 %v198_v22  ;;  %487 = vmatpush.msrb.mxu3 %v486_v18 }
  0x2c   :  { %201 = vmatmul.f32.vlgmr.msra.gmra.mxu1 %v837_v30  ;;  %332 = vmatpush.msrb.mxu0 %v130_v33  ;;  %v454_v33 = vsub.f32 %v53_v23, %v958_v24 }
  0x2d   :  { %387 = vmatpush.msrb.mxu1 %v659_v3  ;;  %628 = vset.pattern.permute.xlu0 %v629_v27  ;;  %v449_v3 = vand.u32 4294901760, %v448_v20 }
  0x2e   :  { %336 = vmatpush.msrb.mxu0 %v136_v40  ;;  %40 = vperm.xlu0 %628, %v36_v38  }
  0x2f   :  { %389 = vmatpush.msrb.mxu1 %v661_v4  ;;  %264 = vmatmul.f32.gmra.mxu2 %v96_v0  ;;  %v455_v4 = vand.u32 4294901760, %v454_v33 }
  0x30   :  { %340 = vmatpush.msrb.mxu0 %v142_v41  ;;  %309 = vmatmul.f32.gmra.mxu3 %v97_v58  ;;  %v1057_v41 = vand.u32 4294901760, %v882_v60 }
  0x31   :  { %391 = vmatpush.msrb.mxu1 %v663_v5  ;;  %100 = vmatmul.f32.gmra.mxu0 %v99_v19  ;;  %v37_v5 = vld [vmem:[%s1040_s2 + $0x8] sm:$0xff]  ;;  %v456_v28 = vsub.f32 %v454_v33, %v455_v4 }
  0x32   :  { %344 = vmatpush.msrb.mxu0 %v148_v47  ;;  %513 = vmatpush.msra.mxu2 %v870_v50 }
  0x33   :  { %393 = vmatpush.msrb.mxu1 %v674_v9  ;;  %543 = vmatpush.msra.mxu3 %v839_v31  ;;  %v1051_v9 = vand.u32 4294901760, %v780_v51  ;;  %v457_v40 = vand.u32 4294901760, %v456_v28 }
  0x34   :  { %205 = vmatmul.f32.gmra.mxu1 %v892_v8  ;;  %348 = vmatpush.msrb.mxu0 %v1050_v25 }
  0x35   :  { %395 = vmatpush.msrb.mxu1 %v676_v10  ;;  %516 = vmatpush.msra.mxu2 %v901_v32  ;;  %v1053_v10 = vand.u32 4294901760, %v809_v62 }
  0x36   :  { %352 = vmatpush.msrb.mxu0 %v1051_v9  ;;  %45 = vperm.xlu0 %628, %v37_v5  }
  0x37   :  { %397 = vmatpush.msrb.mxu1 %v678_v11  ;;  %450 = vmatmul.f32.vlgmr.msrb.gmra.mxu2 %v449_v3  ;;  %v1054_v11 = vand.u32 4294901760, %v830_v12 }
  0x38   :  { %356 = vmatpush.msrb.mxu0 %v1052_v34  ;;  %489 = vmatmul.f32.vlgmr.msrb.gmra.mxu3 %v934_v6 }
  0x39   :  { %399 = vmatpush.msrb.mxu1 %v697_v17  ;;  %623 = vmatpush.msrb.mxu2 %v898_v26  ;;  %v1055_v17 = vand.u32 4294901760, %v846_v36 }
  0x3a   :  { %360 = vmatpush.msrb.mxu0 %v1053_v10  ;;  %545 = vmatpush.msra.mxu3 %v875_v54 }
  0x3b   :  { %401 = vmatpush.msrb.mxu1 %v708_v21  ;;  %624 = vmatpush.msrb.mxu2 %v925_v1  ;;  %v1056_v21 = vand.u32 4294901760, %v861_v44 }
  0x3c   :  { %364 = vmatpush.msrb.mxu0 %v1054_v11  ;;  %625 = vmatpush.msrb.mxu3 %v839_v31 }
  0x3d   :  { %403 = vmatpush.msrb.mxu1 %v726_v29 }
  0x3e   :  { %368 = vmatpush.msrb.mxu0 %v1055_v17  ;;  %626 = vmatpush.msrb.mxu3 %v875_v54 }
  0x3f   :  { %405 = vmatpush.msrb.mxu1 %v744_v35  ;;  %458 = vmatmul.f32.gmra.mxu2 %v457_v40 }
  0x40   :  { %372 = vmatpush.msrb.mxu0 %v1056_v21  ;;  %493 = vmatmul.f32.gmra.mxu3 %v958_v24 }
  0x41   :  { %407 = vmatpush.msrb.mxu1 %v767_v46 }
  0x42   :  { %376 = vmatpush.msrb.mxu0 %v1057_v41 }
  0x43   :  { %409 = vmatpush.msrb.mxu1 %v782_v52  ;;  %378 = vmatmul.f32.vlgmr.msrb.gmra.mxu0 %v837_v30 }
  0x44   :  { %576 = vmatpush.msra.mxu0 %v898_v26 }
  0x45   :  { %411 = vmatpush.msrb.mxu1 %v796_v57 }
  0x46   :  { %580 = vmatpush.msra.mxu0 %v925_v1 }
  0x47   :  { %413 = vmatpush.msrb.mxu1 %v811_v63  ;;  %519 = vmatmul.f32.vlgmr.msra.gmra.mxu2 %v950_v15 }
  0x48   :  { %549 = vmatmul.f32.vlgmr.msra.gmra.mxu3 %v447_v16 }
  0x49   :  { %415 = vmatpush.msrb.mxu1 %v832_v13 }
  0x4b   :  { %417 = vmatpush.msrb.mxu1 %v848_v37  ;;  %382 = vmatmul.f32.gmra.mxu0 %v892_v8 }
  0x4c   :  { %419 = vmatmul.f32.vlgmr.msrb.gmra.mxu1 %v837_v30 }
  0x4d   :  { %605 = vmatpush.msra.mxu1 %v839_v31 }
  0x4f   :  { %607 = vmatpush.msra.mxu1 %v875_v54  ;;  %524 = vmatmul.f32.gmra.mxu2 %v454_v33 }
  0x50   :  { %555 = vmatmul.f32.gmra.mxu3 %v455_v4 }
  0x53   :  { %582 = vmatmul.f32.vlgmr.msra.gmra.mxu0 %v934_v6 }
  0x54   :  { %423 = vmatmul.f32.gmra.mxu1 %v892_v8 }
  0x57   :  { %586 = vmatmul.f32.vlgmr.msrb.gmra.mxu2 %v958_v24 }
  0x58   :  { %613 = vmatmul.f32.vlgmr.msrb.gmra.mxu3 %v958_v24 }
  0x5c   :  { %609 = vmatmul.f32.vlgmr.msra.gmra.mxu1 %v934_v6 }
  0xa0   :  { %v41_v47 = vpop.permute.xlu0 %40 }
  0xa6   :  { %v93_v45 = vpop.f32.mrf.mxu0 }
  0xa7   :  { %v94_v56 = vadd.f32 %v93_v45, %v41_v47 }
  0xa8   :  { %v304_v35 = vpop.f32.mrf.mxu3  ;;  %v46_v0 = vpop.permute.xlu0 %45 }
  0xa9   :  { %v202_v52 = vpop.f32.mrf.mxu1 }
  0xaa   :  { %v260_v29 = vpop.f32.mrf.mxu2  ;;  %v203_v63 = vadd.f32 %v202_v52, %v94_v56 }
  0xac   :  { %v261_v13 = vadd.f32 %v260_v29, %v203_v63 }
  0xae   :  { %v101_v57 = vpop.f32.mrf.mxu0  ;;  %v305_v44 = vadd.f32 %v304_v35, %v261_v13 }
  0xaf   :  { %v102_v30 = vadd.f32 %v101_v57, %v46_v0 }
  0xb1   :  { %v206_v12 = vpop.f32.mrf.mxu1 }
  0xb2   :  { %v265_v46 = vpop.f32.mrf.mxu2  ;;  %v207_v49 = vadd.f32 %v206_v12, %v102_v30 }
  0xb3   :  { %v310_v51 = vpop.f32.mrf.mxu3 }
  0xb4   :  { %v266_v60 = vadd.f32 %v265_v46, %v207_v49 }
  0xb6   :  { %v311_v39 = vadd.f32 %v310_v51, %v266_v60 }
  0xba   :  { %v451_v58 = vpop.f32.mrf.mxu2 }
  0xbb   :  { %v490_v62 = vpop.f32.mrf.mxu3 }
  0xc0   :  { %v379_v31 = vpop.f32.mrf.mxu0 }
  0xc1   :  { %v380_v50 = vadd.f32 %v379_v31, %v305_v44 }
  0xc2   :  { %v459_v36 = vpop.f32.mrf.mxu2 }
  0xc3   :  { %v494_v37 = vpop.f32.mrf.mxu3 }
  0xc8   :  { %v383_v26 = vpop.f32.mrf.mxu0 }
  0xc9   :  { %v420_v54 = vpop.f32.mrf.mxu1  ;;  %v384_v59 = vadd.f32 %v383_v26, %v311_v39 }
  0xca   :  { %v421_v6 = vadd.f32 %v420_v54, %v380_v50  ;;  %v520_v8 = vpop.f32.mrf.mxu2 }
  0xcb   :  { %v550_v32 = vpop.f32.mrf.mxu3 }
  0xcc   :  { %v452_v7 = vadd.f32 %v451_v58, %v421_v6 }
  0xce   :  { %v491_v55 = vadd.f32 %v490_v62, %v452_v7 }
  0xd0   :  { %v521_v1 = vadd.f32 %v520_v8, %v491_v55  ;;  %v583_v14 = vpop.f32.mrf.mxu0 }
  0xd1   :  { %v424_v2 = vpop.f32.mrf.mxu1 }
  0xd2   :  { %v425_v42 = vadd.f32 %v424_v2, %v384_v59  ;;  %v525_v53 = vpop.f32.mrf.mxu2  ;;  %v551_v48 = vadd.f32 %v550_v32, %v521_v1 }
  0xd3   :  { %v556_v22 = vpop.f32.mrf.mxu3 }
  0xd4   :  { %v460_v43 = vadd.f32 %v459_v36, %v425_v42  ;;  %v584_v18 = vadd.f32 %v583_v14, %v551_v48 }
  0xd6   :  { %v495_v15 = vadd.f32 %v494_v37, %v460_v43 }
  0xd8   :  { %v526_v23 = vadd.f32 %v525_v53, %v495_v15 }
  0xd9   :  { %v610_v61 = vpop.f32.mrf.mxu1 }
  0xda   :  { %v557_v16 = vadd.f32 %v556_v22, %v526_v23  ;;  %v611_v24 = vadd.f32 %v610_v61, %v584_v18  ;;  %v587_v38 = vpop.f32.mrf.mxu2 }
  0xdb   :  { %v614_v27 = vpop.f32.mrf.mxu3 }
  0xdc   :  { %617 = vst [vmem:[%s1041_s3] sm:$0xff] %v611_v24  ;;  %v588_v19 = vadd.f32 %v587_v38, %v557_v16 }
  0xde   :  { %v615_v20 = vadd.f32 %v614_v27, %v588_v19 }
  0xe0   :  { %618 = vst [vmem:[%s1041_s3 + $0x8] sm:$0xff] %v615_v20 }

</bundles_post_ra>
